<compile_context>
chip_gen: v6e
topology: v6e:2x2x1
jax: 0.10.0
libtpu: 0.0.40
codegen_flags: <defaults>
</compile_context>

<pallas_src>
import functools

import jax
import jax.numpy as jnp
from jax.experimental import pallas as pl
from jax.experimental.pallas import tpu as pltpu

KS = 7        # kernel_size
PAD = 3       # padding for kernel_size == 7


def _pick_c_tile(C: int, HW: int, itemsize: int) -> int:
    """Channel tile: a multiple of the sublane packing that divides C and keeps the
    per-step input block around <= ~2 MiB; falls back to the full channel dim
    (always a legal block since it equals the full array dim)."""
    min_tile = {4: 8, 2: 16, 1: 32}.get(itemsize, 8)
    budget_elems = (2 * 1024 * 1024) // max(itemsize, 1)
    best = C
    for mult in range(1, C // min_tile + 1):
        t = mult * min_tile
        if C % t == 0 and t * HW <= budget_elems:
            best = t
    return best


def _spatial_attn_kernel(w_ref, x_ref, o_ref, sum_ref, max_ref, pad_ref,
                         *, c_total, h, w):
    # w_ref  : SMEM (2*KS*KS,) f32  -- conv weights flattened in OIHW order
    # x_ref  : VMEM (1, C_TILE, H*W) -- lane-dense channel tile of one batch elem
    # o_ref  : VMEM (1, 1, H, W)
    # sum_ref: VMEM (1, H*W) f32    -- running channel sum
    # max_ref: VMEM (1, H*W) f32    -- running channel max
    # pad_ref: VMEM (2, H+2*PAD, W+2*PAD) f32 -- zero-bordered sum/max maps
    c_idx = pl.program_id(1)
    n_c = pl.num_programs(1)

    # ---- streaming, lane-dense channel reduction (last dim = H*W) ----
    x = x_ref[0].astype(jnp.float32)                   # (C_TILE, H*W)
    part_sum = jnp.sum(x, axis=0, keepdims=True)       # (1, H*W)
    part_max = jnp.max(x, axis=0, keepdims=True)       # (1, H*W)

    @pl.when(c_idx == 0)
    def _init():
        sum_ref[...] = jnp.zeros(sum_ref.shape, jnp.float32)
        max_ref[...] = jnp.full(max_ref.shape, -jnp.inf, jnp.float32)

    sum_ref[...] = sum_ref[...] + part_sum
    max_ref[...] = jnp.maximum(max_ref[...], part_max)

    # ---- epilogue: 7x7 conv (2->1 ch) + sigmoid, once per batch element ----
    @pl.when(c_idx == n_c - 1)
    def _epilogue():
        sum_map = sum_ref[...]                          # (1, H*W) unnormalized sum
        max_map = max_ref[...]                          # (1, H*W)

        # Zero only the PAD-wide halo border (interior fully overwritten below).
        zero_row = jnp.zeros((PAD, w + 2 * PAD), jnp.float32)
        zero_col = jnp.zeros((h, PAD), jnp.float32)
        for c in range(2):
            pad_ref[c, 0:PAD, :] = zero_row                       # top
            pad_ref[c, PAD + h:PAD + h + PAD, :] = zero_row       # bottom
            pad_ref[c, PAD:PAD + h, 0:PAD] = zero_col             # left
            pad_ref[c, PAD:PAD + h, PAD + w:PAD + w + PAD] = zero_col  # right

        # Row-scatter the flat maps into the (H, W) interiors (no value reshape).
        for r in range(h):
            row = slice(r * w, (r + 1) * w)
            pad_ref[0, PAD + r:PAD + r + 1, PAD:PAD + w] = sum_map[:, row]
            pad_ref[1, PAD + r:PAD + r + 1, PAD:PAD + w] = max_map[:, row]

        # 7x7 conv, 2 in-channels -> 1 out-channel.
        # Hoist the kw lane shift: 14 sliced loads, each reused across 7 kh
        # sublane offsets; the inner work is plain scalar * tile mul/adds.
        # The mean's 1/C is folded into the channel-0 weights (scalar unit).
        inv_c = 1.0 / float(c_total)
        acc = jnp.zeros((h, w), jnp.float32)
        for c in range(2):
            scale = inv_c if c == 0 else 1.0
            for kw in range(KS):
                col = pad_ref[c, :, kw:kw + w]          # (H + 2*PAD, W)
                for kh in range(KS):
                    wgt = w_ref[c * KS * KS + kh * KS + kw] * scale
                    acc = acc + wgt * col[kh:kh + h, :]

        o_ref[0, 0] = jax.nn.sigmoid(acc).astype(o_ref.dtype)


def spatial_attention1(x, conv_w):
    """x: (B, C, H, W).  conv_w: (1, 2, KS, KS) f32 (OIHW).  Returns (B, 1, H, W)."""
    B, C, H, W = x.shape
    HW = H * W
    itemsize = x.dtype.itemsize

    # Lane-dense layout for the channel reduction (free reshape in XLA).
    x_flat = x.reshape(B, C, HW)
    w_flat = conv_w.reshape(-1).astype(jnp.float32)     # (2*KS*KS,)

    c_tile = _pick_c_tile(C, HW, itemsize)
    n_c = C // c_tile

    kernel = functools.partial(_spatial_attn_kernel, c_total=C, h=H, w=W)

    # Scheduler hint: reduction + conv flops, sigmoid transcendentals, HBM bytes.
    cost = pl.CostEstimate(
        flops=int(2 * B * C * HW + 2 * B * HW * 2 * KS * KS),
        transcendentals=int(B * HW),
        bytes_accessed=int(B * C * HW * itemsize + B * HW * itemsize + 2 * KS * KS * 4),
    )

    # Explicit VMEM budget: double-buffered input block + scratch + headroom
    # (v5e default scoped limit is only 16 MiB; blocks here are tiny anyway).
    blk_bytes = c_tile * HW * itemsize
    scratch_bytes = 4 * (2 * HW + 2 * (H + 2 * PAD) * (W + 2 * PAD))
    vmem_limit = int(min(100 * 1024 * 1024,
                         max(32 * 1024 * 1024,
                             4 * blk_bytes + scratch_bytes + (2 << 20))))

    return pl.pallas_call(
        kernel,
        out_shape=jax.ShapeDtypeStruct((B, 1, H, W), x.dtype),
        grid=(B, n_c),                                   # reduction axis last
        in_specs=[
            pl.BlockSpec(memory_space=pltpu.MemorySpace.SMEM),        # weights
            pl.BlockSpec((1, c_tile, HW), lambda b, c: (b, c, 0)),    # x channel tile
        ],
        out_specs=pl.BlockSpec((1, 1, H, W), lambda b, c: (b, 0, 0, 0)),
        scratch_shapes=[
            pltpu.VMEM((1, HW), jnp.float32),                         # running sum
            pltpu.VMEM((1, HW), jnp.float32),                         # running max
            pltpu.VMEM((2, H + 2 * PAD, W + 2 * PAD), jnp.float32),   # padded maps
        ],
        compiler_params=pltpu.CompilerParams(
            dimension_semantics=("parallel", "arbitrary"),  # batch sharded on v7x
            vmem_limit_bytes=vmem_limit,
        ),
        cost_estimate=cost,
    )(w_flat, x_flat)


def _reference(x, conv_w):
    avg = jnp.mean(x, axis=1, keepdims=True)
    mx = jnp.max(x, axis=1, keepdims=True)
    xc = jnp.concatenate([avg, mx], axis=1)
    y = jax.lax.conv_general_dilated(
        xc, conv_w, window_strides=(1, 1),
        padding=((PAD, PAD), (PAD, PAD)),
        dimension_numbers=("NCHW", "OIHW", "NCHW"))
    return jax.nn.sigmoid(y)


if __name__ == "__main__":
    key = jax.random.PRNGKey(0)
    kx, kw = jax.random.split(key)

    B, C, H, W = 2, 4, 16, 16
    x = jax.random.normal(kx, (B, C, H, W), dtype=jnp.float32)

    # Deterministic Conv2d(2, 1, 7, bias=False) weight init (PyTorch-style uniform bound).
    fan_in = 2 * KS * KS
    bound = 1.0 / jnp.sqrt(fan_in)
    conv_w = jax.random.uniform(kw, (1, 2, KS, KS), jnp.float32, -bound, bound)

    out = spatial_attention1(x, conv_w)
    out = jax.block_until_ready(out)

    ref = _reference(x, conv_w)
    assert out.shape == (B, 1, H, W)
    assert jnp.allclose(out, ref, atol=1e-5, rtol=1e-5), "mismatch vs reference"

    print("KERNEL_OK")
</pallas_src>

<mosaic_0001>
module attributes {stable_mosaic.version = 11 : i64} {
  func.func @_spatial_attn_kernel(%arg0: i32, %arg1: i32, %arg2: memref<98xf32, #tpu.memory_space<smem>>, %arg3: memref<1x4x256xf32, #tpu.memory_space<vmem>>, %arg4: memref<1x1x16x16xf32, #tpu.memory_space<vmem>>, %arg5: memref<1x256xf32, #tpu.memory_space<vmem>>, %arg6: memref<1x256xf32, #tpu.memory_space<vmem>>, %arg7: memref<2x22x22xf32, #tpu.memory_space<vmem>>) attributes {dimension_semantics = [#tpu.dimension_semantics<parallel>, #tpu.dimension_semantics<arbitrary>], iteration_bounds = array<i64: 2, 1>, scalar_prefetch = 0 : i64, scratch_operands = 3 : i64, tpu.core_type = #tpu.core_type<tc>, window_params = [{transform_indices = @transform_0, window_bounds = array<i64: 98>}, {transform_indices = @transform_1, window_bounds = array<i64: 1, 4, 256>}, {transform_indices = @transform_2, window_bounds = array<i64: 1, 1, 16, 16>}]} {
    %c0 = arith.constant 0 : index
    %c0_0 = arith.constant 0 : index
    %c0_1 = arith.constant 0 : index
    %0 = vector.load %arg3[%c0, %c0_0, %c0_1] : memref<1x4x256xf32, #tpu.memory_space<vmem>>, vector<1x4x256xf32>
    %1 = vector.shape_cast %0 : vector<1x4x256xf32> to vector<4x256xf32>
    %cst = arith.constant dense<0.000000e+00> : vector<256xf32>
    %2 = vector.multi_reduction <add>, %1, %cst [0] : vector<4x256xf32> to vector<256xf32>
    %3 = vector.shape_cast %2 : vector<256xf32> to vector<1x256xf32>
    %cst_2 = arith.constant dense<0xFF800000> : vector<256xf32>
    %4 = vector.multi_reduction <maximumf>, %1, %cst_2 [0] : vector<4x256xf32> to vector<256xf32>
    %5 = vector.shape_cast %4 : vector<256xf32> to vector<1x256xf32>
    %c0_i32 = arith.constant 0 : i32
    %6 = arith.cmpi eq, %arg1, %c0_i32 : i32
    %7 = arith.extui %6 : i1 to i32
    %c0_i32_3 = arith.constant 0 : i32
    %8 = arith.cmpi ne, %7, %c0_i32_3 : i32
    scf.if %8 {
      %cst_14 = arith.constant 0.000000e+00 : f32
      %18 = vector.broadcast %cst_14 : f32 to vector<1x256xf32>
      %c0_15 = arith.constant 0 : index
      %c0_16 = arith.constant 0 : index
      %19 = vector.load %arg5[%c0_15, %c0_16] : memref<1x256xf32, #tpu.memory_space<vmem>>, vector<1x256xf32>
      tpu.vector_store %arg5[%c0_15, %c0_16], %18 {strides = array<i32>} : memref<1x256xf32, #tpu.memory_space<vmem>>, vector<1x256xf32>,
      %cst_17 = arith.constant 0xFF800000 : f32
      %20 = vector.broadcast %cst_17 : f32 to vector<1x256xf32>
      %c0_18 = arith.constant 0 : index
      %c0_19 = arith.constant 0 : index
      %21 = vector.load %arg6[%c0_18, %c0_19] : memref<1x256xf32, #tpu.memory_space<vmem>>, vector<1x256xf32>
      tpu.vector_store %arg6[%c0_18, %c0_19], %20 {strides = array<i32>} : memref<1x256xf32, #tpu.memory_space<vmem>>, vector<1x256xf32>,
    } else {
    }
    %c0_4 = arith.constant 0 : index
    %c0_5 = arith.constant 0 : index
    %9 = vector.load %arg5[%c0_4, %c0_5] : memref<1x256xf32, #tpu.memory_space<vmem>>, vector<1x256xf32>
    %10 = arith.addf %9, %3 : vector<1x256xf32>
    %c0_6 = arith.constant 0 : index
    %c0_7 = arith.constant 0 : index
    %11 = vector.load %arg5[%c0_6, %c0_7] : memref<1x256xf32, #tpu.memory_space<vmem>>, vector<1x256xf32>
    tpu.vector_store %arg5[%c0_6, %c0_7], %10 {strides = array<i32>} : memref<1x256xf32, #tpu.memory_space<vmem>>, vector<1x256xf32>,
    %c0_8 = arith.constant 0 : index
    %c0_9 = arith.constant 0 : index
    %12 = vector.load %arg6[%c0_8, %c0_9] : memref<1x256xf32, #tpu.memory_space<vmem>>, vector<1x256xf32>
    %13 = arith.maximumf %12, %5 : vector<1x256xf32>
    %c0_10 = arith.constant 0 : index
    %c0_11 = arith.constant 0 : index
    %14 = vector.load %arg6[%c0_10, %c0_11] : memref<1x256xf32, #tpu.memory_space<vmem>>, vector<1x256xf32>
    tpu.vector_store %arg6[%c0_10, %c0_11], %13 {strides = array<i32>} : memref<1x256xf32, #tpu.memory_space<vmem>>, vector<1x256xf32>,
    %c0_i32_12 = arith.constant 0 : i32
    %15 = arith.cmpi eq, %arg1, %c0_i32_12 : i32
    %16 = arith.extui %15 : i1 to i32
    %c0_i32_13 = arith.constant 0 : i32
    %17 = arith.cmpi ne, %16, %c0_i32_13 : i32
    scf.if %17 {
      %c0_14 = arith.constant 0 : index
      %c0_15 = arith.constant 0 : index
      %18 = vector.load %arg5[%c0_14, %c0_15] : memref<1x256xf32, #tpu.memory_space<vmem>>, vector<1x256xf32>
      %c0_16 = arith.constant 0 : index
      %c0_17 = arith.constant 0 : index
      %19 = vector.load %arg6[%c0_16, %c0_17] : memref<1x256xf32, #tpu.memory_space<vmem>>, vector<1x256xf32>
      %cst_18 = arith.constant 0.000000e+00 : f32
      %20 = vector.broadcast %cst_18 : f32 to vector<3x22xf32>
      %cst_19 = arith.constant 0.000000e+00 : f32
      %21 = vector.broadcast %cst_19 : f32 to vector<16x3xf32>
      %c0_20 = arith.constant 0 : index
      %c0_21 = arith.constant 0 : index
      %c0_22 = arith.constant 0 : index
      %22 = vector.load %arg7[%c0_20, %c0_21, %c0_22] : memref<2x22x22xf32, #tpu.memory_space<vmem>>, vector<1x3x22xf32>
      %23 = vector.shape_cast %22 : vector<1x3x22xf32> to vector<3x22xf32>
      %24 = vector.shape_cast %20 : vector<3x22xf32> to vector<1x3x22xf32>
      tpu.vector_store %arg7[%c0_20, %c0_21, %c0_22], %24 {strides = array<i32>} : memref<2x22x22xf32, #tpu.memory_space<vmem>>, vector<1x3x22xf32>,
      %c0_23 = arith.constant 0 : index
      %c19 = arith.constant 19 : index
      %c0_24 = arith.constant 0 : index
      %25 = vector.load %arg7[%c0_23, %c19, %c0_24] : memref<2x22x22xf32, #tpu.memory_space<vmem>>, vector<1x3x22xf32>
      %26 = vector.shape_cast %25 : vector<1x3x22xf32> to vector<3x22xf32>
      %27 = vector.shape_cast %20 : vector<3x22xf32> to vector<1x3x22xf32>
      tpu.vector_store %arg7[%c0_23, %c19, %c0_24], %27 {strides = array<i32>} : memref<2x22x22xf32, #tpu.memory_space<vmem>>, vector<1x3x22xf32>,
      %c0_25 = arith.constant 0 : index
      %c3 = arith.constant 3 : index
      %c0_26 = arith.constant 0 : index
      %28 = vector.load %arg7[%c0_25, %c3, %c0_26] : memref<2x22x22xf32, #tpu.memory_space<vmem>>, vector<1x16x3xf32>
      %29 = vector.shape_cast %28 : vector<1x16x3xf32> to vector<16x3xf32>
      %30 = vector.shape_cast %21 : vector<16x3xf32> to vector<1x16x3xf32>
      tpu.vector_store %arg7[%c0_25, %c3, %c0_26], %30 {strides = array<i32>} : memref<2x22x22xf32, #tpu.memory_space<vmem>>, vector<1x16x3xf32>,
      %c0_27 = arith.constant 0 : index
      %c3_28 = arith.constant 3 : index
      %c19_29 = arith.constant 19 : index
      %31 = vector.load %arg7[%c0_27, %c3_28, %c19_29] : memref<2x22x22xf32, #tpu.memory_space<vmem>>, vector<1x16x3xf32>
      %32 = vector.shape_cast %31 : vector<1x16x3xf32> to vector<16x3xf32>
      %33 = vector.shape_cast %21 : vector<16x3xf32> to vector<1x16x3xf32>
      tpu.vector_store %arg7[%c0_27, %c3_28, %c19_29], %33 {strides = array<i32>} : memref<2x22x22xf32, #tpu.memory_space<vmem>>, vector<1x16x3xf32>,
      %c1 = arith.constant 1 : index
      %c0_30 = arith.constant 0 : index
      %c0_31 = arith.constant 0 : index
      %34 = vector.load %arg7[%c1, %c0_30, %c0_31] : memref<2x22x22xf32, #tpu.memory_space<vmem>>, vector<1x3x22xf32>
      %35 = vector.shape_cast %34 : vector<1x3x22xf32> to vector<3x22xf32>
      %36 = vector.shape_cast %20 : vector<3x22xf32> to vector<1x3x22xf32>
      tpu.vector_store %arg7[%c1, %c0_30, %c0_31], %36 {strides = array<i32>} : memref<2x22x22xf32, #tpu.memory_space<vmem>>, vector<1x3x22xf32>,
      %c1_32 = arith.constant 1 : index
      %c19_33 = arith.constant 19 : index
      %c0_34 = arith.constant 0 : index
      %37 = vector.load %arg7[%c1_32, %c19_33, %c0_34] : memref<2x22x22xf32, #tpu.memory_space<vmem>>, vector<1x3x22xf32>
      %38 = vector.shape_cast %37 : vector<1x3x22xf32> to vector<3x22xf32>
      %39 = vector.shape_cast %20 : vector<3x22xf32> to vector<1x3x22xf32>
      tpu.vector_store %arg7[%c1_32, %c19_33, %c0_34], %39 {strides = array<i32>} : memref<2x22x22xf32, #tpu.memory_space<vmem>>, vector<1x3x22xf32>,
      %c1_35 = arith.constant 1 : index
      %c3_36 = arith.constant 3 : index
      %c0_37 = arith.constant 0 : index
      %40 = vector.load %arg7[%c1_35, %c3_36, %c0_37] : memref<2x22x22xf32, #tpu.memory_space<vmem>>, vector<1x16x3xf32>
      %41 = vector.shape_cast %40 : vector<1x16x3xf32> to vector<16x3xf32>
      %42 = vector.shape_cast %21 : vector<16x3xf32> to vector<1x16x3xf32>
      tpu.vector_store %arg7[%c1_35, %c3_36, %c0_37], %42 {strides = array<i32>} : memref<2x22x22xf32, #tpu.memory_space<vmem>>, vector<1x16x3xf32>,
      %c1_38 = arith.constant 1 : index
      %c3_39 = arith.constant 3 : index
      %c19_40 = arith.constant 19 : index
      %43 = vector.load %arg7[%c1_38, %c3_39, %c19_40] : memref<2x22x22xf32, #tpu.memory_space<vmem>>, vector<1x16x3xf32>
      %44 = vector.shape_cast %43 : vector<1x16x3xf32> to vector<16x3xf32>
      %45 = vector.shape_cast %21 : vector<16x3xf32> to vector<1x16x3xf32>
      tpu.vector_store %arg7[%c1_38, %c3_39, %c19_40], %45 {strides = array<i32>} : memref<2x22x22xf32, #tpu.memory_space<vmem>>, vector<1x16x3xf32>,
      %46 = vector.extract_strided_slice %18 {offsets = [0, 0], sizes = [1, 16], strides = [1, 1]} : vector<1x256xf32> to vector<1x16xf32>
      %c0_41 = arith.constant 0 : index
      %c3_42 = arith.constant 3 : index
      %c3_43 = arith.constant 3 : index
      %47 = vector.load %arg7[%c0_41, %c3_42, %c3_43] : memref<2x22x22xf32, #tpu.memory_space<vmem>>, vector<1x1x16xf32>
      %48 = vector.shape_cast %47 : vector<1x1x16xf32> to vector<1x16xf32>
      %49 = vector.shape_cast %46 : vector<1x16xf32> to vector<1x1x16xf32>
      tpu.vector_store %arg7[%c0_41, %c3_42, %c3_43], %49 {strides = array<i32>} : memref<2x22x22xf32, #tpu.memory_space<vmem>>, vector<1x1x16xf32>,
      %50 = vector.extract_strided_slice %19 {offsets = [0, 0], sizes = [1, 16], strides = [1, 1]} : vector<1x256xf32> to vector<1x16xf32>
      %c1_44 = arith.constant 1 : index
      %c3_45 = arith.constant 3 : index
      %c3_46 = arith.constant 3 : index
      %51 = vector.load %arg7[%c1_44, %c3_45, %c3_46] : memref<2x22x22xf32, #tpu.memory_space<vmem>>, vector<1x1x16xf32>
      %52 = vector.shape_cast %51 : vector<1x1x16xf32> to vector<1x16xf32>
      %53 = vector.shape_cast %50 : vector<1x16xf32> to vector<1x1x16xf32>
      tpu.vector_store %arg7[%c1_44, %c3_45, %c3_46], %53 {strides = array<i32>} : memref<2x22x22xf32, #tpu.memory_space<vmem>>, vector<1x1x16xf32>,
      %54 = vector.extract_strided_slice %18 {offsets = [0, 16], sizes = [1, 16], strides = [1, 1]} : vector<1x256xf32> to vector<1x16xf32>
      %c0_47 = arith.constant 0 : index
      %c4 = arith.constant 4 : index
      %c3_48 = arith.constant 3 : index
      %55 = vector.load %arg7[%c0_47, %c4, %c3_48] : memref<2x22x22xf32, #tpu.memory_space<vmem>>, vector<1x1x16xf32>
      %56 = vector.shape_cast %55 : vector<1x1x16xf32> to vector<1x16xf32>
      %57 = vector.shape_cast %54 : vector<1x16xf32> to vector<1x1x16xf32>
      tpu.vector_store %arg7[%c0_47, %c4, %c3_48], %57 {strides = array<i32>} : memref<2x22x22xf32, #tpu.memory_space<vmem>>, vector<1x1x16xf32>,
      %58 = vector.extract_strided_slice %19 {offsets = [0, 16], sizes = [1, 16], strides = [1, 1]} : vector<1x256xf32> to vector<1x16xf32>
      %c1_49 = arith.constant 1 : index
      %c4_50 = arith.constant 4 : index
      %c3_51 = arith.constant 3 : index
      %59 = vector.load %arg7[%c1_49, %c4_50, %c3_51] : memref<2x22x22xf32, #tpu.memory_space<vmem>>, vector<1x1x16xf32>
      %60 = vector.shape_cast %59 : vector<1x1x16xf32> to vector<1x16xf32>
      %61 = vector.shape_cast %58 : vector<1x16xf32> to vector<1x1x16xf32>
      tpu.vector_store %arg7[%c1_49, %c4_50, %c3_51], %61 {strides = array<i32>} : memref<2x22x22xf32, #tpu.memory_space<vmem>>, vector<1x1x16xf32>,
      %62 = vector.extract_strided_slice %18 {offsets = [0, 32], sizes = [1, 16], strides = [1, 1]} : vector<1x256xf32> to vector<1x16xf32>
      %c0_52 = arith.constant 0 : index
      %c5 = arith.constant 5 : index
      %c3_53 = arith.constant 3 : index
      %63 = vector.load %arg7[%c0_52, %c5, %c3_53] : memref<2x22x22xf32, #tpu.memory_space<vmem>>, vector<1x1x16xf32>
      %64 = vector.shape_cast %63 : vector<1x1x16xf32> to vector<1x16xf32>
      %65 = vector.shape_cast %62 : vector<1x16xf32> to vector<1x1x16xf32>
      tpu.vector_store %arg7[%c0_52, %c5, %c3_53], %65 {strides = array<i32>} : memref<2x22x22xf32, #tpu.memory_space<vmem>>, vector<1x1x16xf32>,
      %66 = vector.extract_strided_slice %19 {offsets = [0, 32], sizes = [1, 16], strides = [1, 1]} : vector<1x256xf32> to vector<1x16xf32>
      %c1_54 = arith.constant 1 : index
      %c5_55 = arith.constant 5 : index
      %c3_56 = arith.constant 3 : index
      %67 = vector.load %arg7[%c1_54, %c5_55, %c3_56] : memref<2x22x22xf32, #tpu.memory_space<vmem>>, vector<1x1x16xf32>
      %68 = vector.shape_cast %67 : vector<1x1x16xf32> to vector<1x16xf32>
      %69 = vector.shape_cast %66 : vector<1x16xf32> to vector<1x1x16xf32>
      tpu.vector_store %arg7[%c1_54, %c5_55, %c3_56], %69 {strides = array<i32>} : memref<2x22x22xf32, #tpu.memory_space<vmem>>, vector<1x1x16xf32>,
      %70 = vector.extract_strided_slice %18 {offsets = [0, 48], sizes = [1, 16], strides = [1, 1]} : vector<1x256xf32> to vector<1x16xf32>
      %c0_57 = arith.constant 0 : index
      %c6 = arith.constant 6 : index
      %c3_58 = arith.constant 3 : index
      %71 = vector.load %arg7[%c0_57, %c6, %c3_58] : memref<2x22x22xf32, #tpu.memory_space<vmem>>, vector<1x1x16xf32>
      %72 = vector.shape_cast %71 : vector<1x1x16xf32> to vector<1x16xf32>
      %73 = vector.shape_cast %70 : vector<1x16xf32> to vector<1x1x16xf32>
      tpu.vector_store %arg7[%c0_57, %c6, %c3_58], %73 {strides = array<i32>} : memref<2x22x22xf32, #tpu.memory_space<vmem>>, vector<1x1x16xf32>,
      %74 = vector.extract_strided_slice %19 {offsets = [0, 48], sizes = [1, 16], strides = [1, 1]} : vector<1x256xf32> to vector<1x16xf32>
      %c1_59 = arith.constant 1 : index
      %c6_60 = arith.constant 6 : index
      %c3_61 = arith.constant 3 : index
      %75 = vector.load %arg7[%c1_59, %c6_60, %c3_61] : memref<2x22x22xf32, #tpu.memory_space<vmem>>, vector<1x1x16xf32>
      %76 = vector.shape_cast %75 : vector<1x1x16xf32> to vector<1x16xf32>
      %77 = vector.shape_cast %74 : vector<1x16xf32> to vector<1x1x16xf32>
      tpu.vector_store %arg7[%c1_59, %c6_60, %c3_61], %77 {strides = array<i32>} : memref<2x22x22xf32, #tpu.memory_space<vmem>>, vector<1x1x16xf32>,
      %78 = vector.extract_strided_slice %18 {offsets = [0, 64], sizes = [1, 16], strides = [1, 1]} : vector<1x256xf32> to vector<1x16xf32>
      %c0_62 = arith.constant 0 : index
      %c7 = arith.constant 7 : index
      %c3_63 = arith.constant 3 : index
      %79 = vector.load %arg7[%c0_62, %c7, %c3_63] : memref<2x22x22xf32, #tpu.memory_space<vmem>>, vector<1x1x16xf32>
      %80 = vector.shape_cast %79 : vector<1x1x16xf32> to vector<1x16xf32>
      %81 = vector.shape_cast %78 : vector<1x16xf32> to vector<1x1x16xf32>
      tpu.vector_store %arg7[%c0_62, %c7, %c3_63], %81 {strides = array<i32>} : memref<2x22x22xf32, #tpu.memory_space<vmem>>, vector<1x1x16xf32>,
      %82 = vector.extract_strided_slice %19 {offsets = [0, 64], sizes = [1, 16], strides = [1, 1]} : vector<1x256xf32> to vector<1x16xf32>
      %c1_64 = arith.constant 1 : index
      %c7_65 = arith.constant 7 : index
      %c3_66 = arith.constant 3 : index
      %83 = vector.load %arg7[%c1_64, %c7_65, %c3_66] : memref<2x22x22xf32, #tpu.memory_space<vmem>>, vector<1x1x16xf32>
      %84 = vector.shape_cast %83 : vector<1x1x16xf32> to vector<1x16xf32>
      %85 = vector.shape_cast %82 : vector<1x16xf32> to vector<1x1x16xf32>
      tpu.vector_store %arg7[%c1_64, %c7_65, %c3_66], %85 {strides = array<i32>} : memref<2x22x22xf32, #tpu.memory_space<vmem>>, vector<1x1x16xf32>,
      %86 = vector.extract_strided_slice %18 {offsets = [0, 80], sizes = [1, 16], strides = [1, 1]} : vector<1x256xf32> to vector<1x16xf32>
      %c0_67 = arith.constant 0 : index
      %c8 = arith.constant 8 : index
      %c3_68 = arith.constant 3 : index
      %87 = vector.load %arg7[%c0_67, %c8, %c3_68] : memref<2x22x22xf32, #tpu.memory_space<vmem>>, vector<1x1x16xf32>
      %88 = vector.shape_cast %87 : vector<1x1x16xf32> to vector<1x16xf32>
      %89 = vector.shape_cast %86 : vector<1x16xf32> to vector<1x1x16xf32>
      tpu.vector_store %arg7[%c0_67, %c8, %c3_68], %89 {strides = array<i32>} : memref<2x22x22xf32, #tpu.memory_space<vmem>>, vector<1x1x16xf32>,
      %90 = vector.extract_strided_slice %19 {offsets = [0, 80], sizes = [1, 16], strides = [1, 1]} : vector<1x256xf32> to vector<1x16xf32>
      %c1_69 = arith.constant 1 : index
      %c8_70 = arith.constant 8 : index
      %c3_71 = arith.constant 3 : index
      %91 = vector.load %arg7[%c1_69, %c8_70, %c3_71] : memref<2x22x22xf32, #tpu.memory_space<vmem>>, vector<1x1x16xf32>
      %92 = vector.shape_cast %91 : vector<1x1x16xf32> to vector<1x16xf32>
      %93 = vector.shape_cast %90 : vector<1x16xf32> to vector<1x1x16xf32>
      tpu.vector_store %arg7[%c1_69, %c8_70, %c3_71], %93 {strides = array<i32>} : memref<2x22x22xf32, #tpu.memory_space<vmem>>, vector<1x1x16xf32>,
      %94 = vector.extract_strided_slice %18 {offsets = [0, 96], sizes = [1, 16], strides = [1, 1]} : vector<1x256xf32> to vector<1x16xf32>
      %c0_72 = arith.constant 0 : index
      %c9 = arith.constant 9 : index
      %c3_73 = arith.constant 3 : index
      %95 = vector.load %arg7[%c0_72, %c9, %c3_73] : memref<2x22x22xf32, #tpu.memory_space<vmem>>, vector<1x1x16xf32>
      %96 = vector.shape_cast %95 : vector<1x1x16xf32> to vector<1x16xf32>
      %97 = vector.shape_cast %94 : vector<1x16xf32> to vector<1x1x16xf32>
      tpu.vector_store %arg7[%c0_72, %c9, %c3_73], %97 {strides = array<i32>} : memref<2x22x22xf32, #tpu.memory_space<vmem>>, vector<1x1x16xf32>,
      %98 = vector.extract_strided_slice %19 {offsets = [0, 96], sizes = [1, 16], strides = [1, 1]} : vector<1x256xf32> to vector<1x16xf32>
      %c1_74 = arith.constant 1 : index
      %c9_75 = arith.constant 9 : index
      %c3_76 = arith.constant 3 : index
      %99 = vector.load %arg7[%c1_74, %c9_75, %c3_76] : memref<2x22x22xf32, #tpu.memory_space<vmem>>, vector<1x1x16xf32>
      %100 = vector.shape_cast %99 : vector<1x1x16xf32> to vector<1x16xf32>
      %101 = vector.shape_cast %98 : vector<1x16xf32> to vector<1x1x16xf32>
      tpu.vector_store %arg7[%c1_74, %c9_75, %c3_76], %101 {strides = array<i32>} : memref<2x22x22xf32, #tpu.memory_space<vmem>>, vector<1x1x16xf32>,
      %102 = vector.extract_strided_slice %18 {offsets = [0, 112], sizes = [1, 16], strides = [1, 1]} : vector<1x256xf32> to vector<1x16xf32>
      %c0_77 = arith.constant 0 : index
      %c10 = arith.constant 10 : index
      %c3_78 = arith.constant 3 : index
      %103 = vector.load %arg7[%c0_77, %c10, %c3_78] : memref<2x22x22xf32, #tpu.memory_space<vmem>>, vector<1x1x16xf32>
      %104 = vector.shape_cast %103 : vector<1x1x16xf32> to vector<1x16xf32>
      %105 = vector.shape_cast %102 : vector<1x16xf32> to vector<1x1x16xf32>
      tpu.vector_store %arg7[%c0_77, %c10, %c3_78], %105 {strides = array<i32>} : memref<2x22x22xf32, #tpu.memory_space<vmem>>, vector<1x1x16xf32>,
      %106 = vector.extract_strided_slice %19 {offsets = [0, 112], sizes = [1, 16], strides = [1, 1]} : vector<1x256xf32> to vector<1x16xf32>
      %c1_79 = arith.constant 1 : index
      %c10_80 = arith.constant 10 : index
      %c3_81 = arith.constant 3 : index
      %107 = vector.load %arg7[%c1_79, %c10_80, %c3_81] : memref<2x22x22xf32, #tpu.memory_space<vmem>>, vector<1x1x16xf32>
      %108 = vector.shape_cast %107 : vector<1x1x16xf32> to vector<1x16xf32>
      %109 = vector.shape_cast %106 : vector<1x16xf32> to vector<1x1x16xf32>
      tpu.vector_store %arg7[%c1_79, %c10_80, %c3_81], %109 {strides = array<i32>} : memref<2x22x22xf32, #tpu.memory_space<vmem>>, vector<1x1x16xf32>,
      %110 = vector.extract_strided_slice %18 {offsets = [0, 128], sizes = [1, 16], strides = [1, 1]} : vector<1x256xf32> to vector<1x16xf32>
      %c0_82 = arith.constant 0 : index
      %c11 = arith.constant 11 : index
      %c3_83 = arith.constant 3 : index
      %111 = vector.load %arg7[%c0_82, %c11, %c3_83] : memref<2x22x22xf32, #tpu.memory_space<vmem>>, vector<1x1x16xf32>
      %112 = vector.shape_cast %111 : vector<1x1x16xf32> to vector<1x16xf32>
      %113 = vector.shape_cast %110 : vector<1x16xf32> to vector<1x1x16xf32>
      tpu.vector_store %arg7[%c0_82, %c11, %c3_83], %113 {strides = array<i32>} : memref<2x22x22xf32, #tpu.memory_space<vmem>>, vector<1x1x16xf32>,
      %114 = vector.extract_strided_slice %19 {offsets = [0, 128], sizes = [1, 16], strides = [1, 1]} : vector<1x256xf32> to vector<1x16xf32>
      %c1_84 = arith.constant 1 : index
      %c11_85 = arith.constant 11 : index
      %c3_86 = arith.constant 3 : index
      %115 = vector.load %arg7[%c1_84, %c11_85, %c3_86] : memref<2x22x22xf32, #tpu.memory_space<vmem>>, vector<1x1x16xf32>
      %116 = vector.shape_cast %115 : vector<1x1x16xf32> to vector<1x16xf32>
      %117 = vector.shape_cast %114 : vector<1x16xf32> to vector<1x1x16xf32>
      tpu.vector_store %arg7[%c1_84, %c11_85, %c3_86], %117 {strides = array<i32>} : memref<2x22x22xf32, #tpu.memory_space<vmem>>, vector<1x1x16xf32>,
      %118 = vector.extract_strided_slice %18 {offsets = [0, 144], sizes = [1, 16], strides = [1, 1]} : vector<1x256xf32> to vector<1x16xf32>
      %c0_87 = arith.constant 0 : index
      %c12 = arith.constant 12 : index
      %c3_88 = arith.constant 3 : index
      %119 = vector.load %arg7[%c0_87, %c12, %c3_88] : memref<2x22x22xf32, #tpu.memory_space<vmem>>, vector<1x1x16xf32>
      %120 = vector.shape_cast %119 : vector<1x1x16xf32> to vector<1x16xf32>
      %121 = vector.shape_cast %118 : vector<1x16xf32> to vector<1x1x16xf32>
      tpu.vector_store %arg7[%c0_87, %c12, %c3_88], %121 {strides = array<i32>} : memref<2x22x22xf32, #tpu.memory_space<vmem>>, vector<1x1x16xf32>,
      %122 = vector.extract_strided_slice %19 {offsets = [0, 144], sizes = [1, 16], strides = [1, 1]} : vector<1x256xf32> to vector<1x16xf32>
      %c1_89 = arith.constant 1 : index
      %c12_90 = arith.constant 12 : index
      %c3_91 = arith.constant 3 : index
      %123 = vector.load %arg7[%c1_89, %c12_90, %c3_91] : memref<2x22x22xf32, #tpu.memory_space<vmem>>, vector<1x1x16xf32>
      %124 = vector.shape_cast %123 : vector<1x1x16xf32> to vector<1x16xf32>
      %125 = vector.shape_cast %122 : vector<1x16xf32> to vector<1x1x16xf32>
      tpu.vector_store %arg7[%c1_89, %c12_90, %c3_91], %125 {strides = array<i32>} : memref<2x22x22xf32, #tpu.memory_space<vmem>>, vector<1x1x16xf32>,
      %126 = vector.extract_strided_slice %18 {offsets = [0, 160], sizes = [1, 16], strides = [1, 1]} : vector<1x256xf32> to vector<1x16xf32>
      %c0_92 = arith.constant 0 : index
      %c13 = arith.constant 13 : index
      %c3_93 = arith.constant 3 : index
      %127 = vector.load %arg7[%c0_92, %c13, %c3_93] : memref<2x22x22xf32, #tpu.memory_space<vmem>>, vector<1x1x16xf32>
      %128 = vector.shape_cast %127 : vector<1x1x16xf32> to vector<1x16xf32>
      %129 = vector.shape_cast %126 : vector<1x16xf32> to vector<1x1x16xf32>
      tpu.vector_store %arg7[%c0_92, %c13, %c3_93], %129 {strides = array<i32>} : memref<2x22x22xf32, #tpu.memory_space<vmem>>, vector<1x1x16xf32>,
      %130 = vector.extract_strided_slice %19 {offsets = [0, 160], sizes = [1, 16], strides = [1, 1]} : vector<1x256xf32> to vector<1x16xf32>
      %c1_94 = arith.constant 1 : index
      %c13_95 = arith.constant 13 : index
      %c3_96 = arith.constant 3 : index
      %131 = vector.load %arg7[%c1_94, %c13_95, %c3_96] : memref<2x22x22xf32, #tpu.memory_space<vmem>>, vector<1x1x16xf32>
      %132 = vector.shape_cast %131 : vector<1x1x16xf32> to vector<1x16xf32>
      %133 = vector.shape_cast %130 : vector<1x16xf32> to vector<1x1x16xf32>
      tpu.vector_store %arg7[%c1_94, %c13_95, %c3_96], %133 {strides = array<i32>} : memref<2x22x22xf32, #tpu.memory_space<vmem>>, vector<1x1x16xf32>,
      %134 = vector.extract_strided_slice %18 {offsets = [0, 176], sizes = [1, 16], strides = [1, 1]} : vector<1x256xf32> to vector<1x16xf32>
      %c0_97 = arith.constant 0 : index
      %c14 = arith.constant 14 : index
      %c3_98 = arith.constant 3 : index
      %135 = vector.load %arg7[%c0_97, %c14, %c3_98] : memref<2x22x22xf32, #tpu.memory_space<vmem>>, vector<1x1x16xf32>
      %136 = vector.shape_cast %135 : vector<1x1x16xf32> to vector<1x16xf32>
      %137 = vector.shape_cast %134 : vector<1x16xf32> to vector<1x1x16xf32>
      tpu.vector_store %arg7[%c0_97, %c14, %c3_98], %137 {strides = array<i32>} : memref<2x22x22xf32, #tpu.memory_space<vmem>>, vector<1x1x16xf32>,
      %138 = vector.extract_strided_slice %19 {offsets = [0, 176], sizes = [1, 16], strides = [1, 1]} : vector<1x256xf32> to vector<1x16xf32>
      %c1_99 = arith.constant 1 : index
      %c14_100 = arith.constant 14 : index
      %c3_101 = arith.constant 3 : index
      %139 = vector.load %arg7[%c1_99, %c14_100, %c3_101] : memref<2x22x22xf32, #tpu.memory_space<vmem>>, vector<1x1x16xf32>
      %140 = vector.shape_cast %139 : vector<1x1x16xf32> to vector<1x16xf32>
      %141 = vector.shape_cast %138 : vector<1x16xf32> to vector<1x1x16xf32>
      tpu.vector_store %arg7[%c1_99, %c14_100, %c3_101], %141 {strides = array<i32>} : memref<2x22x22xf32, #tpu.memory_space<vmem>>, vector<1x1x16xf32>,
      %142 = vector.extract_strided_slice %18 {offsets = [0, 192], sizes = [1, 16], strides = [1, 1]} : vector<1x256xf32> to vector<1x16xf32>
      %c0_102 = arith.constant 0 : index
      %c15 = arith.constant 15 : index
      %c3_103 = arith.constant 3 : index
      %143 = vector.load %arg7[%c0_102, %c15, %c3_103] : memref<2x22x22xf32, #tpu.memory_space<vmem>>, vector<1x1x16xf32>
      %144 = vector.shape_cast %143 : vector<1x1x16xf32> to vector<1x16xf32>
      %145 = vector.shape_cast %142 : vector<1x16xf32> to vector<1x1x16xf32>
      tpu.vector_store %arg7[%c0_102, %c15, %c3_103], %145 {strides = array<i32>} : memref<2x22x22xf32, #tpu.memory_space<vmem>>, vector<1x1x16xf32>,
      %146 = vector.extract_strided_slice %19 {offsets = [0, 192], sizes = [1, 16], strides = [1, 1]} : vector<1x256xf32> to vector<1x16xf32>
      %c1_104 = arith.constant 1 : index
      %c15_105 = arith.constant 15 : index
      %c3_106 = arith.constant 3 : index
      %147 = vector.load %arg7[%c1_104, %c15_105, %c3_106] : memref<2x22x22xf32, #tpu.memory_space<vmem>>, vector<1x1x16xf32>
      %148 = vector.shape_cast %147 : vector<1x1x16xf32> to vector<1x16xf32>
      %149 = vector.shape_cast %146 : vector<1x16xf32> to vector<1x1x16xf32>
      tpu.vector_store %arg7[%c1_104, %c15_105, %c3_106], %149 {strides = array<i32>} : memref<2x22x22xf32, #tpu.memory_space<vmem>>, vector<1x1x16xf32>,
      %150 = vector.extract_strided_slice %18 {offsets = [0, 208], sizes = [1, 16], strides = [1, 1]} : vector<1x256xf32> to vector<1x16xf32>
      %c0_107 = arith.constant 0 : index
      %c16 = arith.constant 16 : index
      %c3_108 = arith.constant 3 : index
      %151 = vector.load %arg7[%c0_107, %c16, %c3_108] : memref<2x22x22xf32, #tpu.memory_space<vmem>>, vector<1x1x16xf32>
      %152 = vector.shape_cast %151 : vector<1x1x16xf32> to vector<1x16xf32>
      %153 = vector.shape_cast %150 : vector<1x16xf32> to vector<1x1x16xf32>
      tpu.vector_store %arg7[%c0_107, %c16, %c3_108], %153 {strides = array<i32>} : memref<2x22x22xf32, #tpu.memory_space<vmem>>, vector<1x1x16xf32>,
      %154 = vector.extract_strided_slice %19 {offsets = [0, 208], sizes = [1, 16], strides = [1, 1]} : vector<1x256xf32> to vector<1x16xf32>
      %c1_109 = arith.constant 1 : index
      %c16_110 = arith.constant 16 : index
      %c3_111 = arith.constant 3 : index
      %155 = vector.load %arg7[%c1_109, %c16_110, %c3_111] : memref<2x22x22xf32, #tpu.memory_space<vmem>>, vector<1x1x16xf32>
      %156 = vector.shape_cast %155 : vector<1x1x16xf32> to vector<1x16xf32>
      %157 = vector.shape_cast %154 : vector<1x16xf32> to vector<1x1x16xf32>
      tpu.vector_store %arg7[%c1_109, %c16_110, %c3_111], %157 {strides = array<i32>} : memref<2x22x22xf32, #tpu.memory_space<vmem>>, vector<1x1x16xf32>,
      %158 = vector.extract_strided_slice %18 {offsets = [0, 224], sizes = [1, 16], strides = [1, 1]} : vector<1x256xf32> to vector<1x16xf32>
      %c0_112 = arith.constant 0 : index
      %c17 = arith.constant 17 : index
      %c3_113 = arith.constant 3 : index
      %159 = vector.load %arg7[%c0_112, %c17, %c3_113] : memref<2x22x22xf32, #tpu.memory_space<vmem>>, vector<1x1x16xf32>
      %160 = vector.shape_cast %159 : vector<1x1x16xf32> to vector<1x16xf32>
      %161 = vector.shape_cast %158 : vector<1x16xf32> to vector<1x1x16xf32>
      tpu.vector_store %arg7[%c0_112, %c17, %c3_113], %161 {strides = array<i32>} : memref<2x22x22xf32, #tpu.memory_space<vmem>>, vector<1x1x16xf32>,
      %162 = vector.extract_strided_slice %19 {offsets = [0, 224], sizes = [1, 16], strides = [1, 1]} : vector<1x256xf32> to vector<1x16xf32>
      %c1_114 = arith.constant 1 : index
      %c17_115 = arith.constant 17 : index
      %c3_116 = arith.constant 3 : index
      %163 = vector.load %arg7[%c1_114, %c17_115, %c3_116] : memref<2x22x22xf32, #tpu.memory_space<vmem>>, vector<1x1x16xf32>
      %164 = vector.shape_cast %163 : vector<1x1x16xf32> to vector<1x16xf32>
      %165 = vector.shape_cast %162 : vector<1x16xf32> to vector<1x1x16xf32>
      tpu.vector_store %arg7[%c1_114, %c17_115, %c3_116], %165 {strides = array<i32>} : memref<2x22x22xf32, #tpu.memory_space<vmem>>, vector<1x1x16xf32>,
      %166 = vector.extract_strided_slice %18 {offsets = [0, 240], sizes = [1, 16], strides = [1, 1]} : vector<1x256xf32> to vector<1x16xf32>
      %c0_117 = arith.constant 0 : index
      %c18 = arith.constant 18 : index
      %c3_118 = arith.constant 3 : index
      %167 = vector.load %arg7[%c0_117, %c18, %c3_118] : memref<2x22x22xf32, #tpu.memory_space<vmem>>, vector<1x1x16xf32>
      %168 = vector.shape_cast %167 : vector<1x1x16xf32> to vector<1x16xf32>
      %169 = vector.shape_cast %166 : vector<1x16xf32> to vector<1x1x16xf32>
      tpu.vector_store %arg7[%c0_117, %c18, %c3_118], %169 {strides = array<i32>} : memref<2x22x22xf32, #tpu.memory_space<vmem>>, vector<1x1x16xf32>,
      %170 = vector.extract_strided_slice %19 {offsets = [0, 240], sizes = [1, 16], strides = [1, 1]} : vector<1x256xf32> to vector<1x16xf32>
      %c1_119 = arith.constant 1 : index
      %c18_120 = arith.constant 18 : index
      %c3_121 = arith.constant 3 : index
      %171 = vector.load %arg7[%c1_119, %c18_120, %c3_121] : memref<2x22x22xf32, #tpu.memory_space<vmem>>, vector<1x1x16xf32>
      %172 = vector.shape_cast %171 : vector<1x1x16xf32> to vector<1x16xf32>
      %173 = vector.shape_cast %170 : vector<1x16xf32> to vector<1x1x16xf32>
      tpu.vector_store %arg7[%c1_119, %c18_120, %c3_121], %173 {strides = array<i32>} : memref<2x22x22xf32, #tpu.memory_space<vmem>>, vector<1x1x16xf32>,
      %cst_122 = arith.constant 0.000000e+00 : f32
      %174 = vector.broadcast %cst_122 : f32 to vector<16x16xf32>
      %c0_123 = arith.constant 0 : index
      %c0_124 = arith.constant 0 : index
      %c0_125 = arith.constant 0 : index
      %175 = vector.load %arg7[%c0_123, %c0_124, %c0_125] : memref<2x22x22xf32, #tpu.memory_space<vmem>>, vector<1x22x16xf32>
      %176 = vector.shape_cast %175 : vector<1x22x16xf32> to vector<22x16xf32>
      %c0_126 = arith.constant 0 : index
      %177 = memref.load %arg2[%c0_126] : memref<98xf32, #tpu.memory_space<smem>>
      %cst_127 = arith.constant 2.500000e-01 : f32
      %178 = arith.mulf %177, %cst_127 : f32
      %179 = vector.extract_strided_slice %176 {offsets = [0, 0], sizes = [16, 16], strides = [1, 1]} : vector<22x16xf32> to vector<16x16xf32>
      %180 = vector.broadcast %178 : f32 to vector<16x16xf32>
      %181 = arith.mulf %180, %179 : vector<16x16xf32>
      %182 = arith.addf %174, %181 : vector<16x16xf32>
      %c7_128 = arith.constant 7 : index
      %183 = memref.load %arg2[%c7_128] : memref<98xf32, #tpu.memory_space<smem>>
      %cst_129 = arith.constant 2.500000e-01 : f32
      %184 = arith.mulf %183, %cst_129 : f32
      %185 = vector.extract_strided_slice %176 {offsets = [1, 0], sizes = [16, 16], strides = [1, 1]} : vector<22x16xf32> to vector<16x16xf32>
      %186 = vector.broadcast %184 : f32 to vector<16x16xf32>
      %187 = arith.mulf %186, %185 : vector<16x16xf32>
      %188 = arith.addf %182, %187 : vector<16x16xf32>
      %c14_130 = arith.constant 14 : index
      %189 = memref.load %arg2[%c14_130] : memref<98xf32, #tpu.memory_space<smem>>
      %cst_131 = arith.constant 2.500000e-01 : f32
      %190 = arith.mulf %189, %cst_131 : f32
      %191 = vector.extract_strided_slice %176 {offsets = [2, 0], sizes = [16, 16], strides = [1, 1]} : vector<22x16xf32> to vector<16x16xf32>
      %192 = vector.broadcast %190 : f32 to vector<16x16xf32>
      %193 = arith.mulf %192, %191 : vector<16x16xf32>
      %194 = arith.addf %188, %193 : vector<16x16xf32>
      %c21 = arith.constant 21 : index
      %195 = memref.load %arg2[%c21] : memref<98xf32, #tpu.memory_space<smem>>
      %cst_132 = arith.constant 2.500000e-01 : f32
      %196 = arith.mulf %195, %cst_132 : f32
      %197 = vector.extract_strided_slice %176 {offsets = [3, 0], sizes = [16, 16], strides = [1, 1]} : vector<22x16xf32> to vector<16x16xf32>
      %198 = vector.broadcast %196 : f32 to vector<16x16xf32>
      %199 = arith.mulf %198, %197 : vector<16x16xf32>
      %200 = arith.addf %194, %199 : vector<16x16xf32>
      %c28 = arith.constant 28 : index
      %201 = memref.load %arg2[%c28] : memref<98xf32, #tpu.memory_space<smem>>
      %cst_133 = arith.constant 2.500000e-01 : f32
      %202 = arith.mulf %201, %cst_133 : f32
      %203 = vector.extract_strided_slice %176 {offsets = [4, 0], sizes = [16, 16], strides = [1, 1]} : vector<22x16xf32> to vector<16x16xf32>
      %204 = vector.broadcast %202 : f32 to vector<16x16xf32>
      %205 = arith.mulf %204, %203 : vector<16x16xf32>
      %206 = arith.addf %200, %205 : vector<16x16xf32>
      %c35 = arith.constant 35 : index
      %207 = memref.load %arg2[%c35] : memref<98xf32, #tpu.memory_space<smem>>
      %cst_134 = arith.constant 2.500000e-01 : f32
      %208 = arith.mulf %207, %cst_134 : f32
      %209 = vector.extract_strided_slice %176 {offsets = [5, 0], sizes = [16, 16], strides = [1, 1]} : vector<22x16xf32> to vector<16x16xf32>
      %210 = vector.broadcast %208 : f32 to vector<16x16xf32>
      %211 = arith.mulf %210, %209 : vector<16x16xf32>
      %212 = arith.addf %206, %211 : vector<16x16xf32>
      %c42 = arith.constant 42 : index
      %213 = memref.load %arg2[%c42] : memref<98xf32, #tpu.memory_space<smem>>
      %cst_135 = arith.constant 2.500000e-01 : f32
      %214 = arith.mulf %213, %cst_135 : f32
      %215 = vector.extract_strided_slice %176 {offsets = [6, 0], sizes = [16, 16], strides = [1, 1]} : vector<22x16xf32> to vector<16x16xf32>
      %216 = vector.broadcast %214 : f32 to vector<16x16xf32>
      %217 = arith.mulf %216, %215 : vector<16x16xf32>
      %218 = arith.addf %212, %217 : vector<16x16xf32>
      %c0_136 = arith.constant 0 : index
      %c0_137 = arith.constant 0 : index
      %c1_138 = arith.constant 1 : index
      %219 = vector.load %arg7[%c0_136, %c0_137, %c1_138] : memref<2x22x22xf32, #tpu.memory_space<vmem>>, vector<1x22x16xf32>
      %220 = vector.shape_cast %219 : vector<1x22x16xf32> to vector<22x16xf32>
      %c1_139 = arith.constant 1 : index
      %221 = memref.load %arg2[%c1_139] : memref<98xf32, #tpu.memory_space<smem>>
      %cst_140 = arith.constant 2.500000e-01 : f32
      %222 = arith.mulf %221, %cst_140 : f32
      %223 = vector.extract_strided_slice %220 {offsets = [0, 0], sizes = [16, 16], strides = [1, 1]} : vector<22x16xf32> to vector<16x16xf32>
      %224 = vector.broadcast %222 : f32 to vector<16x16xf32>
      %225 = arith.mulf %224, %223 : vector<16x16xf32>
      %226 = arith.addf %218, %225 : vector<16x16xf32>
      %c8_141 = arith.constant 8 : index
      %227 = memref.load %arg2[%c8_141] : memref<98xf32, #tpu.memory_space<smem>>
      %cst_142 = arith.constant 2.500000e-01 : f32
      %228 = arith.mulf %227, %cst_142 : f32
      %229 = vector.extract_strided_slice %220 {offsets = [1, 0], sizes = [16, 16], strides = [1, 1]} : vector<22x16xf32> to vector<16x16xf32>
      %230 = vector.broadcast %228 : f32 to vector<16x16xf32>
      %231 = arith.mulf %230, %229 : vector<16x16xf32>
      %232 = arith.addf %226, %231 : vector<16x16xf32>
      %c15_143 = arith.constant 15 : index
      %233 = memref.load %arg2[%c15_143] : memref<98xf32, #tpu.memory_space<smem>>
      %cst_144 = arith.constant 2.500000e-01 : f32
      %234 = arith.mulf %233, %cst_144 : f32
      %235 = vector.extract_strided_slice %220 {offsets = [2, 0], sizes = [16, 16], strides = [1, 1]} : vector<22x16xf32> to vector<16x16xf32>
      %236 = vector.broadcast %234 : f32 to vector<16x16xf32>
      %237 = arith.mulf %236, %235 : vector<16x16xf32>
      %238 = arith.addf %232, %237 : vector<16x16xf32>
      %c22 = arith.constant 22 : index
      %239 = memref.load %arg2[%c22] : memref<98xf32, #tpu.memory_space<smem>>
      %cst_145 = arith.constant 2.500000e-01 : f32
      %240 = arith.mulf %239, %cst_145 : f32
      %241 = vector.extract_strided_slice %220 {offsets = [3, 0], sizes = [16, 16], strides = [1, 1]} : vector<22x16xf32> to vector<16x16xf32>
      %242 = vector.broadcast %240 : f32 to vector<16x16xf32>
      %243 = arith.mulf %242, %241 : vector<16x16xf32>
      %244 = arith.addf %238, %243 : vector<16x16xf32>
      %c29 = arith.constant 29 : index
      %245 = memref.load %arg2[%c29] : memref<98xf32, #tpu.memory_space<smem>>
      %cst_146 = arith.constant 2.500000e-01 : f32
      %246 = arith.mulf %245, %cst_146 : f32
      %247 = vector.extract_strided_slice %220 {offsets = [4, 0], sizes = [16, 16], strides = [1, 1]} : vector<22x16xf32> to vector<16x16xf32>
      %248 = vector.broadcast %246 : f32 to vector<16x16xf32>
      %249 = arith.mulf %248, %247 : vector<16x16xf32>
      %250 = arith.addf %244, %249 : vector<16x16xf32>
      %c36 = arith.constant 36 : index
      %251 = memref.load %arg2[%c36] : memref<98xf32, #tpu.memory_space<smem>>
      %cst_147 = arith.constant 2.500000e-01 : f32
      %252 = arith.mulf %251, %cst_147 : f32
      %253 = vector.extract_strided_slice %220 {offsets = [5, 0], sizes = [16, 16], strides = [1, 1]} : vector<22x16xf32> to vector<16x16xf32>
      %254 = vector.broadcast %252 : f32 to vector<16x16xf32>
      %255 = arith.mulf %254, %253 : vector<16x16xf32>
      %256 = arith.addf %250, %255 : vector<16x16xf32>
      %c43 = arith.constant 43 : index
      %257 = memref.load %arg2[%c43] : memref<98xf32, #tpu.memory_space<smem>>
      %cst_148 = arith.constant 2.500000e-01 : f32
      %258 = arith.mulf %257, %cst_148 : f32
      %259 = vector.extract_strided_slice %220 {offsets = [6, 0], sizes = [16, 16], strides = [1, 1]} : vector<22x16xf32> to vector<16x16xf32>
      %260 = vector.broadcast %258 : f32 to vector<16x16xf32>
      %261 = arith.mulf %260, %259 : vector<16x16xf32>
      %262 = arith.addf %256, %261 : vector<16x16xf32>
      %c0_149 = arith.constant 0 : index
      %c0_150 = arith.constant 0 : index
      %c2 = arith.constant 2 : index
      %263 = vector.load %arg7[%c0_149, %c0_150, %c2] : memref<2x22x22xf32, #tpu.memory_space<vmem>>, vector<1x22x16xf32>
      %264 = vector.shape_cast %263 : vector<1x22x16xf32> to vector<22x16xf32>
      %c2_151 = arith.constant 2 : index
      %265 = memref.load %arg2[%c2_151] : memref<98xf32, #tpu.memory_space<smem>>
      %cst_152 = arith.constant 2.500000e-01 : f32
      %266 = arith.mulf %265, %cst_152 : f32
      %267 = vector.extract_strided_slice %264 {offsets = [0, 0], sizes = [16, 16], strides = [1, 1]} : vector<22x16xf32> to vector<16x16xf32>
      %268 = vector.broadcast %266 : f32 to vector<16x16xf32>
      %269 = arith.mulf %268, %267 : vector<16x16xf32>
      %270 = arith.addf %262, %269 : vector<16x16xf32>
      %c9_153 = arith.constant 9 : index
      %271 = memref.load %arg2[%c9_153] : memref<98xf32, #tpu.memory_space<smem>>
      %cst_154 = arith.constant 2.500000e-01 : f32
      %272 = arith.mulf %271, %cst_154 : f32
      %273 = vector.extract_strided_slice %264 {offsets = [1, 0], sizes = [16, 16], strides = [1, 1]} : vector<22x16xf32> to vector<16x16xf32>
      %274 = vector.broadcast %272 : f32 to vector<16x16xf32>
      %275 = arith.mulf %274, %273 : vector<16x16xf32>
      %276 = arith.addf %270, %275 : vector<16x16xf32>
      %c16_155 = arith.constant 16 : index
      %277 = memref.load %arg2[%c16_155] : memref<98xf32, #tpu.memory_space<smem>>
      %cst_156 = arith.constant 2.500000e-01 : f32
      %278 = arith.mulf %277, %cst_156 : f32
      %279 = vector.extract_strided_slice %264 {offsets = [2, 0], sizes = [16, 16], strides = [1, 1]} : vector<22x16xf32> to vector<16x16xf32>
      %280 = vector.broadcast %278 : f32 to vector<16x16xf32>
      %281 = arith.mulf %280, %279 : vector<16x16xf32>
      %282 = arith.addf %276, %281 : vector<16x16xf32>
      %c23 = arith.constant 23 : index
      %283 = memref.load %arg2[%c23] : memref<98xf32, #tpu.memory_space<smem>>
      %cst_157 = arith.constant 2.500000e-01 : f32
      %284 = arith.mulf %283, %cst_157 : f32
      %285 = vector.extract_strided_slice %264 {offsets = [3, 0], sizes = [16, 16], strides = [1, 1]} : vector<22x16xf32> to vector<16x16xf32>
      %286 = vector.broadcast %284 : f32 to vector<16x16xf32>
      %287 = arith.mulf %286, %285 : vector<16x16xf32>
      %288 = arith.addf %282, %287 : vector<16x16xf32>
      %c30 = arith.constant 30 : index
      %289 = memref.load %arg2[%c30] : memref<98xf32, #tpu.memory_space<smem>>
      %cst_158 = arith.constant 2.500000e-01 : f32
      %290 = arith.mulf %289, %cst_158 : f32
      %291 = vector.extract_strided_slice %264 {offsets = [4, 0], sizes = [16, 16], strides = [1, 1]} : vector<22x16xf32> to vector<16x16xf32>
      %292 = vector.broadcast %290 : f32 to vector<16x16xf32>
      %293 = arith.mulf %292, %291 : vector<16x16xf32>
      %294 = arith.addf %288, %293 : vector<16x16xf32>
      %c37 = arith.constant 37 : index
      %295 = memref.load %arg2[%c37] : memref<98xf32, #tpu.memory_space<smem>>
      %cst_159 = arith.constant 2.500000e-01 : f32
      %296 = arith.mulf %295, %cst_159 : f32
      %297 = vector.extract_strided_slice %264 {offsets = [5, 0], sizes = [16, 16], strides = [1, 1]} : vector<22x16xf32> to vector<16x16xf32>
      %298 = vector.broadcast %296 : f32 to vector<16x16xf32>
      %299 = arith.mulf %298, %297 : vector<16x16xf32>
      %300 = arith.addf %294, %299 : vector<16x16xf32>
      %c44 = arith.constant 44 : index
      %301 = memref.load %arg2[%c44] : memref<98xf32, #tpu.memory_space<smem>>
      %cst_160 = arith.constant 2.500000e-01 : f32
      %302 = arith.mulf %301, %cst_160 : f32
      %303 = vector.extract_strided_slice %264 {offsets = [6, 0], sizes = [16, 16], strides = [1, 1]} : vector<22x16xf32> to vector<16x16xf32>
      %304 = vector.broadcast %302 : f32 to vector<16x16xf32>
      %305 = arith.mulf %304, %303 : vector<16x16xf32>
      %306 = arith.addf %300, %305 : vector<16x16xf32>
      %c0_161 = arith.constant 0 : index
      %c0_162 = arith.constant 0 : index
      %c3_163 = arith.constant 3 : index
      %307 = vector.load %arg7[%c0_161, %c0_162, %c3_163] : memref<2x22x22xf32, #tpu.memory_space<vmem>>, vector<1x22x16xf32>
      %308 = vector.shape_cast %307 : vector<1x22x16xf32> to vector<22x16xf32>
      %c3_164 = arith.constant 3 : index
      %309 = memref.load %arg2[%c3_164] : memref<98xf32, #tpu.memory_space<smem>>
      %cst_165 = arith.constant 2.500000e-01 : f32
      %310 = arith.mulf %309, %cst_165 : f32
      %311 = vector.extract_strided_slice %308 {offsets = [0, 0], sizes = [16, 16], strides = [1, 1]} : vector<22x16xf32> to vector<16x16xf32>
      %312 = vector.broadcast %310 : f32 to vector<16x16xf32>
      %313 = arith.mulf %312, %311 : vector<16x16xf32>
      %314 = arith.addf %306, %313 : vector<16x16xf32>
      %c10_166 = arith.constant 10 : index
      %315 = memref.load %arg2[%c10_166] : memref<98xf32, #tpu.memory_space<smem>>
      %cst_167 = arith.constant 2.500000e-01 : f32
      %316 = arith.mulf %315, %cst_167 : f32
      %317 = vector.extract_strided_slice %308 {offsets = [1, 0], sizes = [16, 16], strides = [1, 1]} : vector<22x16xf32> to vector<16x16xf32>
      %318 = vector.broadcast %316 : f32 to vector<16x16xf32>
      %319 = arith.mulf %318, %317 : vector<16x16xf32>
      %320 = arith.addf %314, %319 : vector<16x16xf32>
      %c17_168 = arith.constant 17 : index
      %321 = memref.load %arg2[%c17_168] : memref<98xf32, #tpu.memory_space<smem>>
      %cst_169 = arith.constant 2.500000e-01 : f32
      %322 = arith.mulf %321, %cst_169 : f32
      %323 = vector.extract_strided_slice %308 {offsets = [2, 0], sizes = [16, 16], strides = [1, 1]} : vector<22x16xf32> to vector<16x16xf32>
      %324 = vector.broadcast %322 : f32 to vector<16x16xf32>
      %325 = arith.mulf %324, %323 : vector<16x16xf32>
      %326 = arith.addf %320, %325 : vector<16x16xf32>
      %c24 = arith.constant 24 : index
      %327 = memref.load %arg2[%c24] : memref<98xf32, #tpu.memory_space<smem>>
      %cst_170 = arith.constant 2.500000e-01 : f32
      %328 = arith.mulf %327, %cst_170 : f32
      %329 = vector.extract_strided_slice %308 {offsets = [3, 0], sizes = [16, 16], strides = [1, 1]} : vector<22x16xf32> to vector<16x16xf32>
      %330 = vector.broadcast %328 : f32 to vector<16x16xf32>
      %331 = arith.mulf %330, %329 : vector<16x16xf32>
      %332 = arith.addf %326, %331 : vector<16x16xf32>
      %c31 = arith.constant 31 : index
      %333 = memref.load %arg2[%c31] : memref<98xf32, #tpu.memory_space<smem>>
      %cst_171 = arith.constant 2.500000e-01 : f32
      %334 = arith.mulf %333, %cst_171 : f32
      %335 = vector.extract_strided_slice %308 {offsets = [4, 0], sizes = [16, 16], strides = [1, 1]} : vector<22x16xf32> to vector<16x16xf32>
      %336 = vector.broadcast %334 : f32 to vector<16x16xf32>
      %337 = arith.mulf %336, %335 : vector<16x16xf32>
      %338 = arith.addf %332, %337 : vector<16x16xf32>
      %c38 = arith.constant 38 : index
      %339 = memref.load %arg2[%c38] : memref<98xf32, #tpu.memory_space<smem>>
      %cst_172 = arith.constant 2.500000e-01 : f32
      %340 = arith.mulf %339, %cst_172 : f32
      %341 = vector.extract_strided_slice %308 {offsets = [5, 0], sizes = [16, 16], strides = [1, 1]} : vector<22x16xf32> to vector<16x16xf32>
      %342 = vector.broadcast %340 : f32 to vector<16x16xf32>
      %343 = arith.mulf %342, %341 : vector<16x16xf32>
      %344 = arith.addf %338, %343 : vector<16x16xf32>
      %c45 = arith.constant 45 : index
      %345 = memref.load %arg2[%c45] : memref<98xf32, #tpu.memory_space<smem>>
      %cst_173 = arith.constant 2.500000e-01 : f32
      %346 = arith.mulf %345, %cst_173 : f32
      %347 = vector.extract_strided_slice %308 {offsets = [6, 0], sizes = [16, 16], strides = [1, 1]} : vector<22x16xf32> to vector<16x16xf32>
      %348 = vector.broadcast %346 : f32 to vector<16x16xf32>
      %349 = arith.mulf %348, %347 : vector<16x16xf32>
      %350 = arith.addf %344, %349 : vector<16x16xf32>
      %c0_174 = arith.constant 0 : index
      %c0_175 = arith.constant 0 : index
      %c4_176 = arith.constant 4 : index
      %351 = vector.load %arg7[%c0_174, %c0_175, %c4_176] : memref<2x22x22xf32, #tpu.memory_space<vmem>>, vector<1x22x16xf32>
      %352 = vector.shape_cast %351 : vector<1x22x16xf32> to vector<22x16xf32>
      %c4_177 = arith.constant 4 : index
      %353 = memref.load %arg2[%c4_177] : memref<98xf32, #tpu.memory_space<smem>>
      %cst_178 = arith.constant 2.500000e-01 : f32
      %354 = arith.mulf %353, %cst_178 : f32
      %355 = vector.extract_strided_slice %352 {offsets = [0, 0], sizes = [16, 16], strides = [1, 1]} : vector<22x16xf32> to vector<16x16xf32>
      %356 = vector.broadcast %354 : f32 to vector<16x16xf32>
      %357 = arith.mulf %356, %355 : vector<16x16xf32>
      %358 = arith.addf %350, %357 : vector<16x16xf32>
      %c11_179 = arith.constant 11 : index
      %359 = memref.load %arg2[%c11_179] : memref<98xf32, #tpu.memory_space<smem>>
      %cst_180 = arith.constant 2.500000e-01 : f32
      %360 = arith.mulf %359, %cst_180 : f32
      %361 = vector.extract_strided_slice %352 {offsets = [1, 0], sizes = [16, 16], strides = [1, 1]} : vector<22x16xf32> to vector<16x16xf32>
      %362 = vector.broadcast %360 : f32 to vector<16x16xf32>
      %363 = arith.mulf %362, %361 : vector<16x16xf32>
      %364 = arith.addf %358, %363 : vector<16x16xf32>
      %c18_181 = arith.constant 18 : index
      %365 = memref.load %arg2[%c18_181] : memref<98xf32, #tpu.memory_space<smem>>
      %cst_182 = arith.constant 2.500000e-01 : f32
      %366 = arith.mulf %365, %cst_182 : f32
      %367 = vector.extract_strided_slice %352 {offsets = [2, 0], sizes = [16, 16], strides = [1, 1]} : vector<22x16xf32> to vector<16x16xf32>
      %368 = vector.broadcast %366 : f32 to vector<16x16xf32>
      %369 = arith.mulf %368, %367 : vector<16x16xf32>
      %370 = arith.addf %364, %369 : vector<16x16xf32>
      %c25 = arith.constant 25 : index
      %371 = memref.load %arg2[%c25] : memref<98xf32, #tpu.memory_space<smem>>
      %cst_183 = arith.constant 2.500000e-01 : f32
      %372 = arith.mulf %371, %cst_183 : f32
      %373 = vector.extract_strided_slice %352 {offsets = [3, 0], sizes = [16, 16], strides = [1, 1]} : vector<22x16xf32> to vector<16x16xf32>
      %374 = vector.broadcast %372 : f32 to vector<16x16xf32>
      %375 = arith.mulf %374, %373 : vector<16x16xf32>
      %376 = arith.addf %370, %375 : vector<16x16xf32>
      %c32 = arith.constant 32 : index
      %377 = memref.load %arg2[%c32] : memref<98xf32, #tpu.memory_space<smem>>
      %cst_184 = arith.constant 2.500000e-01 : f32
      %378 = arith.mulf %377, %cst_184 : f32
      %379 = vector.extract_strided_slice %352 {offsets = [4, 0], sizes = [16, 16], strides = [1, 1]} : vector<22x16xf32> to vector<16x16xf32>
      %380 = vector.broadcast %378 : f32 to vector<16x16xf32>
      %381 = arith.mulf %380, %379 : vector<16x16xf32>
      %382 = arith.addf %376, %381 : vector<16x16xf32>
      %c39 = arith.constant 39 : index
      %383 = memref.load %arg2[%c39] : memref<98xf32, #tpu.memory_space<smem>>
      %cst_185 = arith.constant 2.500000e-01 : f32
      %384 = arith.mulf %383, %cst_185 : f32
      %385 = vector.extract_strided_slice %352 {offsets = [5, 0], sizes = [16, 16], strides = [1, 1]} : vector<22x16xf32> to vector<16x16xf32>
      %386 = vector.broadcast %384 : f32 to vector<16x16xf32>
      %387 = arith.mulf %386, %385 : vector<16x16xf32>
      %388 = arith.addf %382, %387 : vector<16x16xf32>
      %c46 = arith.constant 46 : index
      %389 = memref.load %arg2[%c46] : memref<98xf32, #tpu.memory_space<smem>>
      %cst_186 = arith.constant 2.500000e-01 : f32
      %390 = arith.mulf %389, %cst_186 : f32
      %391 = vector.extract_strided_slice %352 {offsets = [6, 0], sizes = [16, 16], strides = [1, 1]} : vector<22x16xf32> to vector<16x16xf32>
      %392 = vector.broadcast %390 : f32 to vector<16x16xf32>
      %393 = arith.mulf %392, %391 : vector<16x16xf32>
      %394 = arith.addf %388, %393 : vector<16x16xf32>
      %c0_187 = arith.constant 0 : index
      %c0_188 = arith.constant 0 : index
      %c5_189 = arith.constant 5 : index
      %395 = vector.load %arg7[%c0_187, %c0_188, %c5_189] : memref<2x22x22xf32, #tpu.memory_space<vmem>>, vector<1x22x16xf32>
      %396 = vector.shape_cast %395 : vector<1x22x16xf32> to vector<22x16xf32>
      %c5_190 = arith.constant 5 : index
      %397 = memref.load %arg2[%c5_190] : memref<98xf32, #tpu.memory_space<smem>>
      %cst_191 = arith.constant 2.500000e-01 : f32
      %398 = arith.mulf %397, %cst_191 : f32
      %399 = vector.extract_strided_slice %396 {offsets = [0, 0], sizes = [16, 16], strides = [1, 1]} : vector<22x16xf32> to vector<16x16xf32>
      %400 = vector.broadcast %398 : f32 to vector<16x16xf32>
      %401 = arith.mulf %400, %399 : vector<16x16xf32>
      %402 = arith.addf %394, %401 : vector<16x16xf32>
      %c12_192 = arith.constant 12 : index
      %403 = memref.load %arg2[%c12_192] : memref<98xf32, #tpu.memory_space<smem>>
      %cst_193 = arith.constant 2.500000e-01 : f32
      %404 = arith.mulf %403, %cst_193 : f32
      %405 = vector.extract_strided_slice %396 {offsets = [1, 0], sizes = [16, 16], strides = [1, 1]} : vector<22x16xf32> to vector<16x16xf32>
      %406 = vector.broadcast %404 : f32 to vector<16x16xf32>
      %407 = arith.mulf %406, %405 : vector<16x16xf32>
      %408 = arith.addf %402, %407 : vector<16x16xf32>
      %c19_194 = arith.constant 19 : index
      %409 = memref.load %arg2[%c19_194] : memref<98xf32, #tpu.memory_space<smem>>
      %cst_195 = arith.constant 2.500000e-01 : f32
      %410 = arith.mulf %409, %cst_195 : f32
      %411 = vector.extract_strided_slice %396 {offsets = [2, 0], sizes = [16, 16], strides = [1, 1]} : vector<22x16xf32> to vector<16x16xf32>
      %412 = vector.broadcast %410 : f32 to vector<16x16xf32>
      %413 = arith.mulf %412, %411 : vector<16x16xf32>
      %414 = arith.addf %408, %413 : vector<16x16xf32>
      %c26 = arith.constant 26 : index
      %415 = memref.load %arg2[%c26] : memref<98xf32, #tpu.memory_space<smem>>
      %cst_196 = arith.constant 2.500000e-01 : f32
      %416 = arith.mulf %415, %cst_196 : f32
      %417 = vector.extract_strided_slice %396 {offsets = [3, 0], sizes = [16, 16], strides = [1, 1]} : vector<22x16xf32> to vector<16x16xf32>
      %418 = vector.broadcast %416 : f32 to vector<16x16xf32>
      %419 = arith.mulf %418, %417 : vector<16x16xf32>
      %420 = arith.addf %414, %419 : vector<16x16xf32>
      %c33 = arith.constant 33 : index
      %421 = memref.load %arg2[%c33] : memref<98xf32, #tpu.memory_space<smem>>
      %cst_197 = arith.constant 2.500000e-01 : f32
      %422 = arith.mulf %421, %cst_197 : f32
      %423 = vector.extract_strided_slice %396 {offsets = [4, 0], sizes = [16, 16], strides = [1, 1]} : vector<22x16xf32> to vector<16x16xf32>
      %424 = vector.broadcast %422 : f32 to vector<16x16xf32>
      %425 = arith.mulf %424, %423 : vector<16x16xf32>
      %426 = arith.addf %420, %425 : vector<16x16xf32>
      %c40 = arith.constant 40 : index
      %427 = memref.load %arg2[%c40] : memref<98xf32, #tpu.memory_space<smem>>
      %cst_198 = arith.constant 2.500000e-01 : f32
      %428 = arith.mulf %427, %cst_198 : f32
      %429 = vector.extract_strided_slice %396 {offsets = [5, 0], sizes = [16, 16], strides = [1, 1]} : vector<22x16xf32> to vector<16x16xf32>
      %430 = vector.broadcast %428 : f32 to vector<16x16xf32>
      %431 = arith.mulf %430, %429 : vector<16x16xf32>
      %432 = arith.addf %426, %431 : vector<16x16xf32>
      %c47 = arith.constant 47 : index
      %433 = memref.load %arg2[%c47] : memref<98xf32, #tpu.memory_space<smem>>
      %cst_199 = arith.constant 2.500000e-01 : f32
      %434 = arith.mulf %433, %cst_199 : f32
      %435 = vector.extract_strided_slice %396 {offsets = [6, 0], sizes = [16, 16], strides = [1, 1]} : vector<22x16xf32> to vector<16x16xf32>
      %436 = vector.broadcast %434 : f32 to vector<16x16xf32>
      %437 = arith.mulf %436, %435 : vector<16x16xf32>
      %438 = arith.addf %432, %437 : vector<16x16xf32>
      %c0_200 = arith.constant 0 : index
      %c0_201 = arith.constant 0 : index
      %c6_202 = arith.constant 6 : index
      %439 = vector.load %arg7[%c0_200, %c0_201, %c6_202] : memref<2x22x22xf32, #tpu.memory_space<vmem>>, vector<1x22x16xf32>
      %440 = vector.shape_cast %439 : vector<1x22x16xf32> to vector<22x16xf32>
      %c6_203 = arith.constant 6 : index
      %441 = memref.load %arg2[%c6_203] : memref<98xf32, #tpu.memory_space<smem>>
      %cst_204 = arith.constant 2.500000e-01 : f32
      %442 = arith.mulf %441, %cst_204 : f32
      %443 = vector.extract_strided_slice %440 {offsets = [0, 0], sizes = [16, 16], strides = [1, 1]} : vector<22x16xf32> to vector<16x16xf32>
      %444 = vector.broadcast %442 : f32 to vector<16x16xf32>
      %445 = arith.mulf %444, %443 : vector<16x16xf32>
      %446 = arith.addf %438, %445 : vector<16x16xf32>
      %c13_205 = arith.constant 13 : index
      %447 = memref.load %arg2[%c13_205] : memref<98xf32, #tpu.memory_space<smem>>
      %cst_206 = arith.constant 2.500000e-01 : f32
      %448 = arith.mulf %447, %cst_206 : f32
      %449 = vector.extract_strided_slice %440 {offsets = [1, 0], sizes = [16, 16], strides = [1, 1]} : vector<22x16xf32> to vector<16x16xf32>
      %450 = vector.broadcast %448 : f32 to vector<16x16xf32>
      %451 = arith.mulf %450, %449 : vector<16x16xf32>
      %452 = arith.addf %446, %451 : vector<16x16xf32>
      %c20 = arith.constant 20 : index
      %453 = memref.load %arg2[%c20] : memref<98xf32, #tpu.memory_space<smem>>
      %cst_207 = arith.constant 2.500000e-01 : f32
      %454 = arith.mulf %453, %cst_207 : f32
      %455 = vector.extract_strided_slice %440 {offsets = [2, 0], sizes = [16, 16], strides = [1, 1]} : vector<22x16xf32> to vector<16x16xf32>
      %456 = vector.broadcast %454 : f32 to vector<16x16xf32>
      %457 = arith.mulf %456, %455 : vector<16x16xf32>
      %458 = arith.addf %452, %457 : vector<16x16xf32>
      %c27 = arith.constant 27 : index
      %459 = memref.load %arg2[%c27] : memref<98xf32, #tpu.memory_space<smem>>
      %cst_208 = arith.constant 2.500000e-01 : f32
      %460 = arith.mulf %459, %cst_208 : f32
      %461 = vector.extract_strided_slice %440 {offsets = [3, 0], sizes = [16, 16], strides = [1, 1]} : vector<22x16xf32> to vector<16x16xf32>
      %462 = vector.broadcast %460 : f32 to vector<16x16xf32>
      %463 = arith.mulf %462, %461 : vector<16x16xf32>
      %464 = arith.addf %458, %463 : vector<16x16xf32>
      %c34 = arith.constant 34 : index
      %465 = memref.load %arg2[%c34] : memref<98xf32, #tpu.memory_space<smem>>
      %cst_209 = arith.constant 2.500000e-01 : f32
      %466 = arith.mulf %465, %cst_209 : f32
      %467 = vector.extract_strided_slice %440 {offsets = [4, 0], sizes = [16, 16], strides = [1, 1]} : vector<22x16xf32> to vector<16x16xf32>
      %468 = vector.broadcast %466 : f32 to vector<16x16xf32>
      %469 = arith.mulf %468, %467 : vector<16x16xf32>
      %470 = arith.addf %464, %469 : vector<16x16xf32>
      %c41 = arith.constant 41 : index
      %471 = memref.load %arg2[%c41] : memref<98xf32, #tpu.memory_space<smem>>
      %cst_210 = arith.constant 2.500000e-01 : f32
      %472 = arith.mulf %471, %cst_210 : f32
      %473 = vector.extract_strided_slice %440 {offsets = [5, 0], sizes = [16, 16], strides = [1, 1]} : vector<22x16xf32> to vector<16x16xf32>
      %474 = vector.broadcast %472 : f32 to vector<16x16xf32>
      %475 = arith.mulf %474, %473 : vector<16x16xf32>
      %476 = arith.addf %470, %475 : vector<16x16xf32>
      %c48 = arith.constant 48 : index
      %477 = memref.load %arg2[%c48] : memref<98xf32, #tpu.memory_space<smem>>
      %cst_211 = arith.constant 2.500000e-01 : f32
      %478 = arith.mulf %477, %cst_211 : f32
      %479 = vector.extract_strided_slice %440 {offsets = [6, 0], sizes = [16, 16], strides = [1, 1]} : vector<22x16xf32> to vector<16x16xf32>
      %480 = vector.broadcast %478 : f32 to vector<16x16xf32>
      %481 = arith.mulf %480, %479 : vector<16x16xf32>
      %482 = arith.addf %476, %481 : vector<16x16xf32>
      %c1_212 = arith.constant 1 : index
      %c0_213 = arith.constant 0 : index
      %c0_214 = arith.constant 0 : index
      %483 = vector.load %arg7[%c1_212, %c0_213, %c0_214] : memref<2x22x22xf32, #tpu.memory_space<vmem>>, vector<1x22x16xf32>
      %484 = vector.shape_cast %483 : vector<1x22x16xf32> to vector<22x16xf32>
      %c49 = arith.constant 49 : index
      %485 = memref.load %arg2[%c49] : memref<98xf32, #tpu.memory_space<smem>>
      %cst_215 = arith.constant 1.000000e+00 : f32
      %486 = arith.mulf %485, %cst_215 : f32
      %487 = vector.extract_strided_slice %484 {offsets = [0, 0], sizes = [16, 16], strides = [1, 1]} : vector<22x16xf32> to vector<16x16xf32>
      %488 = vector.broadcast %486 : f32 to vector<16x16xf32>
      %489 = arith.mulf %488, %487 : vector<16x16xf32>
      %490 = arith.addf %482, %489 : vector<16x16xf32>
      %c56 = arith.constant 56 : index
      %491 = memref.load %arg2[%c56] : memref<98xf32, #tpu.memory_space<smem>>
      %cst_216 = arith.constant 1.000000e+00 : f32
      %492 = arith.mulf %491, %cst_216 : f32
      %493 = vector.extract_strided_slice %484 {offsets = [1, 0], sizes = [16, 16], strides = [1, 1]} : vector<22x16xf32> to vector<16x16xf32>
      %494 = vector.broadcast %492 : f32 to vector<16x16xf32>
      %495 = arith.mulf %494, %493 : vector<16x16xf32>
      %496 = arith.addf %490, %495 : vector<16x16xf32>
      %c63 = arith.constant 63 : index
      %497 = memref.load %arg2[%c63] : memref<98xf32, #tpu.memory_space<smem>>
      %cst_217 = arith.constant 1.000000e+00 : f32
      %498 = arith.mulf %497, %cst_217 : f32
      %499 = vector.extract_strided_slice %484 {offsets = [2, 0], sizes = [16, 16], strides = [1, 1]} : vector<22x16xf32> to vector<16x16xf32>
      %500 = vector.broadcast %498 : f32 to vector<16x16xf32>
      %501 = arith.mulf %500, %499 : vector<16x16xf32>
      %502 = arith.addf %496, %501 : vector<16x16xf32>
      %c70 = arith.constant 70 : index
      %503 = memref.load %arg2[%c70] : memref<98xf32, #tpu.memory_space<smem>>
      %cst_218 = arith.constant 1.000000e+00 : f32
      %504 = arith.mulf %503, %cst_218 : f32
      %505 = vector.extract_strided_slice %484 {offsets = [3, 0], sizes = [16, 16], strides = [1, 1]} : vector<22x16xf32> to vector<16x16xf32>
      %506 = vector.broadcast %504 : f32 to vector<16x16xf32>
      %507 = arith.mulf %506, %505 : vector<16x16xf32>
      %508 = arith.addf %502, %507 : vector<16x16xf32>
      %c77 = arith.constant 77 : index
      %509 = memref.load %arg2[%c77] : memref<98xf32, #tpu.memory_space<smem>>
      %cst_219 = arith.constant 1.000000e+00 : f32
      %510 = arith.mulf %509, %cst_219 : f32
      %511 = vector.extract_strided_slice %484 {offsets = [4, 0], sizes = [16, 16], strides = [1, 1]} : vector<22x16xf32> to vector<16x16xf32>
      %512 = vector.broadcast %510 : f32 to vector<16x16xf32>
      %513 = arith.mulf %512, %511 : vector<16x16xf32>
      %514 = arith.addf %508, %513 : vector<16x16xf32>
      %c84 = arith.constant 84 : index
      %515 = memref.load %arg2[%c84] : memref<98xf32, #tpu.memory_space<smem>>
      %cst_220 = arith.constant 1.000000e+00 : f32
      %516 = arith.mulf %515, %cst_220 : f32
      %517 = vector.extract_strided_slice %484 {offsets = [5, 0], sizes = [16, 16], strides = [1, 1]} : vector<22x16xf32> to vector<16x16xf32>
      %518 = vector.broadcast %516 : f32 to vector<16x16xf32>
      %519 = arith.mulf %518, %517 : vector<16x16xf32>
      %520 = arith.addf %514, %519 : vector<16x16xf32>
      %c91 = arith.constant 91 : index
      %521 = memref.load %arg2[%c91] : memref<98xf32, #tpu.memory_space<smem>>
      %cst_221 = arith.constant 1.000000e+00 : f32
      %522 = arith.mulf %521, %cst_221 : f32
      %523 = vector.extract_strided_slice %484 {offsets = [6, 0], sizes = [16, 16], strides = [1, 1]} : vector<22x16xf32> to vector<16x16xf32>
      %524 = vector.broadcast %522 : f32 to vector<16x16xf32>
      %525 = arith.mulf %524, %523 : vector<16x16xf32>
      %526 = arith.addf %520, %525 : vector<16x16xf32>
      %c1_222 = arith.constant 1 : index
      %c0_223 = arith.constant 0 : index
      %c1_224 = arith.constant 1 : index
      %527 = vector.load %arg7[%c1_222, %c0_223, %c1_224] : memref<2x22x22xf32, #tpu.memory_space<vmem>>, vector<1x22x16xf32>
      %528 = vector.shape_cast %527 : vector<1x22x16xf32> to vector<22x16xf32>
      %c50 = arith.constant 50 : index
      %529 = memref.load %arg2[%c50] : memref<98xf32, #tpu.memory_space<smem>>
      %cst_225 = arith.constant 1.000000e+00 : f32
      %530 = arith.mulf %529, %cst_225 : f32
      %531 = vector.extract_strided_slice %528 {offsets = [0, 0], sizes = [16, 16], strides = [1, 1]} : vector<22x16xf32> to vector<16x16xf32>
      %532 = vector.broadcast %530 : f32 to vector<16x16xf32>
      %533 = arith.mulf %532, %531 : vector<16x16xf32>
      %534 = arith.addf %526, %533 : vector<16x16xf32>
      %c57 = arith.constant 57 : index
      %535 = memref.load %arg2[%c57] : memref<98xf32, #tpu.memory_space<smem>>
      %cst_226 = arith.constant 1.000000e+00 : f32
      %536 = arith.mulf %535, %cst_226 : f32
      %537 = vector.extract_strided_slice %528 {offsets = [1, 0], sizes = [16, 16], strides = [1, 1]} : vector<22x16xf32> to vector<16x16xf32>
      %538 = vector.broadcast %536 : f32 to vector<16x16xf32>
      %539 = arith.mulf %538, %537 : vector<16x16xf32>
      %540 = arith.addf %534, %539 : vector<16x16xf32>
      %c64 = arith.constant 64 : index
      %541 = memref.load %arg2[%c64] : memref<98xf32, #tpu.memory_space<smem>>
      %cst_227 = arith.constant 1.000000e+00 : f32
      %542 = arith.mulf %541, %cst_227 : f32
      %543 = vector.extract_strided_slice %528 {offsets = [2, 0], sizes = [16, 16], strides = [1, 1]} : vector<22x16xf32> to vector<16x16xf32>
      %544 = vector.broadcast %542 : f32 to vector<16x16xf32>
      %545 = arith.mulf %544, %543 : vector<16x16xf32>
      %546 = arith.addf %540, %545 : vector<16x16xf32>
      %c71 = arith.constant 71 : index
      %547 = memref.load %arg2[%c71] : memref<98xf32, #tpu.memory_space<smem>>
      %cst_228 = arith.constant 1.000000e+00 : f32
      %548 = arith.mulf %547, %cst_228 : f32
      %549 = vector.extract_strided_slice %528 {offsets = [3, 0], sizes = [16, 16], strides = [1, 1]} : vector<22x16xf32> to vector<16x16xf32>
      %550 = vector.broadcast %548 : f32 to vector<16x16xf32>
      %551 = arith.mulf %550, %549 : vector<16x16xf32>
      %552 = arith.addf %546, %551 : vector<16x16xf32>
      %c78 = arith.constant 78 : index
      %553 = memref.load %arg2[%c78] : memref<98xf32, #tpu.memory_space<smem>>
      %cst_229 = arith.constant 1.000000e+00 : f32
      %554 = arith.mulf %553, %cst_229 : f32
      %555 = vector.extract_strided_slice %528 {offsets = [4, 0], sizes = [16, 16], strides = [1, 1]} : vector<22x16xf32> to vector<16x16xf32>
      %556 = vector.broadcast %554 : f32 to vector<16x16xf32>
      %557 = arith.mulf %556, %555 : vector<16x16xf32>
      %558 = arith.addf %552, %557 : vector<16x16xf32>
      %c85 = arith.constant 85 : index
      %559 = memref.load %arg2[%c85] : memref<98xf32, #tpu.memory_space<smem>>
      %cst_230 = arith.constant 1.000000e+00 : f32
      %560 = arith.mulf %559, %cst_230 : f32
      %561 = vector.extract_strided_slice %528 {offsets = [5, 0], sizes = [16, 16], strides = [1, 1]} : vector<22x16xf32> to vector<16x16xf32>
      %562 = vector.broadcast %560 : f32 to vector<16x16xf32>
      %563 = arith.mulf %562, %561 : vector<16x16xf32>
      %564 = arith.addf %558, %563 : vector<16x16xf32>
      %c92 = arith.constant 92 : index
      %565 = memref.load %arg2[%c92] : memref<98xf32, #tpu.memory_space<smem>>
      %cst_231 = arith.constant 1.000000e+00 : f32
      %566 = arith.mulf %565, %cst_231 : f32
      %567 = vector.extract_strided_slice %528 {offsets = [6, 0], sizes = [16, 16], strides = [1, 1]} : vector<22x16xf32> to vector<16x16xf32>
      %568 = vector.broadcast %566 : f32 to vector<16x16xf32>
      %569 = arith.mulf %568, %567 : vector<16x16xf32>
      %570 = arith.addf %564, %569 : vector<16x16xf32>
      %c1_232 = arith.constant 1 : index
      %c0_233 = arith.constant 0 : index
      %c2_234 = arith.constant 2 : index
      %571 = vector.load %arg7[%c1_232, %c0_233, %c2_234] : memref<2x22x22xf32, #tpu.memory_space<vmem>>, vector<1x22x16xf32>
      %572 = vector.shape_cast %571 : vector<1x22x16xf32> to vector<22x16xf32>
      %c51 = arith.constant 51 : index
      %573 = memref.load %arg2[%c51] : memref<98xf32, #tpu.memory_space<smem>>
      %cst_235 = arith.constant 1.000000e+00 : f32
      %574 = arith.mulf %573, %cst_235 : f32
      %575 = vector.extract_strided_slice %572 {offsets = [0, 0], sizes = [16, 16], strides = [1, 1]} : vector<22x16xf32> to vector<16x16xf32>
      %576 = vector.broadcast %574 : f32 to vector<16x16xf32>
      %577 = arith.mulf %576, %575 : vector<16x16xf32>
      %578 = arith.addf %570, %577 : vector<16x16xf32>
      %c58 = arith.constant 58 : index
      %579 = memref.load %arg2[%c58] : memref<98xf32, #tpu.memory_space<smem>>
      %cst_236 = arith.constant 1.000000e+00 : f32
      %580 = arith.mulf %579, %cst_236 : f32
      %581 = vector.extract_strided_slice %572 {offsets = [1, 0], sizes = [16, 16], strides = [1, 1]} : vector<22x16xf32> to vector<16x16xf32>
      %582 = vector.broadcast %580 : f32 to vector<16x16xf32>
      %583 = arith.mulf %582, %581 : vector<16x16xf32>
      %584 = arith.addf %578, %583 : vector<16x16xf32>
      %c65 = arith.constant 65 : index
      %585 = memref.load %arg2[%c65] : memref<98xf32, #tpu.memory_space<smem>>
      %cst_237 = arith.constant 1.000000e+00 : f32
      %586 = arith.mulf %585, %cst_237 : f32
      %587 = vector.extract_strided_slice %572 {offsets = [2, 0], sizes = [16, 16], strides = [1, 1]} : vector<22x16xf32> to vector<16x16xf32>
      %588 = vector.broadcast %586 : f32 to vector<16x16xf32>
      %589 = arith.mulf %588, %587 : vector<16x16xf32>
      %590 = arith.addf %584, %589 : vector<16x16xf32>
      %c72 = arith.constant 72 : index
      %591 = memref.load %arg2[%c72] : memref<98xf32, #tpu.memory_space<smem>>
      %cst_238 = arith.constant 1.000000e+00 : f32
      %592 = arith.mulf %591, %cst_238 : f32
      %593 = vector.extract_strided_slice %572 {offsets = [3, 0], sizes = [16, 16], strides = [1, 1]} : vector<22x16xf32> to vector<16x16xf32>
      %594 = vector.broadcast %592 : f32 to vector<16x16xf32>
      %595 = arith.mulf %594, %593 : vector<16x16xf32>
      %596 = arith.addf %590, %595 : vector<16x16xf32>
      %c79 = arith.constant 79 : index
      %597 = memref.load %arg2[%c79] : memref<98xf32, #tpu.memory_space<smem>>
      %cst_239 = arith.constant 1.000000e+00 : f32
      %598 = arith.mulf %597, %cst_239 : f32
      %599 = vector.extract_strided_slice %572 {offsets = [4, 0], sizes = [16, 16], strides = [1, 1]} : vector<22x16xf32> to vector<16x16xf32>
      %600 = vector.broadcast %598 : f32 to vector<16x16xf32>
      %601 = arith.mulf %600, %599 : vector<16x16xf32>
      %602 = arith.addf %596, %601 : vector<16x16xf32>
      %c86 = arith.constant 86 : index
      %603 = memref.load %arg2[%c86] : memref<98xf32, #tpu.memory_space<smem>>
      %cst_240 = arith.constant 1.000000e+00 : f32
      %604 = arith.mulf %603, %cst_240 : f32
      %605 = vector.extract_strided_slice %572 {offsets = [5, 0], sizes = [16, 16], strides = [1, 1]} : vector<22x16xf32> to vector<16x16xf32>
      %606 = vector.broadcast %604 : f32 to vector<16x16xf32>
      %607 = arith.mulf %606, %605 : vector<16x16xf32>
      %608 = arith.addf %602, %607 : vector<16x16xf32>
      %c93 = arith.constant 93 : index
      %609 = memref.load %arg2[%c93] : memref<98xf32, #tpu.memory_space<smem>>
      %cst_241 = arith.constant 1.000000e+00 : f32
      %610 = arith.mulf %609, %cst_241 : f32
      %611 = vector.extract_strided_slice %572 {offsets = [6, 0], sizes = [16, 16], strides = [1, 1]} : vector<22x16xf32> to vector<16x16xf32>
      %612 = vector.broadcast %610 : f32 to vector<16x16xf32>
      %613 = arith.mulf %612, %611 : vector<16x16xf32>
      %614 = arith.addf %608, %613 : vector<16x16xf32>
      %c1_242 = arith.constant 1 : index
      %c0_243 = arith.constant 0 : index
      %c3_244 = arith.constant 3 : index
      %615 = vector.load %arg7[%c1_242, %c0_243, %c3_244] : memref<2x22x22xf32, #tpu.memory_space<vmem>>, vector<1x22x16xf32>
      %616 = vector.shape_cast %615 : vector<1x22x16xf32> to vector<22x16xf32>
      %c52 = arith.constant 52 : index
      %617 = memref.load %arg2[%c52] : memref<98xf32, #tpu.memory_space<smem>>
      %cst_245 = arith.constant 1.000000e+00 : f32
      %618 = arith.mulf %617, %cst_245 : f32
      %619 = vector.extract_strided_slice %616 {offsets = [0, 0], sizes = [16, 16], strides = [1, 1]} : vector<22x16xf32> to vector<16x16xf32>
      %620 = vector.broadcast %618 : f32 to vector<16x16xf32>
      %621 = arith.mulf %620, %619 : vector<16x16xf32>
      %622 = arith.addf %614, %621 : vector<16x16xf32>
      %c59 = arith.constant 59 : index
      %623 = memref.load %arg2[%c59] : memref<98xf32, #tpu.memory_space<smem>>
      %cst_246 = arith.constant 1.000000e+00 : f32
      %624 = arith.mulf %623, %cst_246 : f32
      %625 = vector.extract_strided_slice %616 {offsets = [1, 0], sizes = [16, 16], strides = [1, 1]} : vector<22x16xf32> to vector<16x16xf32>
      %626 = vector.broadcast %624 : f32 to vector<16x16xf32>
      %627 = arith.mulf %626, %625 : vector<16x16xf32>
      %628 = arith.addf %622, %627 : vector<16x16xf32>
      %c66 = arith.constant 66 : index
      %629 = memref.load %arg2[%c66] : memref<98xf32, #tpu.memory_space<smem>>
      %cst_247 = arith.constant 1.000000e+00 : f32
      %630 = arith.mulf %629, %cst_247 : f32
      %631 = vector.extract_strided_slice %616 {offsets = [2, 0], sizes = [16, 16], strides = [1, 1]} : vector<22x16xf32> to vector<16x16xf32>
      %632 = vector.broadcast %630 : f32 to vector<16x16xf32>
      %633 = arith.mulf %632, %631 : vector<16x16xf32>
      %634 = arith.addf %628, %633 : vector<16x16xf32>
      %c73 = arith.constant 73 : index
      %635 = memref.load %arg2[%c73] : memref<98xf32, #tpu.memory_space<smem>>
      %cst_248 = arith.constant 1.000000e+00 : f32
      %636 = arith.mulf %635, %cst_248 : f32
      %637 = vector.extract_strided_slice %616 {offsets = [3, 0], sizes = [16, 16], strides = [1, 1]} : vector<22x16xf32> to vector<16x16xf32>
      %638 = vector.broadcast %636 : f32 to vector<16x16xf32>
      %639 = arith.mulf %638, %637 : vector<16x16xf32>
      %640 = arith.addf %634, %639 : vector<16x16xf32>
      %c80 = arith.constant 80 : index
      %641 = memref.load %arg2[%c80] : memref<98xf32, #tpu.memory_space<smem>>
      %cst_249 = arith.constant 1.000000e+00 : f32
      %642 = arith.mulf %641, %cst_249 : f32
      %643 = vector.extract_strided_slice %616 {offsets = [4, 0], sizes = [16, 16], strides = [1, 1]} : vector<22x16xf32> to vector<16x16xf32>
      %644 = vector.broadcast %642 : f32 to vector<16x16xf32>
      %645 = arith.mulf %644, %643 : vector<16x16xf32>
      %646 = arith.addf %640, %645 : vector<16x16xf32>
      %c87 = arith.constant 87 : index
      %647 = memref.load %arg2[%c87] : memref<98xf32, #tpu.memory_space<smem>>
      %cst_250 = arith.constant 1.000000e+00 : f32
      %648 = arith.mulf %647, %cst_250 : f32
      %649 = vector.extract_strided_slice %616 {offsets = [5, 0], sizes = [16, 16], strides = [1, 1]} : vector<22x16xf32> to vector<16x16xf32>
      %650 = vector.broadcast %648 : f32 to vector<16x16xf32>
      %651 = arith.mulf %650, %649 : vector<16x16xf32>
      %652 = arith.addf %646, %651 : vector<16x16xf32>
      %c94 = arith.constant 94 : index
      %653 = memref.load %arg2[%c94] : memref<98xf32, #tpu.memory_space<smem>>
      %cst_251 = arith.constant 1.000000e+00 : f32
      %654 = arith.mulf %653, %cst_251 : f32
      %655 = vector.extract_strided_slice %616 {offsets = [6, 0], sizes = [16, 16], strides = [1, 1]} : vector<22x16xf32> to vector<16x16xf32>
      %656 = vector.broadcast %654 : f32 to vector<16x16xf32>
      %657 = arith.mulf %656, %655 : vector<16x16xf32>
      %658 = arith.addf %652, %657 : vector<16x16xf32>
      %c1_252 = arith.constant 1 : index
      %c0_253 = arith.constant 0 : index
      %c4_254 = arith.constant 4 : index
      %659 = vector.load %arg7[%c1_252, %c0_253, %c4_254] : memref<2x22x22xf32, #tpu.memory_space<vmem>>, vector<1x22x16xf32>
      %660 = vector.shape_cast %659 : vector<1x22x16xf32> to vector<22x16xf32>
      %c53 = arith.constant 53 : index
      %661 = memref.load %arg2[%c53] : memref<98xf32, #tpu.memory_space<smem>>
      %cst_255 = arith.constant 1.000000e+00 : f32
      %662 = arith.mulf %661, %cst_255 : f32
      %663 = vector.extract_strided_slice %660 {offsets = [0, 0], sizes = [16, 16], strides = [1, 1]} : vector<22x16xf32> to vector<16x16xf32>
      %664 = vector.broadcast %662 : f32 to vector<16x16xf32>
      %665 = arith.mulf %664, %663 : vector<16x16xf32>
      %666 = arith.addf %658, %665 : vector<16x16xf32>
      %c60 = arith.constant 60 : index
      %667 = memref.load %arg2[%c60] : memref<98xf32, #tpu.memory_space<smem>>
      %cst_256 = arith.constant 1.000000e+00 : f32
      %668 = arith.mulf %667, %cst_256 : f32
      %669 = vector.extract_strided_slice %660 {offsets = [1, 0], sizes = [16, 16], strides = [1, 1]} : vector<22x16xf32> to vector<16x16xf32>
      %670 = vector.broadcast %668 : f32 to vector<16x16xf32>
      %671 = arith.mulf %670, %669 : vector<16x16xf32>
      %672 = arith.addf %666, %671 : vector<16x16xf32>
      %c67 = arith.constant 67 : index
      %673 = memref.load %arg2[%c67] : memref<98xf32, #tpu.memory_space<smem>>
      %cst_257 = arith.constant 1.000000e+00 : f32
      %674 = arith.mulf %673, %cst_257 : f32
      %675 = vector.extract_strided_slice %660 {offsets = [2, 0], sizes = [16, 16], strides = [1, 1]} : vector<22x16xf32> to vector<16x16xf32>
      %676 = vector.broadcast %674 : f32 to vector<16x16xf32>
      %677 = arith.mulf %676, %675 : vector<16x16xf32>
      %678 = arith.addf %672, %677 : vector<16x16xf32>
      %c74 = arith.constant 74 : index
      %679 = memref.load %arg2[%c74] : memref<98xf32, #tpu.memory_space<smem>>
      %cst_258 = arith.constant 1.000000e+00 : f32
      %680 = arith.mulf %679, %cst_258 : f32
      %681 = vector.extract_strided_slice %660 {offsets = [3, 0], sizes = [16, 16], strides = [1, 1]} : vector<22x16xf32> to vector<16x16xf32>
      %682 = vector.broadcast %680 : f32 to vector<16x16xf32>
      %683 = arith.mulf %682, %681 : vector<16x16xf32>
      %684 = arith.addf %678, %683 : vector<16x16xf32>
      %c81 = arith.constant 81 : index
      %685 = memref.load %arg2[%c81] : memref<98xf32, #tpu.memory_space<smem>>
      %cst_259 = arith.constant 1.000000e+00 : f32
      %686 = arith.mulf %685, %cst_259 : f32
      %687 = vector.extract_strided_slice %660 {offsets = [4, 0], sizes = [16, 16], strides = [1, 1]} : vector<22x16xf32> to vector<16x16xf32>
      %688 = vector.broadcast %686 : f32 to vector<16x16xf32>
      %689 = arith.mulf %688, %687 : vector<16x16xf32>
      %690 = arith.addf %684, %689 : vector<16x16xf32>
      %c88 = arith.constant 88 : index
      %691 = memref.load %arg2[%c88] : memref<98xf32, #tpu.memory_space<smem>>
      %cst_260 = arith.constant 1.000000e+00 : f32
      %692 = arith.mulf %691, %cst_260 : f32
      %693 = vector.extract_strided_slice %660 {offsets = [5, 0], sizes = [16, 16], strides = [1, 1]} : vector<22x16xf32> to vector<16x16xf32>
      %694 = vector.broadcast %692 : f32 to vector<16x16xf32>
      %695 = arith.mulf %694, %693 : vector<16x16xf32>
      %696 = arith.addf %690, %695 : vector<16x16xf32>
      %c95 = arith.constant 95 : index
      %697 = memref.load %arg2[%c95] : memref<98xf32, #tpu.memory_space<smem>>
      %cst_261 = arith.constant 1.000000e+00 : f32
      %698 = arith.mulf %697, %cst_261 : f32
      %699 = vector.extract_strided_slice %660 {offsets = [6, 0], sizes = [16, 16], strides = [1, 1]} : vector<22x16xf32> to vector<16x16xf32>
      %700 = vector.broadcast %698 : f32 to vector<16x16xf32>
      %701 = arith.mulf %700, %699 : vector<16x16xf32>
      %702 = arith.addf %696, %701 : vector<16x16xf32>
      %c1_262 = arith.constant 1 : index
      %c0_263 = arith.constant 0 : index
      %c5_264 = arith.constant 5 : index
      %703 = vector.load %arg7[%c1_262, %c0_263, %c5_264] : memref<2x22x22xf32, #tpu.memory_space<vmem>>, vector<1x22x16xf32>
      %704 = vector.shape_cast %703 : vector<1x22x16xf32> to vector<22x16xf32>
      %c54 = arith.constant 54 : index
      %705 = memref.load %arg2[%c54] : memref<98xf32, #tpu.memory_space<smem>>
      %cst_265 = arith.constant 1.000000e+00 : f32
      %706 = arith.mulf %705, %cst_265 : f32
      %707 = vector.extract_strided_slice %704 {offsets = [0, 0], sizes = [16, 16], strides = [1, 1]} : vector<22x16xf32> to vector<16x16xf32>
      %708 = vector.broadcast %706 : f32 to vector<16x16xf32>
      %709 = arith.mulf %708, %707 : vector<16x16xf32>
      %710 = arith.addf %702, %709 : vector<16x16xf32>
      %c61 = arith.constant 61 : index
      %711 = memref.load %arg2[%c61] : memref<98xf32, #tpu.memory_space<smem>>
      %cst_266 = arith.constant 1.000000e+00 : f32
      %712 = arith.mulf %711, %cst_266 : f32
      %713 = vector.extract_strided_slice %704 {offsets = [1, 0], sizes = [16, 16], strides = [1, 1]} : vector<22x16xf32> to vector<16x16xf32>
      %714 = vector.broadcast %712 : f32 to vector<16x16xf32>
      %715 = arith.mulf %714, %713 : vector<16x16xf32>
      %716 = arith.addf %710, %715 : vector<16x16xf32>
      %c68 = arith.constant 68 : index
      %717 = memref.load %arg2[%c68] : memref<98xf32, #tpu.memory_space<smem>>
      %cst_267 = arith.constant 1.000000e+00 : f32
      %718 = arith.mulf %717, %cst_267 : f32
      %719 = vector.extract_strided_slice %704 {offsets = [2, 0], sizes = [16, 16], strides = [1, 1]} : vector<22x16xf32> to vector<16x16xf32>
      %720 = vector.broadcast %718 : f32 to vector<16x16xf32>
      %721 = arith.mulf %720, %719 : vector<16x16xf32>
      %722 = arith.addf %716, %721 : vector<16x16xf32>
      %c75 = arith.constant 75 : index
      %723 = memref.load %arg2[%c75] : memref<98xf32, #tpu.memory_space<smem>>
      %cst_268 = arith.constant 1.000000e+00 : f32
      %724 = arith.mulf %723, %cst_268 : f32
      %725 = vector.extract_strided_slice %704 {offsets = [3, 0], sizes = [16, 16], strides = [1, 1]} : vector<22x16xf32> to vector<16x16xf32>
      %726 = vector.broadcast %724 : f32 to vector<16x16xf32>
      %727 = arith.mulf %726, %725 : vector<16x16xf32>
      %728 = arith.addf %722, %727 : vector<16x16xf32>
      %c82 = arith.constant 82 : index
      %729 = memref.load %arg2[%c82] : memref<98xf32, #tpu.memory_space<smem>>
      %cst_269 = arith.constant 1.000000e+00 : f32
      %730 = arith.mulf %729, %cst_269 : f32
      %731 = vector.extract_strided_slice %704 {offsets = [4, 0], sizes = [16, 16], strides = [1, 1]} : vector<22x16xf32> to vector<16x16xf32>
      %732 = vector.broadcast %730 : f32 to vector<16x16xf32>
      %733 = arith.mulf %732, %731 : vector<16x16xf32>
      %734 = arith.addf %728, %733 : vector<16x16xf32>
      %c89 = arith.constant 89 : index
      %735 = memref.load %arg2[%c89] : memref<98xf32, #tpu.memory_space<smem>>
      %cst_270 = arith.constant 1.000000e+00 : f32
      %736 = arith.mulf %735, %cst_270 : f32
      %737 = vector.extract_strided_slice %704 {offsets = [5, 0], sizes = [16, 16], strides = [1, 1]} : vector<22x16xf32> to vector<16x16xf32>
      %738 = vector.broadcast %736 : f32 to vector<16x16xf32>
      %739 = arith.mulf %738, %737 : vector<16x16xf32>
      %740 = arith.addf %734, %739 : vector<16x16xf32>
      %c96 = arith.constant 96 : index
      %741 = memref.load %arg2[%c96] : memref<98xf32, #tpu.memory_space<smem>>
      %cst_271 = arith.constant 1.000000e+00 : f32
      %742 = arith.mulf %741, %cst_271 : f32
      %743 = vector.extract_strided_slice %704 {offsets = [6, 0], sizes = [16, 16], strides = [1, 1]} : vector<22x16xf32> to vector<16x16xf32>
      %744 = vector.broadcast %742 : f32 to vector<16x16xf32>
      %745 = arith.mulf %744, %743 : vector<16x16xf32>
      %746 = arith.addf %740, %745 : vector<16x16xf32>
      %c1_272 = arith.constant 1 : index
      %c0_273 = arith.constant 0 : index
      %c6_274 = arith.constant 6 : index
      %747 = vector.load %arg7[%c1_272, %c0_273, %c6_274] : memref<2x22x22xf32, #tpu.memory_space<vmem>>, vector<1x22x16xf32>
      %748 = vector.shape_cast %747 : vector<1x22x16xf32> to vector<22x16xf32>
      %c55 = arith.constant 55 : index
      %749 = memref.load %arg2[%c55] : memref<98xf32, #tpu.memory_space<smem>>
      %cst_275 = arith.constant 1.000000e+00 : f32
      %750 = arith.mulf %749, %cst_275 : f32
      %751 = vector.extract_strided_slice %748 {offsets = [0, 0], sizes = [16, 16], strides = [1, 1]} : vector<22x16xf32> to vector<16x16xf32>
      %752 = vector.broadcast %750 : f32 to vector<16x16xf32>
      %753 = arith.mulf %752, %751 : vector<16x16xf32>
      %754 = arith.addf %746, %753 : vector<16x16xf32>
      %c62 = arith.constant 62 : index
      %755 = memref.load %arg2[%c62] : memref<98xf32, #tpu.memory_space<smem>>
      %cst_276 = arith.constant 1.000000e+00 : f32
      %756 = arith.mulf %755, %cst_276 : f32
      %757 = vector.extract_strided_slice %748 {offsets = [1, 0], sizes = [16, 16], strides = [1, 1]} : vector<22x16xf32> to vector<16x16xf32>
      %758 = vector.broadcast %756 : f32 to vector<16x16xf32>
      %759 = arith.mulf %758, %757 : vector<16x16xf32>
      %760 = arith.addf %754, %759 : vector<16x16xf32>
      %c69 = arith.constant 69 : index
      %761 = memref.load %arg2[%c69] : memref<98xf32, #tpu.memory_space<smem>>
      %cst_277 = arith.constant 1.000000e+00 : f32
      %762 = arith.mulf %761, %cst_277 : f32
      %763 = vector.extract_strided_slice %748 {offsets = [2, 0], sizes = [16, 16], strides = [1, 1]} : vector<22x16xf32> to vector<16x16xf32>
      %764 = vector.broadcast %762 : f32 to vector<16x16xf32>
      %765 = arith.mulf %764, %763 : vector<16x16xf32>
      %766 = arith.addf %760, %765 : vector<16x16xf32>
      %c76 = arith.constant 76 : index
      %767 = memref.load %arg2[%c76] : memref<98xf32, #tpu.memory_space<smem>>
      %cst_278 = arith.constant 1.000000e+00 : f32
      %768 = arith.mulf %767, %cst_278 : f32
      %769 = vector.extract_strided_slice %748 {offsets = [3, 0], sizes = [16, 16], strides = [1, 1]} : vector<22x16xf32> to vector<16x16xf32>
      %770 = vector.broadcast %768 : f32 to vector<16x16xf32>
      %771 = arith.mulf %770, %769 : vector<16x16xf32>
      %772 = arith.addf %766, %771 : vector<16x16xf32>
      %c83 = arith.constant 83 : index
      %773 = memref.load %arg2[%c83] : memref<98xf32, #tpu.memory_space<smem>>
      %cst_279 = arith.constant 1.000000e+00 : f32
      %774 = arith.mulf %773, %cst_279 : f32
      %775 = vector.extract_strided_slice %748 {offsets = [4, 0], sizes = [16, 16], strides = [1, 1]} : vector<22x16xf32> to vector<16x16xf32>
      %776 = vector.broadcast %774 : f32 to vector<16x16xf32>
      %777 = arith.mulf %776, %775 : vector<16x16xf32>
      %778 = arith.addf %772, %777 : vector<16x16xf32>
      %c90 = arith.constant 90 : index
      %779 = memref.load %arg2[%c90] : memref<98xf32, #tpu.memory_space<smem>>
      %cst_280 = arith.constant 1.000000e+00 : f32
      %780 = arith.mulf %779, %cst_280 : f32
      %781 = vector.extract_strided_slice %748 {offsets = [5, 0], sizes = [16, 16], strides = [1, 1]} : vector<22x16xf32> to vector<16x16xf32>
      %782 = vector.broadcast %780 : f32 to vector<16x16xf32>
      %783 = arith.mulf %782, %781 : vector<16x16xf32>
      %784 = arith.addf %778, %783 : vector<16x16xf32>
      %c97 = arith.constant 97 : index
      %785 = memref.load %arg2[%c97] : memref<98xf32, #tpu.memory_space<smem>>
      %cst_281 = arith.constant 1.000000e+00 : f32
      %786 = arith.mulf %785, %cst_281 : f32
      %787 = vector.extract_strided_slice %748 {offsets = [6, 0], sizes = [16, 16], strides = [1, 1]} : vector<22x16xf32> to vector<16x16xf32>
      %788 = vector.broadcast %786 : f32 to vector<16x16xf32>
      %789 = arith.mulf %788, %787 : vector<16x16xf32>
      %790 = arith.addf %784, %789 : vector<16x16xf32>
      %791 = arith.negf %790 : vector<16x16xf32>
      %792 = math.exp %791 : vector<16x16xf32>
      %cst_282 = arith.constant 1.000000e+00 : f32
      %793 = vector.broadcast %cst_282 : f32 to vector<16x16xf32>
      %794 = arith.addf %793, %792 : vector<16x16xf32>
      %795 = arith.divf %793, %794 : vector<16x16xf32>
      %c0_283 = arith.constant 0 : index
      %c0_284 = arith.constant 0 : index
      %c0_285 = arith.constant 0 : index
      %c0_286 = arith.constant 0 : index
      %796 = vector.load %arg4[%c0_283, %c0_284, %c0_285, %c0_286] : memref<1x1x16x16xf32, #tpu.memory_space<vmem>>, vector<1x1x16x16xf32>
      %797 = vector.shape_cast %796 : vector<1x1x16x16xf32> to vector<16x16xf32>
      %798 = vector.shape_cast %795 : vector<16x16xf32> to vector<1x1x16x16xf32>
      tpu.vector_store %arg4[%c0_283, %c0_284, %c0_285, %c0_286], %798 {strides = array<i32>} : memref<1x1x16x16xf32, #tpu.memory_space<vmem>>, vector<1x1x16x16xf32>,
    } else {
    }
    return
  }
  func.func @transform_0(%arg0: i32, %arg1: i32) -> i32 {
    %c0_i32 = arith.constant 0 : i32
    %c0_i32_0 = arith.constant 0 : i32
    return %c0_i32 : i32
  }
  func.func @transform_1(%arg0: i32, %arg1: i32) -> (i32, i32, i32) {
    %c0_i32 = arith.constant 0 : i32
    %c0_i32_0 = arith.constant 0 : i32
    return %arg0, %arg1, %c0_i32 : i32, i32, i32
  }
  func.func @transform_2(%arg0: i32, %arg1: i32) -> (i32, i32, i32, i32) {
    %c0_i32 = arith.constant 0 : i32
    %c0_i32_0 = arith.constant 0 : i32
    %c0_i32_1 = arith.constant 0 : i32
    %c0_i32_2 = arith.constant 0 : i32
    return %arg0, %c0_i32, %c0_i32_0, %c0_i32_1 : i32, i32, i32, i32
  }
}

</mosaic_0001>

<bundles_post_ra>
// kernel: tpu_custom_call.1
= control target key start
LH: loop header
LB: loop body
LE: loop exit
PB: predicated region body
PF: predicated region fallthrough
CT: control target
= control target key end

     0   :  { %s5778_s0 = inlined_call_operand.hbm [shape: f32[98], index: 0, kind: input, shape index: {}]   ;;  %s5779_s1 = inlined_call_operand.hbm [shape: f32[2,4,256], index: 1, kind: input, shape index: {}]   ;;  %s5780_s2 = inlined_call_operand.hbm [shape: f32[2,1,16,16], index: 2, kind: output, shape index: {}]  }
   0x1   :  { %5921 = sst [smem:[#allocation101_spill]] %s5778_s0 }
   0x2   :  { %5922 = sst [smem:[#allocation102_spill]] %s5779_s1 }
   0x3   :  { %5923 = sst [smem:[#allocation103_spill]] %s5780_s2 }
   0x4   :  { %7 = vsyncpa [#allocation8], 0 }
   0x5   :  { %8 = vsyncpa [#allocation6], 0 }
   0x6   :  { %10 = vsyncpa [#allocation6 + $0x1], 0 }
   0x7   :  { %11 = vsyncpa [#allocation7], 0 }
   0x8   :  { %13 = vsyncpa [#allocation7 + $0x1], 0  ;;  %s3025_s9 = smov 0   ;;  %s3027_s10 = smov 0  }
   0x9   :  { %s3029_s11 = smov 0   ;;  %s3031_s12 = smov 0  }
   0xa   :  { %s3033_s13 = smov 0   ;;  %s3035_s14 = smov 0  }
   0xb LB: > { %5924 = sst [smem:[#allocation14_spill]] %s2959_s9  ;;  %s2626_s15 = sadd.s32 4294967295, %s2979_s14   ;;  %s2979_s14 = sphi %s3035_s14, %s19_s14   ;;  %s2975_s13 = sphi %s3033_s13, %s6279_s13   ;;  %s2971_s12 = sphi %s3031_s12, %s6278_s12   ;;  %s2967_s11 = sphi %s3029_s11, %s6277_s11   ;;  %s2963_s10 = sphi %s3027_s10, %s6276_s10   ;;  %s2959_s9 = sphi %s3025_s9, %s6275_s9  }
   0xc   : > { %5925 = sst [smem:[#allocation15_spill]] %s2963_s10  ;;  %s2627_s16 = sadd.s32 4294967294, %s2979_s14  }
   0xd   : > { %5926 = sst [smem:[#allocation16_spill]] %s2967_s11  ;;  %p74_p0 = scmp.ne.s32.totalorder %s2963_s10, %s2959_s9 }
   0xe   : > { %5927 = sst [smem:[#allocation17_spill]] %s2971_s12  ;;  %p3059_p1 = scmp.eq.s32.totalorder %s2626_s15, 0 }
   0xf   : > { %5928 = sst [smem:[#allocation18_spill]] %s2975_s13  ;;  %p3063_p2 = scmp.eq.s32.totalorder %s2626_s15, 1 }
  0x10   : > { %5929 = sst [smem:[#allocation19_spill]] %s2979_s14  ;;  %p104_p3 = scmp.eq.s32.totalorder %s2627_s16, 1 }
  0x11   : > { %p3069_p4 = por %p3059_p1, %p74_p0  ;;  %p2628_p5 = scmp.ge.s32.totalorder %s2979_s14, 1 }
  0x12   : > { %p3074_p6 = por %p104_p3, %p74_p0  ;;  %p111_p7 = scmp.lt.s32.totalorder %s2979_s14, 3 }
  0x13   : > { %s31_s22 = sadd.s32 1, %s2975_s13  ;;  %s61_s23 = sadd.s32 1, %s2967_s11 }
  0x14   : > { %s5933_s20 = scalar_select %p3074_p6, 1, 0 }
  0x15   : > { %p3079_p8 = pnand %p2628_p5, %p111_p7  ;;  %p33_p12 = scmp.ge.s32.totalorder %s31_s22, 2 }
  0x16   : > { %5934 = sst [smem:[#allocation20_spill]] %s5933_s20  ;;  %p68_p13 = scmp.ne.s32.totalorder %s2967_s11, %s2963_s10 }
  0x17   : > { %p2752_p10 = pneg %p3079_p8  ;;  %p69_p0 = scmp.eq.s32.totalorder %s2979_s14, 0 }
  0x18   : > { %s2981_s24 = smov [#allocation5]   ;;  %s5936_s0 = sld [smem:[#allocation101_spill]] }
  0x19   : > { %p2753_p11 = pnand %p2752_p10, %p3059_p1  ;;  %s6281_s22 = smov (%p33_p12, %s31_s22), 0 }
  0x1a   : > { %5937 = sst [smem:[#allocation21_spill]] %s6281_s22  ;;  %p3098_p3 = por %p69_p0, %p68_p13 }
  0x1b   : > { %p3104_p5 = por %p3063_p2, %p68_p13  ;;  %s56_s29 = ssub.s32 %s2975_s13, %s6281_s22 }
  0x1c   : > { %p2765_p7 = scmp.lt.s32.totalorder %s2979_s14, 2  ;;  %p59_p10 = scmp.eq.s32.totalorder %s56_s29, 0 }
  0x1d   : > { %s5939_s28 = scalar_select %p3104_p5, 1, 0 }
  0x1e   : > { %2755 = dma.hbm_to_smem (!%p2753_p11), %s5936_s0, 16, %s2981_s24, [#allocation8]  }
  0x1f   : > { %5940 = sst [smem:[#allocation22_spill]] %s5939_s28  ;;  %s133_s30 = sand.u32 1, %s2967_s11  }
  0x20   : > { %s2631_s3 = sshll.u32 %s133_s30, 3  ;;  %s2742_s5 = sshll.u32 %s2975_s13, 7 }
  0x21   : > { %s3113_s4 = scalar_select %p59_p10, %s2967_s11, %s61_s23  }
  0x22   : > { %s5942_s1 = sld [smem:[#allocation102_spill]]  ;;  %s137_s15 = scalar_lea.vmem [#allocation9], %s2631_s3 }
  0x23   : > { %5941 = sst [smem:[#allocation23_spill]] %s3113_s4  ;;  %s147_s16 = sshll.u32 %s137_s15, 4  ;;  %s148_s16 = int_to_ptr.vmem [resolvable:$true] %s147_s16 }
  0x24   : > { %p3121_p2 = pnand %p2765_p7, %p3098_p3  ;;  %s134_s24 = scalar_lea.sflag [#allocation6], %s133_s30 }
  0x25   : > { %s2880_s25 = scalar_lea.vmem %s148_s16, 128  ;;  %s2982_s23 = smov [#allocation9]  }
  0x26   : > { %p2869_p11 = pneg %p3121_p2  ;;  %p2881_p12 = scmp.ne.s32.totalorder %s148_s16, %s2880_s25 }
  0x27   : > { %s2885_s26 = sshll.u32 %s2982_s23, 4  ;;  %s2886_s26 = int_to_ptr.vmem [resolvable:$false] %s2885_s26 }
  0x28   : > { %s145_s8 = scalar_lea.hbm %s5942_s1, %s2742_s5  ;;  %p2883_p13 = pnand %p2881_p12, %p2869_p11 }
  0x29   : > { %s2887_s29 = scalar_lea.vmem %s2886_s26, 256  ;;  %p2888_p10 = scmp.lt.s32.totalorder %s148_s16, %s2886_s26 }
  0x2a   : > { %p2884_p0 = pneg %p2883_p13  ;;  %p2889_p9 = scmp.lt.s32.totalorder %s2887_s29, %s2880_s25 }
  0x2c   : > { %p2890_p6 = por %p2889_p9, %p2888_p10 }
  0x2e   : > { %p2891_p5 = pnand %p2890_p6, %p2884_p0 }
  0x30   : > { %2894 = shalt.err (!%p2891_p5)
}
  0x31   : > { %2759 = dma.hbm_to_vmem [thread:$0]  (!%p3121_p2), %s145_s8, 128, %s148_s16, %s134_s24  }
  0x32   : > { %156 = sbr.rel (%p3079_p8) target bundleno = 904 (0x388), region = 28 }
  0x37   : > { %2946 = dma.done.wait (%p3059_p1), [#allocation8], 16  }
  0x38   : > { %2948 = vsyncadd (%p3059_p1), [#allocation8], 4294967280  ;;  %s3136_s27 = sand.u32 1, %s2963_s10  }
  0x39   : > { %5944 = sst [smem:[#allocation24_spill]] %s3136_s27  ;;  %s2636_s30 = sshll.u32 %s3136_s27, 3 }
  0x3a   : > { %s163_s3 = scalar_lea.sflag [#allocation6], %s3136_s27  ;;  %s166_s5 = scalar_lea.vmem [#allocation9], %s2636_s30 }
  0x3b   : > { %2950 = dma.done.wait (%p3069_p4), %s163_s3, 128  }
  0x3c   : > { %2952 = vsyncadd (%p3069_p4), %s163_s3, 4294967168 }
  0x3d   : > { %171 = sfence }
  0x3e   : > { %v188_v0 = vld [vmem:[%s166_s5] sm:$0xff]  ;;  %vm192_vm0 = vcmask 1043456   ;;  %v225_v1 = vlaneseq  ;;  %v2983_v10 = vmov 0.0   ;;  %v2984_v11 = vmov -inf   ;;  %s2986_s17 = smov 96   ;;  %s2987_s19 = smov 112  }
  0x3f   : > { %v190_v2 = vcombine.high %v188_v0, %v188_v0  ;;  %v193_v3 = vsel %vm192_vm0, %v188_v0, 0.0  ;;  %v207_v4 = vsel %vm192_vm0, %v188_v0, -inf  ;;  %v2985_v16 = vmov 1966171168   ;;  %s2988_s21 = smov 64   ;;  %s2989_s6 = smov 80  }
  0x40   : > { %v194_v5 = vrot.slane %v193_v3, 4  ;;  %v208_v6 = vrot.slane %v207_v4, 4  ;;  %vm3146_vm1 = vcmp.lt.s32.totalorder %v225_v1, 256  ;;  %v236_v17 = vunpack.c.l.s4 %v2985_v16  ;;  %s2990_s7 = smov 32   ;;  %s2991_s8 = smov 48  }
  0x41   : > { %v200_v8 = vsel %vm192_vm0, %v190_v2, 0.0  ;;  %v214_v9 = vsel %vm192_vm0, %v190_v2, -inf  ;;  %229 = vst.msk [vmem:[#allocation2] sm:$0x3] %vm3146_vm1, %v2983_v10  ;;  %230 = vst.msk [vmem:[#allocation3] sm:$0x3] %vm3146_vm1, %v2984_v11 }
  0x42   : > { %v195_v12 = vadd.f32 %v194_v5, %v193_v3  ;;  %v201_v13 = vrot.slane %v200_v8, 4  ;;  %v209_v14 = vmax.f32 %v207_v4, %v208_v6  ;;  %v215_v15 = vrot.slane %v214_v9, 4  ;;  %s2992_s15 = smov 115   ;;  %s2993_s16 = smov 3  }
  0x43   : > { %v237_v26 = vunpack.c.0.s8 %v236_v17  ;;  %v239_v27 = vshrl.u32 %v225_v1, 7  ;;  %vm285_vm2 = vcmask 23552   ;;  %vm288_vm3 = vcmask 179352   ;;  %s2994_s18 = smov 99   ;;  %s2995_s24 = smov 83  }
  0x44   : > { %v196_v18 = vrot.slane %v195_v12, 2  ;;  %v202_v19 = vadd.f32 %v201_v13, %v200_v8  ;;  %v210_v20 = vrot.slane %v209_v14, 2  ;;  %v216_v21 = vmax.f32 %v214_v9, %v215_v15  ;;  %286 = vst.msk [vmem:[#allocation4 + $0x3] sm:$0xff] %vm285_vm2, %v2983_v10  ;;  %287 = vst.msk [vmem:[#allocation4 + $0xb] sm:$0xff] %vm285_vm2, %v2983_v10  ;;  %s2996_s25 = smov 67   ;;  %s2997_s23 = smov 51  }
  0x45   : > { %v240_v38 = vsub.s32 %v237_v26, %v239_v27  ;;  %294 = vst.msk [vmem:[#allocation4 + $0x1b] sm:$0xff] %vm285_vm2, %v2983_v10  ;;  %295 = vst.msk [vmem:[#allocation4 + $0x23] sm:$0xff] %vm285_vm2, %v2983_v10  ;;  %v3171_v50 = vsub.s32 0, %v239_v27  ;;  %vm282_vm4 = vcmask 174080   ;;  %s2998_s26 = smov 35   ;;  %s2999_s29 = smov 16  }
  0x46   : > { %v197_v22 = vadd.f32 %v196_v18, %v195_v12  ;;  %v203_v23 = vrot.slane %v202_v19, 2  ;;  %v211_v24 = vmax.f32 %v209_v14, %v210_v20  ;;  %v217_v25 = vrot.slane %v216_v21, 2  ;;  %289 = vst.msk [vmem:[#allocation4 + $0x3] sm:$0xff] %vm288_vm3, %v2983_v10  ;;  %290 = vst.msk [vmem:[#allocation4 + $0xb] sm:$0xff] %vm288_vm3, %v2983_v10  ;;  %s3000_s30 = smov 19   ;;  %s2644_s3 = sld [smem:[#allocation5 + $0x1]] }
  0x47   : > { %296 = vst.msk [vmem:[#allocation4 + $0x1b] sm:$0xff] %vm288_vm3, %v2983_v10  ;;  %297 = vst.msk [vmem:[#allocation4 + $0x23] sm:$0xff] %vm288_vm3, %v2983_v10  ;;  %vm306_vm5 = vcmask 147480   ;;  %s2651_s5 = sld [smem:[#allocation5 + $0x2]]  ;;  %vm564_vm6 = vcmask 1046528   ;;  %vm583_vm7 = vcmask 1045504  }
  0x48   : > { %v198_v28 = vrot.slane %v197_v22, 1  ;;  %v204_v29 = vadd.f32 %v203_v23, %v202_v19  ;;  %v212_v30 = vrot.slane %v211_v24, 1  ;;  %v218_v31 = vmax.f32 %v216_v21, %v217_v25  ;;  %v231_v43 = vld [vmem:[#allocation2] sm:$0x3]  ;;  %v256_v44 = vld [vmem:[#allocation3] sm:$0x3] }
  0x49   : > { %292 = vst.msk [vmem:[#allocation4 + $0x18] sm:$0x7] %vm282_vm4, %v2983_v10  ;;  %283 = vst.msk [vmem:[#allocation4] sm:$0x7] %vm282_vm4, %v2983_v10  ;;  %s3322_s1 = sld [smem:[#allocation5 + $0x2b]]  ;;  %vm602_vm8 = vcmask 1044480  }
  0x4a   : > { %v199_v32 = vadd.f32 %v198_v28, %v197_v22  ;;  %v205_v33 = vrot.slane %v204_v29, 1  ;;  %v213_v34 = vmax.f32 %v211_v24, %v212_v30  ;;  %v219_v35 = vrot.slane %v218_v31, 1  ;;  %284 = vst.msk [vmem:[#allocation4 + $0x13] sm:$0x7] %vm282_vm4, %v2983_v10  ;;  %293 = vst.msk [vmem:[#allocation4 + $0x2b] sm:$0x7] %vm282_vm4, %v2983_v10 }
  0x4b   : > { %s3325_s22 = sld [smem:[#allocation5 + $0x9]]  ;;  %vm639_vm9 = vcmask 1042432   ;;  %vm658_vm10 = vcmask 1041408   ;;  %vm2513_vm11 = vcmask 130048  }
  0x4c   : > { %v206_v36 = vadd.f32 %v205_v33, %v204_v29  ;;  %v220_v37 = vmax.f32 %v218_v31, %v219_v35  ;;  %s3328_s13 = sld [smem:[#allocation5 + $0x10]] }
  0x4d   : > { %s3331_s4 = sld [smem:[#allocation5 + $0x17]] }
  0x4e   : > { %v234_v39 = vcombine.low %v199_v32, %v206_v36  ;;  %v259_v40 = vcombine.low %v213_v34, %v220_v37  ;;  %s3334_s11 = sld [smem:[#allocation5 + $0x1e]] }
  0x4f   : > { %s3337_s10 = sld [smem:[#allocation5 + $0x25]] }
  0x50   : > { %v241_v41 = vrot.slane %v234_v39, %v240_v38  ;;  %v266_v42 = vrot.slane %v259_v40, %v240_v38  ;;  %s3340_s14 = sld [smem:[#allocation5 + $0x2c]] }
  0x51   : > { %5951 = sst [smem:[#allocation29_spill]] %s3325_s22 }
  0x52   : > { %v248_v45 = vrot.slane %v241_v41, %v240_v38  ;;  %v273_v46 = vrot.slane %v266_v42, %v240_v38  ;;  %5952 = sst [smem:[#allocation30_spill]] %s3328_s13 }
  0x53   : > { %5953 = sst [smem:[#allocation31_spill]] %s3331_s4 }
  0x54   : > { %v250_v47 = vadd.f32 %v248_v45, %v231_v43  ;;  %v275_v48 = vmax.f32 %v256_v44, %v273_v46  ;;  %5954 = sst [smem:[#allocation32_spill]] %s3334_s11 }
  0x55   : > { %5955 = sst [smem:[#allocation33_spill]] %s3337_s10 }
  0x56   : > { %255 = vst.msk [vmem:[#allocation2] sm:$0x3] %vm3146_vm1, %v250_v47  ;;  %276 = vst.msk [vmem:[#allocation3] sm:$0x3] %vm3146_vm1, %v275_v48  ;;  %5956 = sst [smem:[#allocation34_spill]] %s3340_s14 }
  0x57   : > { %s3343_s20 = sld [smem:[#allocation5 + $0xa]] }
  0x58   : > { %s3346_s9 = sld [smem:[#allocation5 + $0x11]] }
  0x59   : > { %s3349_s2 = sld [smem:[#allocation5 + $0x18]] }
  0x5a   : > { %s3352_s28 = sld [smem:[#allocation5 + $0x1f]] }
  0x5b   : > { %s3355_s12 = sld [smem:[#allocation5 + $0x26]] }
  0x5c   : > { %s3358_s27 = sld [smem:[#allocation5 + $0x2d]] }
  0x5d   : > { %v280_v49 = vld [vmem:[#allocation2] sm:$0x3]  ;;  %v281_v52 = vld [vmem:[#allocation3] sm:$0x3]  ;;  %5957 = sst [smem:[#allocation35_spill]] %s3343_s20 }
  0x5e   : > { %413 = vrot.lane.b32.xlu1 %v280_v49, %s2986_s17  ;;  %391 = vrot.lane.b32.xlu0 %v280_v49, %s2987_s19  ;;  %v302_v51 = vrot.slane %v280_v49, %v3171_v50  ;;  %v312_v53 = vrot.slane %v281_v52, %v3171_v50  ;;  %v373_v54 = vrot.slane %v280_v49, 1  ;;  %v382_v56 = vrot.slane %v281_v52, 1  ;;  %5958 = sst [smem:[#allocation36_spill]] %s3346_s9 }
  0x5f   : > { %5959 = sst [smem:[#allocation37_spill]] %s3349_s2 }
  0x60   : > { %v377_v55 = vrot.slane %v373_v54, %v3171_v50  ;;  %v386_v57 = vrot.slane %v382_v56, %v3171_v50  ;;  %s3364_s22 = sld [smem:[#allocation5 + $0x12]] }
  0x61   : > { %5960 = sst [smem:[#allocation38_spill]] %s3355_s12 }
  0x62   : > { %457 = vrot.lane.b32.xlu1 %v280_v49, %s2988_s21  ;;  %435 = vrot.lane.b32.xlu0 %v280_v49, %s2989_s6  ;;  %5961 = sst [smem:[#allocation39_spill]] %s3358_s27 }
  0x63   : > { %s3367_s13 = sld [smem:[#allocation5 + $0x19]] }
  0x64   : > { %s3370_s4 = sld [smem:[#allocation5 + $0x20]] }
  0x65   : > { %s3373_s11 = sld [smem:[#allocation5 + $0x27]] }
  0x66   : > { %501 = vrot.lane.b32.xlu1 %v280_v49, %s2990_s7  ;;  %479 = vrot.lane.b32.xlu0 %v280_v49, %s2991_s8  ;;  %5963 = sst [smem:[#allocation41_spill]] %s3364_s22 }
  0x67   : > { %s3376_s10 = sld [smem:[#allocation5 + $0x2e]] }
  0x68   : > { %s3379_s14 = sld [smem:[#allocation5 + $0xc]] }
  0x69   : > { %5964 = sst [smem:[#allocation42_spill]] %s3367_s13 }
  0x6a   : > { %317 = vrot.lane.b32.xlu1 %v302_v51, %s2992_s15  ;;  %303 = vrot.lane.b32.xlu0 %v302_v51, %s2993_s16  ;;  %5965 = sst [smem:[#allocation43_spill]] %s3370_s4 }
  0x6b   : > { %5966 = sst [smem:[#allocation44_spill]] %s3373_s11 }
  0x6c   : > { %s3382_s20 = sld [smem:[#allocation5 + $0x13]] }
  0x6d   : > { %5967 = sst [smem:[#allocation45_spill]] %s3376_s10 }
  0x6e   : > { %321 = vrot.lane.b32.xlu1 %v312_v53, %s2992_s15  ;;  %313 = vrot.lane.b32.xlu0 %v312_v53, %s2993_s16  ;;  %s5792_s15 = smov 127   ;;  %5968 = sst [smem:[#allocation46_spill]] %s3379_s14 }
  0x6f   : > { %s3385_s9 = sld [smem:[#allocation5 + $0x1a]] }
  0x70   : > { %s3388_s2 = sld [smem:[#allocation5 + $0x21]] }
  0x71   : > { %s3394_s0 = sld [smem:[#allocation5 + $0x2f]] }
  0x72   : > { %329 = vrot.lane.b32.xlu1 %v312_v53, %s2994_s18  ;;  %325 = vrot.lane.b32.xlu0 %v302_v51, %s2994_s18  ;;  %5969 = sst [smem:[#allocation47_spill]] %s3382_s20 }
  0x73   : > { %s3406_s12 = sld [smem:[#allocation5 + $0x22]] }
  0x74   : > { %s5977_s22 = sld [smem:[#allocation29_spill]] }
  0x75   : > { %s5978_s13 = sld [smem:[#allocation30_spill]] }
  0x76   : > { %337 = vrot.lane.b32.xlu1 %v312_v53, %s2995_s24  ;;  %333 = vrot.lane.b32.xlu0 %v302_v51, %s2995_s24  ;;  %s2679_s24 = sld [smem:[#allocation5 + $0x6]] }
  0x77   : > { %5970 = sst [smem:[#allocation48_spill]] %s3394_s0 }
  0x78   : > { %s3422_s20 = sld [smem:[#allocation5 + $0x29]] }
  0x79   : > { %s5991_s14 = sld [smem:[#allocation34_spill]] }
  0x7a   : > { %345 = vrot.lane.b32.xlu1 %v312_v53, %s2996_s25  ;;  %341 = vrot.lane.b32.xlu0 %v302_v51, %s2996_s25  ;;  %s5790_s25 = smov 126  }
  0x7e   : > { %353 = vrot.lane.b32.xlu1 %v312_v53, %s2997_s23  ;;  %349 = vrot.lane.b32.xlu0 %v302_v51, %s2997_s23  ;;  %5979 = sst [smem:[#allocation29_spill]] %s3422_s20 }
  0x7f   : > { %s3441_s20 = sld [smem:[#allocation5 + $0x30]] }
  0x82   : > { %357 = vrot.lane.b32.xlu1 %v302_v51, %s2998_s26  ;;  %523 = vrot.lane.b32.xlu0 %v280_v49, %s2999_s29 }
  0x85   : > { %5992 = sst [smem:[#allocation30_spill]] %s3441_s20 }
  0x86   : > { %365 = vrot.lane.b32.xlu1 %v302_v51, %s3000_s30  ;;  %361 = vrot.lane.b32.xlu0 %v312_v53, %s2998_s26  ;;  %s5788_s26 = smov 125   ;;  %s6002_s20 = sld [smem:[#allocation38_spill]] }
  0x8a   : > { %378 = vrot.lane.b32.xlu1 %v377_v55, %s2993_s16  ;;  %369 = vrot.lane.b32.xlu0 %v312_v53, %s3000_s30  ;;  %s3276_s30 = sld [smem:[#allocation5 + $0x32]] }
  0x8e   : > { %424 = vrot.lane.b32.xlu1 %v281_v52, %s2986_s17  ;;  %387 = vrot.lane.b32.xlu0 %v386_v57, %s2993_s16  ;;  %s669_s17 = smul.f32 0.25, %s2644_s3  ;;  %s5786_s3 = smov 124  }
  0x90   : > { %v3246_v49 = vstv %s669_s17  ;;  %5949 = sst [smem:[#allocation27_spill]] %s3276_s30 }
  0x91   : > { %s3291_s17 = sld [smem:[#allocation5]] }
  0x92   : > { %402 = vrot.lane.b32.xlu0 %v281_v52, %s2987_s19  ;;  %468 = vrot.lane.b32.xlu1 %v281_v52, %s2988_s21  ;;  %s2658_s19 = sld [smem:[#allocation5 + $0x3]]  ;;  %s816_s21 = smul.f32 0.25, %s2651_s5 }
  0x93   : > { %s5784_s5 = smov 123  }
  0x94   : > { %v3254_v55 = vstv %s816_s21  ;;  %s3295_s21 = sld [smem:[#allocation5 + $0xe]] }
  0x96   : > { %446 = vrot.lane.b32.xlu0 %v281_v52, %s2989_s6  ;;  %512 = vrot.lane.b32.xlu1 %v281_v52, %s2990_s7  ;;  %s2665_s6 = sld [smem:[#allocation5 + $0x4]] }
  0x97   : > { %s5971_s27 = smul.f32 0.25, %s3291_s17 }
  0x98   : > { %s963_s7 = smul.f32 0.25, %s2658_s19  ;;  %s3293_s19 = sld [smem:[#allocation5 + $0x7]] }
  0x9a   : > { %490 = vrot.lane.b32.xlu0 %v281_v52, %s2991_s8  ;;  %s2672_s8 = sld [smem:[#allocation5 + $0x5]] }
  0x9c   : > { %s1110_s18 = smul.f32 0.25, %s2665_s6  ;;  %s3297_s6 = sld [smem:[#allocation5 + $0x15]] }
  0x9e   : > { %534 = vrot.lane.b32.xlu0 %v281_v52, %s2999_s29  ;;  %s1404_s29 = smul.f32 0.25, %s2679_s24  ;;  %s3307_s24 = sld [smem:[#allocation5 + $0x8]] }
  0x9f   : > { %s5973_s11 = smul.f32 0.25, %s3293_s19 }
  0xa0   : > { %s1257_s23 = smul.f32 0.25, %s2672_s8  ;;  %s3301_s8 = sld [smem:[#allocation5 + $0x23]] }
  0xa2   : > { %s5980_s10 = smul.f32 0.25, %s3297_s6 }
  0xa4   : > { %s5993_s6 = smul.f32 0.25, %s3307_s24 }
  0xa5   : > { %s6004_s24 = smul.f32 0.25, %s3322_s1 }
  0xa6   : > { %s5985_s19 = smul.f32 0.25, %s3301_s8 }
  0xd0   : > { %v414_v58 = vpop.permute.xlu1 %413  ;;  %v392_v59 = vpop.permute.xlu0 %391 }
  0xd1   : > { %v415_v60 = vrot.slane %v414_v58, 1  ;;  %v393_v61 = vrot.slane %v392_v59, 1  ;;  %v3261_v59 = vstv %s963_s7  ;;  %s3299_s7 = sld [smem:[#allocation5 + $0x1c]] }
  0xd3   : > { %v419_v62 = vrot.slane %v415_v60, %v3171_v50  ;;  %v397_v63 = vrot.slane %v393_v61, %v3171_v50 }
  0xd4   : > { %v458_v0 = vpop.permute.xlu1 %457  ;;  %v3197_v1 = vpop.permute.xlu0 %435 }
  0xd5   : > { %398 = vrot.lane.b32.xlu1 %v397_v63, %s2993_s16  ;;  %420 = vrot.lane.b32.xlu0 %v419_v62, %s2993_s16  ;;  %v459_v25 = vrot.slane %v458_v0, 1  ;;  %v437_v32 = vrot.slane %v3197_v1, 1  ;;  %v3268_v62 = vstv %s1110_s18  ;;  %v3281_v1 = vstv %s1404_s29  ;;  %s3305_s18 = sld [smem:[#allocation5 + $0x2a]] }
  0xd6   : > { %5947 = vst [vmem:[#allocation25_spill] sm:$0xff] %v3268_v62  ;;  %5950 = vst [vmem:[#allocation28_spill] sm:$0xff] %v3281_v1  ;;  %s3310_s29 = sld [smem:[#allocation5 + $0xf]] }
  0xd7   : > { %v463_v31 = vrot.slane %v459_v25, %v3171_v50  ;;  %v441_v38 = vrot.slane %v437_v32, %v3171_v50  ;;  %s5982_s17 = smul.f32 0.25, %s3299_s7 }
  0xd8   : > { %v3201_v2 = vpop.permute.xlu1 %501  ;;  %v3203_v3 = vpop.permute.xlu0 %479 }
  0xd9   : > { %v503_v39 = vrot.slane %v3201_v2, 1  ;;  %v481_v44 = vrot.slane %v3203_v3, 1 }
  0xdb   : > { %v507_v43 = vrot.slane %v503_v39, %v3171_v50  ;;  %v485_v47 = vrot.slane %v481_v44, %v3171_v50 }
  0xdc   : > { %v318_v4 = vpop.permute.xlu1 %317  ;;  %v304_v5 = vpop.permute.xlu0 %303  ;;  %s5995_s7 = smul.f32 0.25, %s3310_s29 }
  0xdd   : > { %320 = vst.msk [vmem:[#allocation4 + $0x4] sm:$0x1] %vm306_vm5, %v318_v4  ;;  %307 = vst.msk [vmem:[#allocation4 + $0x3] sm:$0x1] %vm306_vm5, %v304_v5  ;;  %v5828_v4 = vstv %s3276_s30  ;;  %s3361_s30 = sld [smem:[#allocation5 + $0xb]]  ;;  %s6007_s29 = smul.f32 0.25, %s5977_s22 }
  0xde   : > { %s6018_s22 = smul.f32 0.25, %s5991_s14 }
  0xe0   : > { %v322_v6 = vpop.permute.xlu1 %321  ;;  %v314_v7 = vpop.permute.xlu0 %313 }
  0xe1   : > { %324 = vst.msk [vmem:[#allocation4 + $0x1c] sm:$0x1] %vm306_vm5, %v322_v6  ;;  %316 = vst.msk [vmem:[#allocation4 + $0x1b] sm:$0x1] %vm306_vm5, %v314_v7 }
  0xe3   : > { %5962 = sst [smem:[#allocation40_spill]] %s3361_s30  ;;  %s5975_s30 = smul.f32 0.25, %s3295_s21 }
  0xe4   : > { %v330_v8 = vpop.permute.xlu1 %329  ;;  %v326_v9 = vpop.permute.xlu0 %325  ;;  %s5988_s21 = smul.f32 0.25, %s3305_s18 }
  0xe5   : > { %332 = vst.msk [vmem:[#allocation4 + $0x1d] sm:$0x1] %vm306_vm5, %v330_v8  ;;  %328 = vst.msk [vmem:[#allocation4 + $0x5] sm:$0x1] %vm306_vm5, %v326_v9  ;;  %v3411_v8 = vstv %s5971_s27  ;;  %v3415_v9 = vstv %s5973_s11  ;;  %s5983_s27 = sld [smem:[#allocation31_spill]] }
  0xe6   : > { %5972 = vst [vmem:[#allocation49_spill] sm:$0xff] %v3411_v8  ;;  %5974 = vst [vmem:[#allocation50_spill] sm:$0xff] %v3415_v9  ;;  %s5986_s11 = sld [smem:[#allocation32_spill]] }
  0xe8   : > { %v338_v10 = vpop.permute.xlu1 %337  ;;  %v334_v11 = vpop.permute.xlu0 %333 }
  0xe9   : > { %340 = vst.msk [vmem:[#allocation4 + $0x1e] sm:$0x1] %vm306_vm5, %v338_v10  ;;  %336 = vst.msk [vmem:[#allocation4 + $0x6] sm:$0x1] %vm306_vm5, %v334_v11  ;;  %v3419_v10 = vstv %s5975_s30  ;;  %v3426_v11 = vstv %s5980_s10  ;;  %s5989_s30 = sld [smem:[#allocation33_spill]] }
  0xea   : > { %5976 = vst [vmem:[#allocation51_spill] sm:$0xff] %v3419_v10  ;;  %5981 = vst [vmem:[#allocation52_spill] sm:$0xff] %v3426_v11  ;;  %s5994_s10 = sld [smem:[#allocation35_spill]] }
  0xec   : > { %v346_v12 = vpop.permute.xlu1 %345  ;;  %v342_v13 = vpop.permute.xlu0 %341 }
  0xed   : > { %348 = vst.msk [vmem:[#allocation4 + $0x1f] sm:$0x1] %vm306_vm5, %v346_v12  ;;  %344 = vst.msk [vmem:[#allocation4 + $0x7] sm:$0x1] %vm306_vm5, %v342_v13  ;;  %v3430_v12 = vstv %s5982_s17  ;;  %v3434_v13 = vstv %s5985_s19  ;;  %s5996_s17 = sld [smem:[#allocation36_spill]] }
  0xee   : > { %5984 = vst [vmem:[#allocation53_spill] sm:$0xff] %v3430_v12  ;;  %5987 = vst [vmem:[#allocation54_spill] sm:$0xff] %v3434_v13  ;;  %s5998_s19 = sld [smem:[#allocation37_spill]] }
  0xef   : > { %s6016_s1 = smul.f32 0.25, %s5989_s30 }
  0xf0   : > { %v354_v14 = vpop.permute.xlu1 %353  ;;  %v350_v15 = vpop.permute.xlu0 %349  ;;  %s6022_s0 = smul.f32 0.25, %s5994_s10 }
  0xf1   : > { %356 = vst.msk [vmem:[#allocation4 + $0x20] sm:$0x1] %vm306_vm5, %v354_v14  ;;  %352 = vst.msk [vmem:[#allocation4 + $0x8] sm:$0x1] %vm306_vm5, %v350_v15  ;;  %v3438_v14 = vstv %s5988_s21  ;;  %v3445_v15 = vstv %s5993_s6  ;;  %s6005_s6 = sld [smem:[#allocation39_spill]]  ;;  %v3487_v25 = vstv %s6016_s1  ;;  %s6029_s30 = smul.f32 0.25, %s3352_s28 }
  0xf2   : > { %5990 = vst [vmem:[#allocation55_spill] sm:$0xff] %v3438_v14  ;;  %s6013_s21 = sld [smem:[#allocation42_spill]]  ;;  %s1485_s28 = smul.f32 0.25, %s3406_s12 }
  0xf3   : > { %s6054_s12 = smul.f32 0.25, %s3388_s2  ;;  %s6077_s2 = smov 127  }
  0xf4   : > { %v358_v16 = vpop.permute.xlu1 %357  ;;  %v3217_v17 = vpop.permute.xlu0 %523  ;;  %v3244_v48 = vld [vmem:[#allocation4] sm:$0xff]  ;;  %v1550_v3 = vld [vmem:[#allocation4 + $0x18] sm:$0xff] }
  0xf5   : > { %360 = vst.msk [vmem:[#allocation4 + $0x9] sm:$0x1] %vm306_vm5, %v358_v16  ;;  %v525_v53 = vrot.slane %v3217_v17, 1  ;;  %v671_v54 = vmul.f32 %v3246_v49, %v3244_v48  ;;  %v818_v58 = vmul.f32 %v3254_v55, %v3244_v48  ;;  %v965_v61 = vmul.f32 %v3261_v59, %v3244_v48 }
  0xf6   : > { %v1112_v63 = vmul.f32 %v3268_v62, %v3244_v48  ;;  %v1406_v2 = vmul.f32 %v3281_v1, %v3244_v48  ;;  %v1663_v5 = vmul.f32 %v5828_v4, %v1550_v3  ;;  %v3449_v16 = vstv %s5995_s7  ;;  %s6008_s7 = sld [smem:[#allocation40_spill]] }
  0xf7   : > { %v529_v57 = vrot.slane %v525_v53, %v3171_v50  ;;  %v3584_v53 = vstv %s1485_s28  ;;  %v3619_v3 = vmul.f32 %v3411_v8, %v3244_v48  ;;  %s4818_s28 = sld [smem:[#allocation5 + $0x56]] }
  0xf8   : > { %v366_v18 = vpop.permute.xlu1 %365  ;;  %v362_v19 = vpop.permute.xlu0 %361  ;;  %s6042_s1 = smul.f32 0.25, %s6013_s21  ;;  %6062 = vst [vmem:[#allocation79_spill] sm:$0xff] %v3584_v53 }
  0xf9   : > { %368 = vst.msk [vmem:[#allocation4 + $0xa] sm:$0x1] %vm306_vm5, %v366_v18  ;;  %364 = vst.msk [vmem:[#allocation4 + $0x21] sm:$0x1] %vm306_vm5, %v362_v19 }
  0xfc   : > { %v379_v20 = vpop.permute.xlu1 %378  ;;  %v370_v21 = vpop.permute.xlu0 %369  ;;  %s6037_s10 = smul.f32 0.25, %s6008_s7 }
  0xfd   : > { %381 = vst.msk [vmem:[#allocation4 + $0xb] sm:$0x1] %vm306_vm5, %v379_v20  ;;  %372 = vst.msk [vmem:[#allocation4 + $0x22] sm:$0x1] %vm306_vm5, %v370_v21  ;;  %v3466_v20 = vstv %s6004_s24  ;;  %v3470_v21 = vstv %s6007_s29  ;;  %s6017_s24 = sld [smem:[#allocation44_spill]] }
  0xfe   : > { %6006 = vst [vmem:[#allocation58_spill] sm:$0xff] %v3466_v20  ;;  %6009 = vst [vmem:[#allocation59_spill] sm:$0xff] %v3470_v21  ;;  %s6019_s29 = sld [smem:[#allocation45_spill]]  ;;  %v3635_v1 = vmul.f32 %v3466_v20, %v3244_v48  ;;  %v3639_v8 = vmul.f32 %v3470_v21, %v3244_v48  ;;  %v3668_v20 = vmul.f32 %v3487_v25, %v3244_v48 }
 0x100   : > { %v425_v22 = vpop.permute.xlu1 %424  ;;  %v388_v23 = vpop.permute.xlu0 %387  ;;  %6066 = vst [vmem:[#allocation83_spill] sm:$0xff] %v3635_v1  ;;  %6067 = vst [vmem:[#allocation84_spill] sm:$0xff] %v3639_v8 }
 0x101   : > { %v426_v24 = vrot.slane %v425_v22, 1  ;;  %390 = vst.msk [vmem:[#allocation4 + $0x23] sm:$0x1] %vm306_vm5, %v388_v23 }
 0x103   : > { %v430_v26 = vrot.slane %v426_v24, %v3171_v50 }
 0x104   : > { %v403_v27 = vpop.permute.xlu0 %402  ;;  %v469_v28 = vpop.permute.xlu1 %468 }
 0x105   : > { %v404_v29 = vrot.slane %v403_v27, 1  ;;  %431 = vrot.lane.b32.xlu0 %v430_v26, %s2993_s16  ;;  %v470_v30 = vrot.slane %v469_v28, 1  ;;  %v3491_v26 = vstv %s6018_s22  ;;  %v3496_v27 = vstv %s6022_s0  ;;  %s6035_s0 = smul.f32 0.25, %s6005_s6 }
 0x106   : > { %6020 = vst [vmem:[#allocation60_spill] sm:$0xff] %v3491_v26  ;;  %6024 = vst [vmem:[#allocation61_spill] sm:$0xff] %v3496_v27 }
 0x107   : > { %v408_v33 = vrot.slane %v404_v29, %v3171_v50  ;;  %v474_v35 = vrot.slane %v470_v30, %v3171_v50  ;;  %v3508_v30 = vstv %s6029_s30  ;;  %v3517_v32 = vstv %s6035_s0  ;;  %s2696_s30 = sld [smem:[#allocation5 + $0x47]] }
 0x108   : > { %v447_v34 = vpop.permute.xlu0 %446  ;;  %v513_v37 = vpop.permute.xlu1 %512  ;;  %6031 = vst [vmem:[#allocation64_spill] sm:$0xff] %v3508_v30  ;;  %6036 = vst [vmem:[#allocation66_spill] sm:$0xff] %v3517_v32  ;;  %v3694_v8 = vmul.f32 %v3517_v32, %v3244_v48  ;;  %s4743_s0 = sld [smem:[#allocation5 + $0x33]] }
 0x109   : > { %464 = vrot.lane.b32.xlu0 %v463_v31, %s2993_s16  ;;  %409 = vrot.lane.b32.xlu1 %v408_v33, %s2993_s16  ;;  %v448_v36 = vrot.slane %v447_v34, 1  ;;  %v514_v41 = vrot.slane %v513_v37, 1  ;;  %v3521_v33 = vstv %s6037_s10  ;;  %s2702_s10 = sld [smem:[#allocation5 + $0x41]] }
 0x10a   : > { %6038 = vst [vmem:[#allocation67_spill] sm:$0xff] %v3521_v33 }
 0x10b   : > { %v452_v40 = vrot.slane %v448_v36, %v3171_v50  ;;  %v518_v45 = vrot.slane %v514_v41, %v3171_v50 }
 0x10c   : > { %v491_v42 = vpop.permute.xlu0 %490 }
 0x10d   : > { %475 = vrot.lane.b32.xlu0 %v474_v35, %s2993_s16  ;;  %442 = vrot.lane.b32.xlu1 %v441_v38, %s2993_s16  ;;  %v492_v46 = vrot.slane %v491_v42, 1  ;;  %v3530_v35 = vstv %s6042_s1  ;;  %v3558_v42 = vstv %s6054_s12  ;;  %s4854_s1 = sld [smem:[#allocation5 + $0x5d]] }
 0x10e   : > { %6043 = vst [vmem:[#allocation69_spill] sm:$0xff] %v3530_v35  ;;  %6055 = vst [vmem:[#allocation74_spill] sm:$0xff] %v3558_v42  ;;  %s5028_s12 = sld [smem:[#allocation5 + $0x5e]] }
 0x10f   : > { %v496_v51 = vrot.slane %v492_v46, %v3171_v50 }
 0x110   : > { %v535_v52 = vpop.permute.xlu0 %534 }
 0x111   : > { %508 = vrot.lane.b32.xlu0 %v507_v43, %s2993_s16  ;;  %453 = vrot.lane.b32.xlu1 %v452_v40, %s2993_s16  ;;  %v536_v56 = vrot.slane %v535_v52, 1 }
 0x113   : > { %v540_v60 = vrot.slane %v536_v56, %v3171_v50  ;;  %v3274_v50 = vstv %s1257_s23  ;;  %s3397_s23 = sld [smem:[#allocation5 + $0xd]]  ;;  %v3588_v56 = vmul.f32 %v3426_v11, %v3244_v48 }
 0x114   : > { %5948 = vst [vmem:[#allocation26_spill] sm:$0xff] %v3274_v50  ;;  %v1259_v0 = vmul.f32 %v3274_v50, %v3244_v48 }
 0x115   : > { %519 = vrot.lane.b32.xlu0 %v518_v45, %s2993_s16  ;;  %486 = vrot.lane.b32.xlu1 %v485_v47, %s2993_s16  ;;  %v3576_v47 = vmul.f32 %v3415_v9, %v3244_v48 }
 0x119   : > { %675 = vrot.lane.b32.xlu0 %v671_v54, %s5792_s15  ;;  %497 = vrot.lane.b32.xlu1 %v496_v51, %s2993_s16  ;;  %v3580_v51 = vmul.f32 %v3419_v10, %v3244_v48 }
 0x11d   : > { %822 = vrot.lane.b32.xlu0 %v818_v58, %s5790_s25  ;;  %530 = vrot.lane.b32.xlu1 %v529_v57, %s2993_s16  ;;  %s3391_s25 = sld [smem:[#allocation5 + $0x28]]  ;;  %v3592_v57 = vmul.f32 %v3430_v12, %v3244_v48  ;;  %v3596_v58 = vmul.f32 %v3434_v13, %v3244_v48 }
 0x121   : > { %969 = vrot.lane.b32.xlu0 %v965_v61, %s5788_s26  ;;  %541 = vrot.lane.b32.xlu1 %v540_v60, %s2993_s16  ;;  %s5782_s16 = smov 122   ;;  %s3316_s26 = sld [smem:[#allocation5 + $0x1d]]  ;;  %v3600_v60 = vmul.f32 %v3438_v14, %v3244_v48  ;;  %v3605_v61 = vmul.f32 %v3445_v15, %v3244_v48 }
 0x125   : > { %1116 = vrot.lane.b32.xlu0 %v1112_v63, %s5786_s3  ;;  %s3403_s3 = sld [smem:[#allocation5 + $0x1b]]  ;;  %v3609_v63 = vmul.f32 %v3449_v16, %v3244_v48 }
 0x127   : > { %s5999_s18 = smul.f32 0.25, %s3316_s26 }
 0x128   : > { %s1419_s26 = smul.f32 0.25, %s3397_s23  ;;  %s6023_s23 = sld [smem:[#allocation47_spill]] }
 0x129   : > { %1263 = vrot.lane.b32.xlu0 %v1259_v0, %s5784_s5  ;;  %s3313_s5 = sld [smem:[#allocation5 + $0x16]]  ;;  %v3457_v18 = vstv %s5999_s18  ;;  %s6012_s18 = smul.f32 0.25, %s5983_s27 }
 0x12a   : > { %6000 = vst [vmem:[#allocation56_spill] sm:$0xff] %v3457_v18  ;;  %s6025_s27 = smul.f32 0.25, %s5996_s17  ;;  %v3569_v45 = vstv %s1419_s26  ;;  %s6108_s26 = smov 124  }
 0x12b   : > { %v3479_v23 = vstv %s6012_s18  ;;  %s6030_s18 = sld [smem:[#allocation29_spill]]  ;;  %s1463_s14 = smul.f32 0.25, %s3403_s3  ;;  %6059 = vst [vmem:[#allocation76_spill] sm:$0xff] %v3569_v45 }
 0x12c   : > { %v3500_v28 = vstv %s6025_s27  ;;  %s6048_s3 = smul.f32 0.25, %s6019_s29  ;;  %s2694_s27 = sld [smem:[#allocation5 + $0x39]] }
 0x12d   : > { %1410 = vrot.lane.b32.xlu0 %v1406_v2, %s5782_s16  ;;  %s3400_s16 = sld [smem:[#allocation5 + $0x14]]  ;;  %6026 = vst [vmem:[#allocation62_spill] sm:$0xff] %v3500_v28  ;;  %v3582_v52 = vstv %s1463_s14 }
 0x12e   : > { %v3542_v38 = vstv %s6048_s3  ;;  %s6050_s7 = smul.f32 0.25, %s6023_s23  ;;  %6061 = vst [vmem:[#allocation78_spill] sm:$0xff] %v3582_v52  ;;  %s6123_s23 = smov 122  }
 0x12f   : > { %s5997_s8 = smul.f32 0.25, %s3313_s5  ;;  %s2698_s14 = sld [smem:[#allocation5 + $0x55]] }
 0x130   : > { %s6010_s5 = smul.f32 0.25, %s5978_s13  ;;  %s6021_s13 = sld [smem:[#allocation46_spill]]  ;;  %v3550_v40 = vstv %s6050_s7 }
 0x131   : > { %1667 = vrot.lane.b32.xlu0 %v1663_v5, %s5792_s15  ;;  %s3319_s15 = sld [smem:[#allocation5 + $0x24]]  ;;  %v3453_v17 = vstv %s5997_s8  ;;  %6051 = vst [vmem:[#allocation72_spill] sm:$0xff] %v3550_v40  ;;  %s1507_s21 = smul.f32 0.25, %s6030_s18  ;;  %v3623_v5 = vmul.f32 %v3457_v18, %v3244_v48  ;;  %v3676_v18 = vmul.f32 %v3496_v27, %v3244_v48 }
 0x132   : > { %s6011_s8 = sld [smem:[#allocation41_spill]]  ;;  %v3474_v22 = vstv %s6010_s5  ;;  %v3613_v0 = vmul.f32 %v3453_v17, %v3244_v48 }
 0x133   : > { %s1441_s5 = smul.f32 0.25, %s3400_s16  ;;  %s6033_s16 = sld [smem:[#allocation48_spill]]  ;;  %v3615_v2 = vstv %s1507_s21 }
 0x134   : > { %6063 = vst [vmem:[#allocation80_spill] sm:$0xff] %v3615_v2  ;;  %v3652_v2 = vmul.f32 %v3474_v22, %v3244_v48  ;;  %s2697_s18 = sld [smem:[#allocation5 + $0x4e]] }
 0x135   : > { %v3571_v46 = vstv %s1441_s5  ;;  %s6116_s5 = smov 123   ;;  %s4924_s3 = sld [smem:[#allocation5 + $0x42]] }
 0x136   : > { %s6049_s6 = smul.f32 0.25, %s6021_s13  ;;  %6060 = vst [vmem:[#allocation77_spill] sm:$0xff] %v3571_v46  ;;  %6068 = vst [vmem:[#allocation85_spill] sm:$0xff] %v3652_v2  ;;  %v3739_v2 = vmul.f32 %v3542_v38, %v3244_v48  ;;  %s6113_s13 = sld [smem:[#allocation27_spill]] }
 0x137   : > { %s6001_s4 = smul.f32 0.25, %s3319_s15  ;;  %s6015_s15 = sld [smem:[#allocation43_spill]] }
 0x138   : > { %s6039_s17 = smul.f32 0.25, %s6011_s8  ;;  %v3546_v39 = vstv %s6049_s6  ;;  %s4945_s6 = sld [smem:[#allocation5 + $0x49]] }
 0x139   : > { %v3462_v19 = vstv %s6001_s4  ;;  %s6014_s4 = smul.f32 0.25, %s5986_s11  ;;  %s4973_s7 = sld [smem:[#allocation5 + $0x50]] }
 0x13a   : > { %6003 = vst [vmem:[#allocation57_spill] sm:$0xff] %v3462_v19  ;;  %s6027_s11 = smul.f32 0.25, %s5998_s19  ;;  %s6040_s19 = sld [smem:[#allocation30_spill]]  ;;  %v3525_v34 = vstv %s6039_s17 }
 0x13b   : > { %v3483_v24 = vstv %s6014_s4  ;;  %s6032_s4 = smul.f32 0.25, %s6002_s20  ;;  %6041 = vst [vmem:[#allocation68_spill] sm:$0xff] %v3525_v34  ;;  %s2703_s17 = sld [smem:[#allocation5 + $0x48]] }
 0x13c   : > { %v3504_v29 = vstv %s6027_s11  ;;  %s6046_s20 = smul.f32 0.25, %s6017_s24  ;;  %s2695_s11 = sld [smem:[#allocation5 + $0x40]] }
 0x13d   : > { %6028 = vst [vmem:[#allocation63_spill] sm:$0xff] %v3504_v29  ;;  %v3513_v31 = vstv %s6032_s4  ;;  %s6044_s22 = smul.f32 0.25, %s6015_s15  ;;  %v3684_v21 = vmul.f32 %v3504_v29, %v3244_v48  ;;  %v3702_v29 = vmul.f32 %v3525_v34, %v3244_v48  ;;  %s2699_s4 = sld [smem:[#allocation5 + $0x5c]] }
 0x13e   : > { %6034 = vst [vmem:[#allocation65_spill] sm:$0xff] %v3513_v31  ;;  %v3538_v37 = vstv %s6046_s20  ;;  %s6052_s8 = smul.f32 0.25, %s3385_s9  ;;  %s6090_s9 = smov 126  }
 0x13f   : > { %v3534_v36 = vstv %s6044_s22  ;;  %6047 = vst [vmem:[#allocation71_spill] sm:$0xff] %v3538_v37  ;;  %s6056_s15 = smul.f32 0.25, %s3391_s25  ;;  %6070 = vst [vmem:[#allocation87_spill] sm:$0xff] %v3684_v21  ;;  %s6100_s25 = smov 125  }
 0x140   : > { %6045 = vst [vmem:[#allocation70_spill] sm:$0xff] %v3534_v36  ;;  %v3554_v41 = vstv %s6052_s8  ;;  %s6057_s24 = smul.f32 0.25, %s6033_s16  ;;  %v3712_v32 = vmul.f32 %v3534_v36, %v3244_v48  ;;  %v3755_v36 = vmul.f32 %v3558_v42, %v3244_v48  ;;  %s2701_s16 = sld [smem:[#allocation5 + $0x3a]] }
 0x141   : > { %6053 = vst [vmem:[#allocation73_spill] sm:$0xff] %v3554_v41  ;;  %v3563_v43 = vstv %s6056_s15  ;;  %s1529_s29 = smul.f32 0.25, %s6040_s19  ;;  %s4789_s19 = sld [smem:[#allocation5 + $0x4f]] }
 0x142   : > { %v3567_v44 = vstv %s6057_s24  ;;  %6071 = vst [vmem:[#allocation88_spill] sm:$0xff] %v3712_v32  ;;  %s4897_s22 = sld [smem:[#allocation5 + $0x34]] }
 0x143   : > { %6058 = vst [vmem:[#allocation75_spill] sm:$0xff] %v3567_v44  ;;  %s4905_s20 = sld [smem:[#allocation5 + $0x3b]] }
 0x144   : > { %s4999_s8 = sld [smem:[#allocation5 + $0x57]] }
 0x145   : > { %s2715_s21 = sld [smem:[#allocation5 + $0x3c]] }
 0x146   : > { %s5080_s15 = sld [smem:[#allocation5 + $0x35]] }
 0x147   : > { %v399_v6 = vpop.permute.xlu1 %398  ;;  %v421_v7 = vpop.permute.xlu0 %420  ;;  %s2716_s24 = sld [smem:[#allocation5 + $0x43]] }
 0x148   : > { %401 = vst.msk [vmem:[#allocation4 + $0xc] sm:$0x1] %vm306_vm5, %v399_v6  ;;  %423 = vst.msk [vmem:[#allocation4 + $0xd] sm:$0x1] %vm306_vm5, %v421_v7  ;;  %v3627_v6 = vmul.f32 %v3462_v19, %v3244_v48  ;;  %v3629_v7 = vstv %s1529_s29  ;;  %v3672_v19 = vmul.f32 %v3491_v26, %v3244_v48  ;;  %s5101_s29 = sld [smem:[#allocation5 + $0x4a]] }
 0x149   : > { %6065 = vst [vmem:[#allocation82_spill] sm:$0xff] %v3629_v7 }
 0x14a   : > { %6064 = vst [vmem:[#allocation81_spill] sm:$0xff] %v3627_v6  ;;  %v3680_v6 = vmul.f32 %v3500_v28, %v3244_v48  ;;  %v3698_v28 = vmul.f32 %v3521_v33, %v3244_v48  ;;  %v3716_v33 = vmul.f32 %v3538_v37, %v3244_v48 }
 0x14c   : > { %6072 = vst [vmem:[#allocation89_spill] sm:$0xff] %v3716_v33  ;;  %v6081_v33 = vrot.slane %v3588_v56, 3 }
 0x177   : > { %v432_v54 = vpop.permute.xlu0 %431 }
 0x178   : > { %434 = vst.msk [vmem:[#allocation4 + $0x25] sm:$0x1] %vm306_vm5, %v432_v54  ;;  %v3658_v54 = vmul.f32 %v3479_v23, %v3244_v48 }
 0x17a   : > { %6069 = vst [vmem:[#allocation86_spill] sm:$0xff] %v3658_v54 }
 0x17b   : > { %v410_v50 = vpop.permute.xlu1 %409  ;;  %v465_v62 = vpop.permute.xlu0 %464 }
 0x17c   : > { %412 = vst.msk [vmem:[#allocation4 + $0x24] sm:$0x1] %vm306_vm5, %v410_v50  ;;  %467 = vst.msk [vmem:[#allocation4 + $0xf] sm:$0x1] %vm306_vm5, %v465_v62  ;;  %v3662_v62 = vmul.f32 %v3483_v24, %v3244_v48  ;;  %v3688_v50 = vmul.f32 %v3513_v31, %v3244_v48  ;;  %v3706_v31 = vmul.f32 %v3530_v35, %v3244_v48 }
 0x17d   : > { %v3723_v35 = vmul.f32 %v3508_v30, %v3244_v48 }
 0x17f   : > { %v443_v7 = vpop.permute.xlu1 %442  ;;  %v476_v4 = vpop.permute.xlu0 %475  ;;  %6073 = vst [vmem:[#allocation90_spill] sm:$0xff] %v3723_v35  ;;  %v3751_v35 = vmul.f32 %v3554_v41, %v3244_v48 }
 0x180   : > { %445 = vst.msk [vmem:[#allocation4 + $0xe] sm:$0x1] %vm306_vm5, %v443_v7  ;;  %478 = vst.msk [vmem:[#allocation4 + $0x27] sm:$0x1] %vm306_vm5, %v476_v4 }
 0x183   : > { %v454_v7 = vpop.permute.xlu1 %453  ;;  %v509_v4 = vpop.permute.xlu0 %508 }
 0x184   : > { %456 = vst.msk [vmem:[#allocation4 + $0x26] sm:$0x1] %vm306_vm5, %v454_v7  ;;  %511 = vst.msk [vmem:[#allocation4 + $0x11] sm:$0x1] %vm306_vm5, %v509_v4  ;;  %v3743_v7 = vmul.f32 %v3546_v39, %v3244_v48  ;;  %v3747_v4 = vmul.f32 %v3550_v40, %v3244_v48 }
 0x187   : > { %v3757_v54 = vld [vmem:[#allocation4 + $0x8] sm:$0xff]  ;;  %v487_v1 = vpop.permute.xlu1 %486  ;;  %v520_v34 = vpop.permute.xlu0 %519 }
 0x188   : > { %489 = vst.msk [vmem:[#allocation4 + $0x10] sm:$0x1] %vm306_vm5, %v487_v1  ;;  %522 = vst.msk [vmem:[#allocation4 + $0x29] sm:$0x1] %vm306_vm5, %v520_v34  ;;  %v672_v27 = vmul.f32 %v3246_v49, %v3757_v54  ;;  %v3765_v37 = vmul.f32 %v3415_v9, %v3757_v54  ;;  %v3769_v21 = vmul.f32 %v3419_v10, %v3757_v54 }
 0x189   : > { %v3773_v42 = vmul.f32 %v3426_v11, %v3757_v54  ;;  %v3777_v1 = vmul.f32 %v3430_v12, %v3757_v54  ;;  %v3781_v34 = vmul.f32 %v3434_v13, %v3757_v54  ;;  %v3785_v49 = vmul.f32 %v3438_v14, %v3757_v54 }
 0x18a   : > { %v3789_v10 = vmul.f32 %v3445_v15, %v3757_v54  ;;  %677 = vrot.lane.b32.xlu1 %v672_v27, %s6077_s2  ;;  %v5883_v11 = vrot.slane %v3765_v37, 1  ;;  %v5884_v9 = vrot.slane %v3769_v21, 2  ;;  %v819_v13 = vmul.f32 %v3254_v55, %v3757_v54 }
 0x18b   : > { %6074 = vst [vmem:[#allocation91_spill] sm:$0xff] %v3773_v42  ;;  %6075 = vst [vmem:[#allocation92_spill] sm:$0xff] %v3781_v34  ;;  %v498_v41 = vpop.permute.xlu1 %497  ;;  %v6078_v27 = vrot.slane %v3576_v47, 1  ;;  %v6079_v55 = vrot.slane %v3580_v51, 2  ;;  %v6080_v14 = vrot.slane %v3773_v42, 3 }
 0x18c   : > { %6076 = vst [vmem:[#allocation93_spill] sm:$0xff] %v3785_v49  ;;  %500 = vst.msk [vmem:[#allocation4 + $0x28] sm:$0x1] %vm306_vm5, %v498_v41  ;;  %v3819_v41 = vmul.f32 %v3449_v16, %v3757_v54 }
 0x18d   : > { %v567_v12 = vsel %vm564_vm6, %v6078_v27, %v5883_v11  ;;  %v586_v40 = vsel %vm583_vm7, %v6079_v55, %v5884_v9  ;;  %v605_v32 = vsel %vm602_vm8, %v6081_v33, %v6080_v14  ;;  %v6082_v27 = vrot.slane %v3777_v1, 4 }
 0x18e   : > { %v572_v47 = vadd.f32 %v567_v12, %v3619_v3  ;;  %v6083_v11 = vrot.slane %v3592_v57, 4  ;;  %v6084_v55 = vrot.slane %v3781_v34, 5  ;;  %v6085_v9 = vrot.slane %v3596_v58, 5  ;;  %824 = vrot.lane.b32.xlu1 %v819_v13, %s6090_s9 }
 0x18f   : > { %v6086_v14 = vrot.slane %v3785_v49, 6  ;;  %v6087_v33 = vrot.slane %v3600_v60, 6  ;;  %v6088_v12 = vrot.slane %v3789_v10, 1  ;;  %v6089_v3 = vrot.slane %v3605_v61, 1 }
 0x190   : > { %v623_v51 = vsel %vm192_vm0, %v6083_v11, %v6082_v27  ;;  %v642_v56 = vsel %vm639_vm9, %v6085_v9, %v6084_v55  ;;  %v5892_v11 = vrot.slane %v3819_v41, 2  ;;  %v3846_v58 = vmul.f32 %v3453_v17, %v3757_v54  ;;  %v531_v27 = vpop.permute.xlu1 %530 }
 0x191   : > { %v661_v42 = vsel %vm658_vm10, %v6087_v33, %v6086_v14  ;;  %v694_v57 = vsel %vm564_vm6, %v6089_v3, %v6088_v12  ;;  %v3850_v9 = vmul.f32 %v3563_v43, %v3244_v48  ;;  %v591_v60 = vadd.f32 %v586_v40, %v572_v47  ;;  %533 = vst.msk [vmem:[#allocation4 + $0x12] sm:$0x1] %vm306_vm5, %v531_v27 }
 0x192   : > { %697 = vrot.lane.b32.xlu0 %v694_v57, %s6077_s2  ;;  %v966_v14 = vmul.f32 %v3261_v59, %v3757_v54  ;;  %v3861_v33 = vmul.f32 %v3567_v44, %v3244_v48  ;;  %v3865_v40 = vmul.f32 %v3569_v45, %v3244_v48  ;;  %v3869_v47 = vmul.f32 %v3571_v46, %v3244_v48  ;;  %v6097_v57 = vld [vmem:[#allocation80_spill] sm:$0xff] }
 0x193   : > { %6091 = vst [vmem:[#allocation94_spill] sm:$0xff] %v3850_v9  ;;  %v610_v12 = vadd.f32 %v605_v32, %v591_v60  ;;  %v3873_v3 = vmul.f32 %v3582_v52, %v3244_v48  ;;  %v3877_v59 = vmul.f32 %v3584_v53, %v3244_v48  ;;  %v3881_v27 = vmul.f32 %v6097_v57, %v3244_v48  ;;  %v6101_v60 = vld [vmem:[#allocation56_spill] sm:$0xff]  ;;  %v6102_v53 = vld [vmem:[#allocation82_spill] sm:$0xff]  ;;  %v6121_v9 = vld [vmem:[#allocation81_spill] sm:$0xff] }
 0x194   : > { %6092 = vst [vmem:[#allocation95_spill] sm:$0xff] %v3861_v33  ;;  %6093 = vst [vmem:[#allocation96_spill] sm:$0xff] %v3865_v40  ;;  %v6099_v13 = vrot.slane %v3609_v63, 2  ;;  %971 = vrot.lane.b32.xlu1 %v966_v14, %s6100_s25  ;;  %v3892_v61 = vmul.f32 %v6101_v60, %v3757_v54  ;;  %v3896_v52 = vmul.f32 %v6102_v53, %v3244_v48  ;;  %v542_v46 = vpop.permute.xlu1 %541  ;;  %v6107_v63 = vrot.slane %v3613_v0, 3  ;;  %v6110_v14 = vld [vmem:[#allocation26_spill] sm:$0xff]  ;;  %v6111_v0 = vld [vmem:[#allocation58_spill] sm:$0xff] }
 0x195   : > { %6094 = vst [vmem:[#allocation97_spill] sm:$0xff] %v3869_v47  ;;  %6095 = vst [vmem:[#allocation98_spill] sm:$0xff] %v3873_v3  ;;  %v628_v57 = vadd.f32 %v623_v51, %v610_v12 }
 0x196   : > { %6096 = vst [vmem:[#allocation99_spill] sm:$0xff] %v3877_v59  ;;  %6098 = vst [vmem:[#allocation100_spill] sm:$0xff] %v3881_v27  ;;  %v716_v55 = vsel %vm583_vm7, %v6099_v13, %v5892_v11  ;;  %v6104_v11 = vld [vmem:[#allocation25_spill] sm:$0xff]  ;;  %v759_v48 = vrot.slane %v3892_v61, 4  ;;  %v1260_v13 = vmul.f32 %v6110_v14, %v3757_v54  ;;  %v3952_v14 = vmul.f32 %v3487_v25, %v3757_v54 }
 0x197   : > { %6103 = vst [vmem:[#allocation56_spill] sm:$0xff] %v3896_v52  ;;  %719 = vrot.lane.b32.xlu0 %v716_v55, %s6077_s2  ;;  %544 = vst.msk [vmem:[#allocation4 + $0x2a] sm:$0x1] %vm306_vm5, %v542_v46  ;;  %v1113_v32 = vmul.f32 %v6104_v11, %v3757_v54  ;;  %v647_v12 = vadd.f32 %v642_v56, %v628_v57  ;;  %v6105_v55 = vld [vmem:[#allocation57_spill] sm:$0xff]  ;;  %v6106_v46 = vrot.slane %v3846_v58, 3  ;;  %v3961_v52 = vld [vmem:[#allocation4 + $0x20] sm:$0xff] }
 0x198   : > { %v3910_v53 = vmul.f32 %v6105_v55, %v3757_v54  ;;  %v3925_v45 = vld [vmem:[#allocation4 + $0x10] sm:$0x3f]  ;;  %6114 = vst [vmem:[#allocation57_spill] sm:$0xff] %v3961_v52  ;;  %v6115_v27 = vrot.slane %v3623_v5, 4 }
 0x199   : > { %v738_v11 = vsel %vm602_vm8, %v6107_v63, %v6106_v46  ;;  %1118 = vrot.lane.b32.xlu1 %v1113_v32, %s6108_s26  ;;  %v3923_v51 = vadd.f32 %v661_v42, %v647_v12  ;;  %v3932_v63 = vmul.f32 %v6111_v0, %v3757_v54  ;;  %v6112_v32 = vld [vmem:[#allocation59_spill] sm:$0xff]  ;;  %v3940_v46 = vmul.f32 %v3474_v22, %v3757_v54 }
 0x19a   : > { %v3936_v61 = vmul.f32 %v6112_v32, %v3757_v54  ;;  %v3944_v42 = vmul.f32 %v3479_v23, %v3757_v54  ;;  %v3948_v12 = vmul.f32 %v3483_v24, %v3757_v54  ;;  %v688_v57 = vmul.f32 %v3445_v15, %v3925_v45 }
 0x19b   : > { %6109 = vst [vmem:[#allocation25_spill] sm:$0xff] %v3923_v51  ;;  %741 = vrot.lane.b32.xlu0 %v738_v11, %s6077_s2  ;;  %v781_v11 = vrot.slane %v3910_v53, 5  ;;  %v710_v56 = vmul.f32 %v3449_v16, %v3925_v45  ;;  %v732_v51 = vmul.f32 %v3453_v17, %v3925_v45  ;;  %v760_v59 = vsel %vm192_vm0, %v6115_v27, %v759_v48  ;;  %v6117_v17 = vld [vmem:[#allocation28_spill] sm:$0xff] }
 0x19c   : > { %v754_v53 = vmul.f32 %v6101_v60, %v3925_v45  ;;  %v776_v15 = vmul.f32 %v6105_v55, %v3925_v45  ;;  %v3973_v16 = vmul.f32 %v3491_v26, %v3757_v54  ;;  %v1407_v3 = vmul.f32 %v6117_v17, %v3757_v54  ;;  %v6124_v26 = vld [vmem:[#allocation83_spill] sm:$0xff] }
 0x19d   : > { %1265 = vrot.lane.b32.xlu1 %v1260_v13, %s6116_s5  ;;  %v803_v5 = vrot.slane %v3932_v63, 6  ;;  %v6118_v13 = vld [vmem:[#allocation61_spill] sm:$0xff]  ;;  %v695_v17 = vrot.slane %v688_v57, 1  ;;  %v717_v44 = vrot.slane %v710_v56, 2  ;;  %v739_v63 = vrot.slane %v732_v51, 3  ;;  %v6127_v56 = vld [vmem:[#allocation84_spill] sm:$0xff] }
 0x19e   : > { %v3982_v47 = vmul.f32 %v6118_v13, %v3757_v54  ;;  %v6122_v27 = vrot.slane %v6121_v9, 5  ;;  %v761_v13 = vrot.slane %v754_v53, 4  ;;  %v783_v60 = vrot.slane %v776_v15, 5  ;;  %v6130_v15 = vld [vmem:[#allocation85_spill] sm:$0xff] }
 0x19f   : > { %763 = vrot.lane.b32.xlu0 %v760_v59, %s6077_s2  ;;  %v6120_v59 = vstv %s6113_s13  ;;  %v6125_v40 = vrot.slane %v6124_v26, 6  ;;  %v6126_v57 = vrot.slane %v3936_v61, 1  ;;  %v6128_v51 = vrot.slane %v6127_v56, 1  ;;  %s5141_s13 = sld [smem:[#allocation5 + $0x5f]] }
 0x1a0   : > { %6119 = vst [vmem:[#allocation26_spill] sm:$0xff] %v3982_v47  ;;  %v1664_v33 = vmul.f32 %v6120_v59, %v3961_v52  ;;  %v782_v49 = vsel %vm639_vm9, %v6122_v27, %v781_v11  ;;  %v798_v27 = vmul.f32 %v6111_v0, %v3925_v45  ;;  %v6129_v53 = vrot.slane %v3940_v46, 2 }
 0x1a1   : > { %1412 = vrot.lane.b32.xlu1 %v1407_v3, %s6123_s23  ;;  %v804_v34 = vsel %vm658_vm10, %v6125_v40, %v803_v5  ;;  %v841_v9 = vsel %vm564_vm6, %v6128_v51, %v6126_v57  ;;  %v6131_v59 = vrot.slane %v6130_v15, 2  ;;  %v6132_v26 = vrot.slane %v3944_v42, 3  ;;  %v6133_v40 = vld [vmem:[#allocation86_spill] sm:$0xff] }
 0x1a2   : > { %v6134_v55 = vrot.slane %v6133_v40, 3  ;;  %v6135_v57 = vrot.slane %v3948_v12, 4  ;;  %v6136_v56 = vrot.slane %v3662_v62, 4  ;;  %v6137_v51 = vrot.slane %v3952_v14, 5 }
 0x1a3   : > { %785 = vrot.lane.b32.xlu0 %v782_v49, %s6077_s2  ;;  %v863_v49 = vsel %vm583_vm7, %v6131_v59, %v6129_v53  ;;  %v6138_v15 = vrot.slane %v3668_v20, 5  ;;  %v6139_v59 = vrot.slane %v3789_v10, 1  ;;  %v6141_v62 = vrot.slane %v3846_v58, 3 }
 0x1a4   : > { %v4018_v52 = vsel %vm602_vm8, %v6134_v55, %v6132_v26  ;;  %v4025_v0 = vsel %vm192_vm0, %v6136_v56, %v6135_v57  ;;  %v6140_v55 = vrot.slane %v3819_v41, 2  ;;  %v6142_v56 = vld [vmem:[#allocation65_spill] sm:$0xff]  ;;  %v4049_v20 = vsel %vm192_vm0, %v759_v48, %v761_v13  ;;  %v6147_v13 = vld [vmem:[#allocation62_spill] sm:$0xff] }
 0x1a5   : > { %v4032_v53 = vsel %vm639_vm9, %v6138_v15, %v6137_v51  ;;  %v696_v40 = vsel %vm564_vm6, %v6139_v59, %v695_v17  ;;  %v740_v57 = vsel %vm602_vm8, %v6141_v62, %v739_v63  ;;  %v4045_v3 = vmul.f32 %v6142_v56, %v3757_v54  ;;  %1669 = vrot.lane.b32.xlu1 %v1664_v33, %s6077_s2 }
 0x1a6   : > { %v718_v26 = vsel %vm583_vm7, %v6140_v55, %v717_v44  ;;  %v4052_v10 = vsel %vm639_vm9, %v781_v11, %v783_v60  ;;  %v6143_v41 = vrot.slane %v3973_v16, 6  ;;  %v6144_v44 = vrot.slane %v3672_v19, 6 }
 0x1a7   : > { %v835_v17 = vmul.f32 %v6112_v32, %v3925_v45  ;;  %807 = vrot.lane.b32.xlu0 %v804_v34, %s6077_s2  ;;  %v805_v63 = vrot.slane %v798_v27, 6  ;;  %v6145_v33 = vrot.slane %v3982_v47, 1  ;;  %v6146_v48 = vrot.slane %v3676_v18, 1  ;;  %v6148_v32 = vld [vmem:[#allocation63_spill] sm:$0xff]  ;;  %v6149_v27 = vld [vmem:[#allocation66_spill] sm:$0xff]  ;;  %v6153_v47 = vld [vmem:[#allocation69_spill] sm:$0xff] }
 0x1a8   : > { %v4059_v58 = vsel %vm658_vm10, %v6144_v44, %v6143_v41  ;;  %v4073_v60 = vmul.f32 %v6147_v13, %v3757_v54  ;;  %v1075_v19 = vrot.slane %v4045_v3, 5  ;;  %v857_v51 = vmul.f32 %v3474_v22, %v3925_v45  ;;  %v6150_v18 = vld [vmem:[#allocation67_spill] sm:$0xff]  ;;  %v6152_v41 = vld [vmem:[#allocation68_spill] sm:$0xff] }
 0x1a9   : > { %v4069_v11 = vsel %vm564_vm6, %v6146_v48, %v6145_v33  ;;  %v4080_v34 = vmul.f32 %v6148_v32, %v3757_v54  ;;  %v1091_v15 = vmul.f32 %v6149_v27, %v3757_v54  ;;  %v4086_v59 = vmul.f32 %v6150_v18, %v3757_v54  ;;  %699 = vrot.lane.b32.xlu1 %v696_v40, %s6077_s2 }
 0x1aa   : > { %v879_v55 = vmul.f32 %v3479_v23, %v3925_v45  ;;  %v4092_v3 = vmul.f32 %v3508_v30, %v3757_v54  ;;  %v6151_v22 = vrot.slane %v3688_v50, 5  ;;  %v4101_v44 = vmul.f32 %v6152_v41, %v3757_v54 }
 0x1ab   : > { %v842_v33 = vrot.slane %v835_v17, 1  ;;  %v4106_v48 = vmul.f32 %v3483_v24, %v3925_v45  ;;  %v1097_v23 = vrot.slane %v1091_v15, 6  ;;  %v1134_v30 = vrot.slane %v4086_v59, 1  ;;  %844 = vrot.lane.b32.xlu0 %v841_v9, %s6090_s9  ;;  %v6161_v59 = vld [vmem:[#allocation71_spill] sm:$0xff] }
 0x1ac   : > { %v4097_v62 = vsel %vm639_vm9, %v6151_v22, %v1075_v19  ;;  %v4111_v50 = vsel %vm658_vm10, %v803_v5, %v805_v63  ;;  %v1156_v32 = vrot.slane %v4101_v44, 2  ;;  %v1172_v40 = vmul.f32 %v6153_v47, %v3757_v54 }
 0x1ad   : > { %v864_v17 = vrot.slane %v857_v51, 2  ;;  %v6154_v24 = vrot.slane %v3694_v8, 6  ;;  %v6155_v9 = vrot.slane %v3698_v28, 1  ;;  %v886_v63 = vrot.slane %v879_v55, 3  ;;  %721 = vrot.lane.b32.xlu1 %v718_v26, %s6077_s2 }
 0x1ae   : > { %v6157_v44 = vrot.slane %v3702_v29, 2  ;;  %v1178_v51 = vrot.slane %v1172_v40, 3  ;;  %v6159_v8 = vrot.slane %v3936_v61, 1  ;;  %v4145_v13 = vmul.f32 %v6161_v59, %v3757_v54 }
 0x1af   : > { %v4121_v15 = vsel %vm658_vm10, %v6154_v24, %v1097_v23  ;;  %v4126_v5 = vsel %vm564_vm6, %v6155_v9, %v1134_v30  ;;  %v6160_v9 = vld [vmem:[#allocation70_spill] sm:$0xff]  ;;  %866 = vrot.lane.b32.xlu0 %v863_v49, %s6090_s9  ;;  %v6162_v29 = vrot.slane %v3706_v31, 3  ;;  %v1070_v61 = vmul.f32 %v6142_v56, %v3925_v45 }
 0x1b0   : > { %6156 = vst [vmem:[#allocation58_spill] sm:$0xff] %v4126_v5  ;;  %v4132_v22 = vsel %vm583_vm7, %v6157_v44, %v1156_v32  ;;  %v4138_v24 = vsel %vm564_vm6, %v6159_v8, %v842_v33  ;;  %v1194_v55 = vmul.f32 %v6160_v9, %v3757_v54  ;;  %v4157_v33 = vmul.f32 %v3542_v38, %v3757_v54 }
 0x1b1   : > { %6158 = vst [vmem:[#allocation59_spill] sm:$0xff] %v4132_v22  ;;  %v4151_v26 = vsel %vm602_vm8, %v6162_v29, %v1178_v51  ;;  %v1092_v40 = vmul.f32 %v6149_v27, %v3925_v45  ;;  %v6164_v44 = vrot.slane %v4073_v60, 2  ;;  %v6165_v8 = vrot.slane %v3680_v6, 2  ;;  %743 = vrot.lane.b32.xlu1 %v740_v57, %s6077_s2 }
 0x1b2   : > { %6163 = vst [vmem:[#allocation28_spill] sm:$0xff] %v4151_v26  ;;  %v6166_v31 = vrot.slane %v3940_v46, 2  ;;  %v1200_v56 = vrot.slane %v1194_v55, 4  ;;  %v5914_v28 = vrot.slane %v4145_v13, 5  ;;  %v1077_v26 = vrot.slane %v1070_v61, 5  ;;  %v6168_v55 = vld [vmem:[#allocation88_spill] sm:$0xff] }
 0x1b3   : > { %v4166_v49 = vsel %vm583_vm7, %v6165_v8, %v6164_v44  ;;  %v5912_v22 = vrot.slane %v4157_v33, 6  ;;  %v1099_v5 = vrot.slane %v1092_v40, 6  ;;  %v4177_v27 = vmul.f32 %v3546_v39, %v3757_v54  ;;  %v6170_v40 = vld [vmem:[#allocation89_spill] sm:$0xff]  ;;  %888 = vrot.lane.b32.xlu0 %v4018_v52, %s6090_s9  ;;  %v6174_v52 = vld [vmem:[#allocation72_spill] sm:$0xff] }
 0x1b4   : > { %v4171_v29 = vsel %vm583_vm7, %v6166_v31, %v864_v17  ;;  %v6167_v6 = vrot.slane %v3944_v42, 3  ;;  %v4187_v17 = vmul.f32 %v3487_v25, %v3925_v45  ;;  %v6169_v61 = vrot.slane %v6168_v55, 4 }
 0x1b5   : > { %v6171_v8 = vrot.slane %v6170_v40, 5  ;;  %v4204_v42 = vsel %vm639_vm9, %v1075_v19, %v1077_v26  ;;  %v6172_v25 = vrot.slane %v3739_v2, 6  ;;  %v4214_v31 = vsel %vm658_vm10, %v1097_v23, %v1099_v5  ;;  %v6175_v2 = vld [vmem:[#allocation73_spill] sm:$0xff]  ;;  %v6178_v40 = vld [vmem:[#allocation74_spill] sm:$0xff]  ;;  %765 = vrot.lane.b32.xlu1 %v4049_v20, %s6077_s2 }
 0x1b6   : > { %v4183_v46 = vsel %vm602_vm8, %v6167_v6, %v886_v63  ;;  %v4192_v44 = vsel %vm192_vm0, %v6169_v61, %v1200_v56  ;;  %v5913_v6 = vrot.slane %v4177_v27, 1  ;;  %v1129_v55 = vmul.f32 %v6150_v18, %v3925_v45 }
 0x1b7   : > { %v4199_v57 = vsel %vm639_vm9, %v6171_v8, %v5914_v28  ;;  %v4211_v63 = vsel %vm658_vm10, %v6172_v25, %v5912_v22  ;;  %v4221_v61 = vmul.f32 %v6174_v52, %v3757_v54  ;;  %v1151_v19 = vmul.f32 %v6152_v41, %v3925_v45  ;;  %910 = vrot.lane.b32.xlu0 %v4025_v0, %s6090_s9 }
 0x1b8   : > { %6173 = vst [vmem:[#allocation81_spill] sm:$0xff] %v4211_v63  ;;  %v4227_v26 = vmul.f32 %v6175_v2, %v3757_v54  ;;  %v6176_v23 = vrot.slane %v3743_v7, 1  ;;  %v1173_v18 = vmul.f32 %v6153_v47, %v3925_v45  ;;  %v4240_v8 = vmul.f32 %v6178_v40, %v3757_v54 }
 0x1b9   : > { %v1195_v41 = vmul.f32 %v6160_v9, %v3925_v45  ;;  %v1136_v25 = vrot.slane %v1129_v55, 1  ;;  %v5917_v22 = vrot.slane %v4221_v61, 2  ;;  %v1158_v7 = vrot.slane %v1151_v19, 2  ;;  %787 = vrot.lane.b32.xlu1 %v4052_v10, %s6077_s2 }
 0x1ba   : > { %v4234_v5 = vsel %vm564_vm6, %v6176_v23, %v5913_v6  ;;  %v5916_v23 = vrot.slane %v4227_v26, 3  ;;  %v1180_v47 = vrot.slane %v1173_v18, 3  ;;  %v5915_v6 = vrot.slane %v4240_v8, 4 }
 0x1bb   : > { %6177 = vst [vmem:[#allocation83_spill] sm:$0xff] %v4234_v5  ;;  %v1202_v28 = vrot.slane %v1195_v41, 4  ;;  %v6179_v5 = vld [vmem:[#allocation49_spill] sm:$0xff]  ;;  %v4254_v9 = vsel %vm564_vm6, %v1134_v30, %v1136_v25  ;;  %v6180_v20 = vrot.slane %v3747_v4, 2  ;;  %v4264_v19 = vsel %vm583_vm7, %v1156_v32, %v1158_v7  ;;  %v6185_v41 = vld [vmem:[#allocation50_spill] sm:$0xff]  ;;  %v6187_v7 = vld [vmem:[#allocation52_spill] sm:$0xff]  ;;  %932 = vrot.lane.b32.xlu0 %v4032_v53, %s6090_s9 }
 0x1bc   : > { %v552_v63 = vmul.f32 %v6179_v5, %v3757_v54  ;;  %v6181_v0 = vrot.slane %v3751_v35, 3  ;;  %v4274_v30 = vsel %vm602_vm8, %v1178_v51, %v1180_v47  ;;  %v6182_v4 = vrot.slane %v3755_v36, 4  ;;  %v6186_v35 = vld [vmem:[#allocation51_spill] sm:$0xff]  ;;  %v6188_v36 = vld [vmem:[#allocation53_spill] sm:$0xff] }
 0x1bd   : > { %v4261_v55 = vsel %vm583_vm7, %v6180_v20, %v5917_v22  ;;  %v4284_v32 = vsel %vm192_vm0, %v1200_v56, %v1202_v28  ;;  %v560_v25 = vmul.f32 %v6185_v41, %v3925_v45  ;;  %v579_v51 = vmul.f32 %v6186_v35, %v3925_v45  ;;  %v6190_v56 = vld [vmem:[#allocation55_spill] sm:$0xff]  ;;  %809 = vrot.lane.b32.xlu1 %v4111_v50, %s6077_s2 }
 0x1be   : > { %v4271_v18 = vsel %vm602_vm8, %v6181_v0, %v5916_v23  ;;  %v4281_v5 = vsel %vm192_vm0, %v6182_v4, %v5915_v6  ;;  %6184 = vst [vmem:[#allocation85_spill] sm:$0xff] %v4284_v32  ;;  %v598_v47 = vmul.f32 %v6187_v7, %v3925_v45  ;;  %v617_v20 = vmul.f32 %v6188_v36, %v3925_v45  ;;  %v6189_v0 = vld [vmem:[#allocation54_spill] sm:$0xff] }
 0x1bf   : > { %6183 = vst [vmem:[#allocation84_spill] sm:$0xff] %v4281_v5  ;;  %v635_v4 = vmul.f32 %v6189_v0, %v3925_v45  ;;  %v568_v28 = vrot.slane %v560_v25, 1  ;;  %v654_v41 = vmul.f32 %v6190_v56, %v3925_v45  ;;  %v4304_v10 = vmul.f32 %v3563_v43, %v3757_v54  ;;  %954 = vrot.lane.b32.xlu0 %v4059_v58, %s6090_s9 }
 0x1c0   : > { %v1217_v35 = vmul.f32 %v6161_v59, %v3925_v45  ;;  %v587_v7 = vrot.slane %v579_v51, 2  ;;  %v606_v6 = vrot.slane %v598_v47, 3  ;;  %v624_v36 = vrot.slane %v617_v20, 4  ;;  %v6193_v51 = vld [vmem:[#allocation91_spill] sm:$0xff] }
 0x1c1   : > { %v643_v23 = vrot.slane %v635_v4, 5  ;;  %v6191_v0 = vrot.slane %v3765_v37, 1  ;;  %v662_v53 = vrot.slane %v654_v41, 6  ;;  %v5918_v25 = vrot.slane %v4304_v10, 5  ;;  %846 = vrot.lane.b32.xlu1 %v4138_v24, %s6090_s9 }
 0x1c2   : > { %v1224_v5 = vrot.slane %v1217_v35, 5  ;;  %v6192_v32 = vrot.slane %v3769_v21, 2  ;;  %v6194_v47 = vrot.slane %v6193_v51, 3  ;;  %v6195_v37 = vrot.slane %v3777_v1, 4 }
 0x1c3   : > { %v569_v22 = vsel %vm564_vm6, %v6191_v0, %v568_v28  ;;  %v6196_v28 = vld [vmem:[#allocation92_spill] sm:$0xff]  ;;  %v6203_v1 = vrot.slane %v4145_v13, 5  ;;  %v1239_v0 = vmul.f32 %v3542_v38, %v3925_v45  ;;  %991 = vrot.lane.b32.xlu0 %v4069_v11, %s6100_s25  ;;  %v6210_v24 = vrot.slane %v4157_v33, 6 }
 0x1c4   : > { %v573_v56 = vadd.f32 %v569_v22, %v552_v63  ;;  %v588_v59 = vsel %vm583_vm7, %v6192_v32, %v587_v7  ;;  %v607_v20 = vsel %vm602_vm8, %v6194_v47, %v606_v6  ;;  %v625_v4 = vsel %vm192_vm0, %v6195_v37, %v624_v36  ;;  %v6198_v22 = vld [vmem:[#allocation93_spill] sm:$0xff]  ;;  %v6200_v32 = vld [vmem:[#allocation94_spill] sm:$0xff]  ;;  %v6204_v36 = vld [vmem:[#allocation75_spill] sm:$0xff] }
 0x1c5   : > { %v6197_v41 = vrot.slane %v6196_v28, 5  ;;  %v6199_v63 = vrot.slane %v6198_v22, 6  ;;  %v6201_v35 = vrot.slane %v6200_v32, 5  ;;  %v4341_v7 = vsel %vm639_vm9, %v6203_v1, %v1224_v5  ;;  %v6206_v37 = vld [vmem:[#allocation77_spill] sm:$0xff]  ;;  %v6208_v1 = vld [vmem:[#allocation95_spill] sm:$0xff]  ;;  %868 = vrot.lane.b32.xlu1 %v4171_v29, %s6090_s9  ;;  %v6222_v29 = vld [vmem:[#allocation82_spill] sm:$0xff] }
 0x1c6   : > { %v592_v58 = vadd.f32 %v588_v59, %v573_v56  ;;  %v1276_v47 = vmul.f32 %v3546_v39, %v3925_v45  ;;  %v4355_v13 = vmul.f32 %v6206_v37, %v3757_v54  ;;  %v1298_v5 = vmul.f32 %v6174_v52, %v3925_v45  ;;  %v6207_v56 = vld [vmem:[#allocation78_spill] sm:$0xff] }
 0x1c7   : > { %v644_v50 = vsel %vm639_vm9, %v6197_v41, %v643_v23  ;;  %v663_v21 = vsel %vm658_vm10, %v6199_v63, %v662_v53  ;;  %v4336_v6 = vsel %vm639_vm9, %v6201_v35, %v5918_v25  ;;  %v1385_v23 = vmul.f32 %v6204_v36, %v3757_v54  ;;  %v6205_v53 = vld [vmem:[#allocation76_spill] sm:$0xff]  ;;  %1013 = vrot.lane.b32.xlu0 %v4166_v49, %s6100_s25 }
 0x1c8   : > { %6202 = vst [vmem:[#allocation86_spill] sm:$0xff] %v4336_v6  ;;  %v4349_v51 = vmul.f32 %v6205_v53, %v3757_v54  ;;  %v4361_v59 = vmul.f32 %v6207_v56, %v3757_v54  ;;  %v611_v38 = vadd.f32 %v607_v20, %v592_v58  ;;  %v1246_v41 = vrot.slane %v1239_v0, 6  ;;  %v6211_v58 = vld [vmem:[#allocation96_spill] sm:$0xff] }
 0x1c9   : > { %v1391_v28 = vrot.slane %v1385_v23, 6  ;;  %v1283_v39 = vrot.slane %v1276_v47, 1  ;;  %v1450_v63 = vrot.slane %v4355_v13, 2  ;;  %v1305_v32 = vrot.slane %v1298_v5, 2  ;;  %v6217_v5 = vld [vmem:[#allocation98_spill] sm:$0xff]  ;;  %890 = vrot.lane.b32.xlu1 %v4183_v46, %s6090_s9 }
 0x1ca   : > { %v1428_v22 = vrot.slane %v4349_v51, 1  ;;  %v1472_v52 = vrot.slane %v4361_v59, 3  ;;  %v629_v35 = vadd.f32 %v625_v4, %v611_v38  ;;  %v6209_v25 = vrot.slane %v6208_v1, 6  ;;  %v6214_v4 = vld [vmem:[#allocation97_spill] sm:$0xff] }
 0x1cb   : > { %v4378_v20 = vsel %vm658_vm10, %v6210_v24, %v1246_v41  ;;  %v6212_v23 = vrot.slane %v6211_v58, 1  ;;  %v6213_v0 = vrot.slane %v4177_v27, 1  ;;  %v6215_v47 = vrot.slane %v6214_v4, 2 }
 0x1cc   : > { %v4373_v6 = vsel %vm658_vm10, %v6209_v25, %v1391_v28  ;;  %v6216_v33 = vrot.slane %v4221_v61, 2  ;;  %v6218_v59 = vrot.slane %v6217_v5, 3  ;;  %v648_v27 = vadd.f32 %v644_v50, %v629_v35 }
 0x1cd   : > { %v4383_v11 = vsel %vm564_vm6, %v6212_v23, %v1428_v22  ;;  %v4388_v51 = vsel %vm564_vm6, %v6213_v0, %v1283_v39  ;;  %v4393_v25 = vsel %vm583_vm7, %v6215_v47, %v1450_v63  ;;  %v1320_v41 = vmul.f32 %v6175_v2, %v3925_v45  ;;  %v6220_v39 = vld [vmem:[#allocation79_spill] sm:$0xff] }
 0x1ce   : > { %v4398_v13 = vsel %vm583_vm7, %v6216_v33, %v1305_v32  ;;  %v4403_v38 = vsel %vm602_vm8, %v6218_v59, %v1472_v52  ;;  %v1488_v1 = vmul.f32 %v6220_v39, %v3757_v54  ;;  %v1342_v61 = vmul.f32 %v6178_v40, %v3925_v45  ;;  %v6221_v32 = vld [vmem:[#allocation80_spill] sm:$0xff]  ;;  %v6224_v59 = vld [vmem:[#allocation87_spill] sm:$0xff] }
 0x1cf   : > { %6219 = vst [vmem:[#allocation65_spill] sm:$0xff] %v4403_v38  ;;  %v1510_v24 = vmul.f32 %v6221_v32, %v3757_v54  ;;  %v1364_v58 = vmul.f32 %v3563_v43, %v3925_v45  ;;  %v1532_v50 = vmul.f32 %v6222_v29, %v3757_v54  ;;  %v1386_v2 = vmul.f32 %v6204_v36, %v3925_v45  ;;  %v6227_v36 = vld [vmem:[#allocation99_spill] sm:$0xff] }
 0x1d0   : > { %v4423_v35 = vadd.f32 %v663_v21, %v648_v27  ;;  %v1327_v23 = vrot.slane %v1320_v41, 3  ;;  %v1494_v0 = vrot.slane %v1488_v1, 4  ;;  %v1349_v40 = vrot.slane %v1342_v61, 4 }
 0x1d1   : > { %v1516_v4 = vrot.slane %v1510_v24, 5  ;;  %v1371_v47 = vrot.slane %v1364_v58, 5  ;;  %v1538_v49 = vrot.slane %v1532_v50, 6  ;;  %v1393_v33 = vrot.slane %v1386_v2, 6  ;;  %v6233_v50 = vld [vmem:[#allocation56_spill] sm:$0xff] }
 0x1d2   : > { %v6223_v5 = vrot.slane %v4080_v34, 3  ;;  %v6225_v38 = vrot.slane %v6224_v59, 3  ;;  %v6226_v54 = vrot.slane %v4227_v26, 3  ;;  %v6228_v27 = vrot.slane %v6227_v36, 4 }
 0x1d3   : > { %v6229_v1 = vrot.slane %v4240_v8, 4  ;;  %v6232_v26 = vrot.slane %v4304_v10, 5  ;;  %v6234_v2 = vrot.slane %v6233_v50, 6  ;;  %v4464_v8 = vsel %vm658_vm10, %v1391_v28, %v1393_v33 }
 0x1d4   : > { %v1032_v43 = vsel %vm602_vm8, %v6225_v38, %v6223_v5  ;;  %v4435_v21 = vsel %vm602_vm8, %v6226_v54, %v1327_v23  ;;  %v4440_v41 = vsel %vm192_vm0, %v6228_v27, %v1494_v0  ;;  %v6230_v38 = vld [vmem:[#allocation100_spill] sm:$0xff]  ;;  %v6236_v59 = vrot.slane %v4106_v48, 4 }
 0x1d5   : > { %v4445_v61 = vsel %vm192_vm0, %v6229_v1, %v1349_v40  ;;  %1035 = vrot.lane.b32.xlu0 %v1032_v43, %s6100_s25  ;;  %v6231_v24 = vrot.slane %v6230_v38, 5  ;;  %v4456_v58 = vsel %vm639_vm9, %v6232_v26, %v1371_v47  ;;  %v4461_v23 = vsel %vm658_vm10, %v6234_v2, %v1538_v49  ;;  %v6235_v40 = vld [vmem:[#allocation90_spill] sm:$0xff]  ;;  %v6238_v27 = vld [vmem:[#allocation60_spill] sm:$0xff] }
 0x1d6   : > { %v1052_v5 = vrot.slane %v6235_v40, 4  ;;  %v6237_v43 = vrot.slane %v3948_v12, 4  ;;  %v1423_v10 = vmul.f32 %v6205_v53, %v3925_v45  ;;  %v1445_v47 = vmul.f32 %v6206_v37, %v3925_v45 }
 0x1d7   : > { %v4451_v46 = vsel %vm639_vm9, %v6231_v24, %v1516_v4  ;;  %v930_v36 = vrot.slane %v4187_v17, 5  ;;  %v945_v28 = vmul.f32 %v6238_v27, %v3925_v45  ;;  %v1467_v33 = vmul.f32 %v6207_v56, %v3925_v45  ;;  %v6240_v24 = vld [vmem:[#allocation61_spill] sm:$0xff] }
 0x1d8   : > { %v909_v54 = vsel %vm192_vm0, %v6237_v43, %v6236_v59  ;;  %v1489_v48 = vmul.f32 %v6220_v39, %v3925_v45  ;;  %v6239_v12 = vrot.slane %v4092_v3, 4  ;;  %v1430_v53 = vrot.slane %v1423_v10, 1 }
 0x1d9   : > { %912 = vrot.lane.b32.xlu1 %v909_v54, %s6090_s9  ;;  %v1452_v38 = vrot.slane %v1445_v47, 2  ;;  %v1474_v17 = vrot.slane %v1467_v33, 3  ;;  %v982_v26 = vmul.f32 %v6240_v24, %v3925_v45  ;;  %v6241_v50 = vrot.slane %v3952_v14, 5 }
 0x1da   : > { %v1054_v1 = vsel %vm192_vm0, %v1052_v5, %v6239_v12  ;;  %v1496_v37 = vrot.slane %v1489_v48, 4  ;;  %v4491_v56 = vsel %vm564_vm6, %v1428_v22, %v1430_v53  ;;  %v952_v40 = vrot.slane %v945_v28, 6  ;;  %v6246_v28 = vld [vmem:[#allocation63_spill] sm:$0xff]  ;;  %v6247_v48 = vld [vmem:[#allocation58_spill] sm:$0xff] }
 0x1db   : > { %1057 = vrot.lane.b32.xlu0 %v1054_v1, %s6100_s25  ;;  %v4494_v39 = vsel %vm583_vm7, %v1450_v63, %v1452_v38  ;;  %v931_v2 = vsel %vm639_vm9, %v6241_v50, %v930_v36  ;;  %v4500_v5 = vsel %vm602_vm8, %v1472_v52, %v1474_v17  ;;  %v1511_v22 = vmul.f32 %v6221_v32, %v3925_v45  ;;  %v6249_v1 = vld [vmem:[#allocation64_spill] sm:$0xff]  ;;  %v6250_v38 = vld [vmem:[#allocation59_spill] sm:$0xff] }
 0x1dc   : > { %v4503_v59 = vsel %vm192_vm0, %v1494_v0, %v1496_v37  ;;  %v1533_v63 = vmul.f32 %v6222_v29, %v3925_v45  ;;  %v6242_v54 = vrot.slane %v3973_v16, 6  ;;  %v989_v10 = vrot.slane %v982_v26, 1  ;;  %v6243_v0 = vld [vmem:[#allocation62_spill] sm:$0xff] }
 0x1dd   : > { %934 = vrot.lane.b32.xlu1 %v931_v2, %s6090_s9  ;;  %v1518_v14 = vrot.slane %v1511_v22, 5  ;;  %v1004_v47 = vmul.f32 %v6243_v0, %v3925_v45  ;;  %v1026_v33 = vmul.f32 %v6246_v28, %v3925_v45  ;;  %v1048_v53 = vmul.f32 %v6249_v1, %v3925_v45 }
 0x1de   : > { %v1540_v43 = vrot.slane %v1533_v63, 6  ;;  %v953_v52 = vsel %vm658_vm10, %v6242_v54, %v952_v40  ;;  %v6251_v17 = vrot.slane %v4080_v34, 3  ;;  %v6253_v50 = vrot.slane %v4092_v3, 4  ;;  %v6254_v3 = vld [vmem:[#allocation81_spill] sm:$0xff] }
 0x1df   : > { %1079 = vrot.lane.b32.xlu0 %v4097_v62, %s6100_s25  ;;  %v4519_v32 = vsel %vm639_vm9, %v1516_v4, %v1518_v14  ;;  %v6244_v62 = vld [vmem:[#allocation26_spill] sm:$0xff]  ;;  %v1011_v27 = vrot.slane %v1004_v47, 2  ;;  %v4534_v4 = vpop.permute.xlu0 %675  ;;  %v1055_v24 = vrot.slane %v1048_v53, 4  ;;  %v4634_v54 = vstv %s2694_s27  ;;  %s5148_s27 = sld [smem:[#allocation5 + $0x36]] }
 0x1e0   : > { %v4522_v29 = vsel %vm658_vm10, %v1538_v49, %v1540_v43  ;;  %v6245_v36 = vrot.slane %v6244_v62, 1  ;;  %v6248_v49 = vrot.slane %v4073_v60, 2  ;;  %v6252_v60 = vld [vmem:[#allocation28_spill] sm:$0xff]  ;;  %v4652_v47 = vstv %s2695_s11  ;;  %s5155_s11 = sld [smem:[#allocation5 + $0x31]] }
 0x1e1   : > { %956 = vrot.lane.b32.xlu1 %v953_v52, %s6090_s9  ;;  %v1056_v45 = vsel %vm192_vm0, %v6253_v50, %v1055_v24  ;;  %v4669_v28 = vstv %s2696_s30  ;;  %s5166_s30 = sld [smem:[#allocation5 + $0x38]] }
 0x1e2   : > { %v990_v16 = vsel %vm564_vm6, %v6245_v36, %v989_v10  ;;  %v1012_v12 = vsel %vm583_vm7, %v6248_v49, %v1011_v27 }
 0x1e3   : > { %1101 = vrot.lane.b32.xlu0 %v4121_v15, %s6100_s25  ;;  %v1033_v15 = vrot.slane %v1026_v33, 3  ;;  %v4548_v26 = vpop.permute.xlu0 %822 }
 0x1e5   : > { %993 = vrot.lane.b32.xlu1 %v990_v16, %s6100_s25  ;;  %v1034_v37 = vsel %vm602_vm8, %v6251_v17, %v1033_v15 }
 0x1e7   : > { %1138 = vrot.lane.b32.xlu0 %v6247_v48, %s6108_s26  ;;  %v4558_v34 = vpop.permute.xlu0 %969  ;;  %v6261_v48 = vld [vmem:[#allocation25_spill] sm:$0xff] }
 0x1e8   : > { %v681_v49 = vadd.f32 %v4534_v4, %v6261_v48 }
 0x1e9   : > { %1015 = vrot.lane.b32.xlu1 %v1012_v12, %s6100_s25 }
 0x1eb   : > { %1160 = vrot.lane.b32.xlu0 %v6250_v38, %s6108_s26  ;;  %v4566_v2 = vpop.permute.xlu0 %1116 }
 0x1ed   : > { %1037 = vrot.lane.b32.xlu1 %v1034_v37, %s6100_s25 }
 0x1ef   : > { %1182 = vrot.lane.b32.xlu0 %v6252_v60, %s6108_s26  ;;  %v4574_v40 = vpop.permute.xlu0 %1263 }
 0x1f1   : > { %1059 = vrot.lane.b32.xlu1 %v1056_v45, %s6100_s25 }
 0x1f3   : > { %1204 = vrot.lane.b32.xlu0 %v4192_v44, %s6108_s26  ;;  %v6255_v44 = vld [vmem:[#allocation83_spill] sm:$0xff] }
 0x1f5   : > { %1081 = vrot.lane.b32.xlu1 %v4204_v42, %s6100_s25  ;;  %v6256_v42 = vld [vmem:[#allocation85_spill] sm:$0xff] }
 0x1f7   : > { %1226 = vrot.lane.b32.xlu0 %v4199_v57, %s6108_s26  ;;  %v4582_v57 = vpop.permute.xlu0 %1410 }
 0x1f9   : > { %1103 = vrot.lane.b32.xlu1 %v4214_v31, %s6100_s25  ;;  %v6257_v31 = vld [vmem:[#allocation84_spill] sm:$0xff] }
 0x1fb   : > { %1248 = vrot.lane.b32.xlu0 %v6254_v3, %s6108_s26 }
 0x1fd   : > { %1140 = vrot.lane.b32.xlu1 %v4254_v9, %s6108_s26  ;;  %v4590_v9 = vpop.permute.xlu1 %677 }
 0x1ff   : > { %1285 = vrot.lane.b32.xlu0 %v6255_v44, %s6116_s5  ;;  %v4709_v44 = vstv %s2698_s14  ;;  %s5176_s14 = sld [smem:[#allocation5 + $0x46]] }
 0x201   : > { %1162 = vrot.lane.b32.xlu1 %v4264_v19, %s6108_s26  ;;  %v4592_v19 = vpop.permute.xlu0 %1667 }
 0x203   : > { %1307 = vrot.lane.b32.xlu0 %v4261_v55, %s6116_s5  ;;  %v6258_v55 = vld [vmem:[#allocation86_spill] sm:$0xff] }
 0x205   : > { %1184 = vrot.lane.b32.xlu1 %v4274_v30, %s6108_s26  ;;  %v4598_v30 = vpop.permute.xlu1 %824  ;;  %v698_v22 = vpop.permute.xlu0 %697 }
 0x206   : > { %v703_v38 = vadd.f32 %v698_v22, %v681_v49 }
 0x207   : > { %1329 = vrot.lane.b32.xlu0 %v4271_v18, %s6116_s5 }
 0x209   : > { %1206 = vrot.lane.b32.xlu1 %v6256_v42, %s6108_s26  ;;  %v4604_v18 = vpop.permute.xlu1 %971  ;;  %v720_v63 = vpop.permute.xlu0 %719 }
 0x20a   : > { %v725_v24 = vadd.f32 %v720_v63, %v703_v38 }
 0x20b   : > { %1351 = vrot.lane.b32.xlu0 %v6257_v31, %s6116_s5 }
 0x20d   : > { %1228 = vrot.lane.b32.xlu1 %v4341_v7, %s6108_s26  ;;  %v4610_v7 = vpop.permute.xlu1 %1118  ;;  %v742_v14 = vpop.permute.xlu0 %741 }
 0x20f   : > { %1373 = vrot.lane.b32.xlu0 %v6258_v55, %s6116_s5 }
 0x211   : > { %1250 = vrot.lane.b32.xlu1 %v4378_v20, %s6108_s26  ;;  %v4616_v20 = vpop.permute.xlu1 %1265 }
 0x213   : > { %1395 = vrot.lane.b32.xlu0 %v4373_v6, %s6116_s5  ;;  %v764_v6 = vpop.permute.xlu0 %763 }
 0x215   : > { %1287 = vrot.lane.b32.xlu1 %v4388_v51, %s6116_s5  ;;  %v6259_v51 = vld [vmem:[#allocation65_spill] sm:$0xff] }
 0x217   : > { %1432 = vrot.lane.b32.xlu0 %v4383_v11, %s6123_s23  ;;  %v4622_v11 = vpop.permute.xlu1 %1412  ;;  %v4624_v43 = vpop.permute.xlu0 %785 }
 0x219   : > { %1309 = vrot.lane.b32.xlu1 %v4398_v13, %s6116_s5 }
 0x21b   : > { %1454 = vrot.lane.b32.xlu0 %v4393_v25, %s6123_s23  ;;  %v4630_v25 = vpop.permute.xlu1 %1669  ;;  %v4632_v13 = vpop.permute.xlu0 %807 }
 0x21d   : > { %1331 = vrot.lane.b32.xlu1 %v4435_v21, %s6116_s5  ;;  %v6260_v21 = vld [vmem:[#allocation57_spill] sm:$0xff] }
 0x21e   : > { %v4640_v52 = vmul.f32 %v4634_v54, %v6260_v21  ;;  %v4679_v33 = vmul.f32 %v4669_v28, %v6260_v21  ;;  %v4719_v55 = vmul.f32 %v4709_v44, %v6260_v21 }
 0x21f   : > { %1476 = vrot.lane.b32.xlu0 %v6259_v51, %s6123_s23  ;;  %v4650_v0 = vpop.permute.xlu0 %844 }
 0x220   : > { %v1726_v4 = vrot.slane %v4679_v33, 3 }
 0x221   : > { %1353 = vrot.lane.b32.xlu1 %v4445_v61, %s6116_s5  ;;  %v4644_v61 = vpop.permute.xlu1 %699 }
 0x223   : > { %1498 = vrot.lane.b32.xlu0 %v4440_v41, %s6123_s23  ;;  %v4646_v41 = vld [vmem:[#allocation4 + $0x18] sm:$0xff]  ;;  %v4667_v27 = vpop.permute.xlu0 %866 }
 0x224   : > { %v1677_v10 = vmul.f32 %v4646_v41, %v4634_v54  ;;  %v1698_v16 = vmul.f32 %v4646_v41, %v4652_v47  ;;  %v1719_v1 = vmul.f32 %v4646_v41, %v4669_v28 }
 0x225   : > { %1375 = vrot.lane.b32.xlu1 %v4456_v58, %s6116_s5  ;;  %v1684_v58 = vrot.slane %v4640_v52, 1  ;;  %v4663_v62 = vpop.permute.xlu1 %721 }
 0x226   : > { %v1683_v36 = vrot.slane %v1677_v10, 1  ;;  %v1704_v15 = vrot.slane %v1698_v16, 2  ;;  %v1725_v50 = vrot.slane %v1719_v1, 3 }
 0x227   : > { %1520 = vrot.lane.b32.xlu0 %v4451_v46, %s6123_s23  ;;  %v4659_v46 = vmul.f32 %v4652_v47, %v6260_v21  ;;  %v4688_v53 = vpop.permute.xlu0 %888 }
 0x228   : > { %v1727_v42 = vsel %vm602_vm8, %v1725_v50, %v1726_v4 }
 0x229   : > { %1397 = vrot.lane.b32.xlu1 %v4464_v8, %s6116_s5  ;;  %v1685_v8 = vsel %vm564_vm6, %v1683_v36, %v1684_v58  ;;  %v4684_v12 = vpop.permute.xlu1 %743  ;;  %v4728_v36 = vstv %s2699_s4  ;;  %s5183_s4 = sld [smem:[#allocation5 + $0x4d]] }
 0x22a   : > { %v4741_v48 = vmul.f32 %v4728_v36, %v6260_v21  ;;  %v1782_v1 = vmul.f32 %v4646_v41, %v4728_v36 }
 0x22b   : > { %1542 = vrot.lane.b32.xlu0 %v4461_v23, %s6123_s23  ;;  %v1705_v23 = vrot.slane %v4659_v46, 2  ;;  %v4707_v3 = vpop.permute.xlu0 %910 }
 0x22d   : > { %1434 = vrot.lane.b32.xlu1 %v4491_v56, %s6123_s23  ;;  %v4690_v56 = vstv %s2697_s18  ;;  %v1706_v17 = vsel %vm583_vm7, %v1704_v15, %v1705_v23  ;;  %v4703_v60 = vpop.permute.xlu1 %765  ;;  %s5169_s18 = sld [smem:[#allocation5 + $0x3f]] }
 0x22e   : > { %v4700_v37 = vmul.f32 %v4690_v56, %v6260_v21  ;;  %v1740_v45 = vmul.f32 %v4646_v41, %v4690_v56 }
 0x22f   : > { %1688 = vrot.lane.b32.xlu0 %v1685_v8, %s6077_s2  ;;  %v4726_v10 = vpop.permute.xlu0 %932 }
 0x230   : > { %v1747_v31 = vrot.slane %v4700_v37, 4  ;;  %v1746_v51 = vrot.slane %v1740_v45, 4  ;;  %v1788_v45 = vrot.slane %v1782_v1, 6 }
 0x231   : > { %1456 = vrot.lane.b32.xlu1 %v4494_v39, %s6123_s23  ;;  %v747_v39 = vadd.f32 %v742_v14, %v725_v24  ;;  %v4722_v63 = vpop.permute.xlu1 %787  ;;  %v1761_v14 = vmul.f32 %v4646_v41, %v4709_v44 }
 0x232   : > { %v1748_v8 = vsel %vm192_vm0, %v1746_v51, %v1747_v31 }
 0x233   : > { %1709 = vrot.lane.b32.xlu0 %v1706_v17, %s6077_s2  ;;  %v769_v22 = vadd.f32 %v764_v6, %v747_v39  ;;  %v1768_v6 = vrot.slane %v4719_v55, 5  ;;  %v1767_v15 = vrot.slane %v1761_v14, 5 }
 0x235   : > { %1478 = vrot.lane.b32.xlu1 %v4500_v5, %s6123_s23  ;;  %v4730_v5 = vld [vmem:[#allocation4 + $0x28] sm:$0x3f]  ;;  %v791_v16 = vadd.f32 %v4624_v43, %v769_v22  ;;  %v4747_v43 = vpop.permute.xlu1 %809  ;;  %v1769_v17 = vsel %vm639_vm9, %v1767_v15, %v1768_v6 }
 0x236   : > { %v1679_v38 = vmul.f32 %v4634_v54, %v4730_v5  ;;  %v1700_v22 = vmul.f32 %v4652_v47, %v4730_v5 }
 0x237   : > { %1730 = vrot.lane.b32.xlu0 %v1727_v42, %s6077_s2  ;;  %v813_v49 = vadd.f32 %v4632_v13, %v791_v16  ;;  %v1789_v13 = vrot.slane %v4741_v48, 6  ;;  %v4767_v42 = vstv %s2701_s16  ;;  %s5194_s16 = sld [smem:[#allocation5 + $0x54]] }
 0x238   : > { %v1686_v54 = vrot.slane %v1679_v38, 1  ;;  %v4779_v51 = vmul.f32 %v4767_v42, %v6260_v21  ;;  %v1817_v47 = vmul.f32 %v4646_v41, %v4767_v42  ;;  %v1707_v1 = vrot.slane %v1700_v22, 2 }
 0x239   : > { %1500 = vrot.lane.b32.xlu1 %v4503_v59, %s6123_s23  ;;  %v4751_v59 = vpop.permute.xlu0 %954  ;;  %v828_v24 = vadd.f32 %v4548_v26, %v813_v49  ;;  %v4763_v50 = vpop.permute.xlu1 %846  ;;  %v1802_v26 = vstv %s4743_s0  ;;  %s5197_s0 = sld [smem:[#allocation5 + $0x5b]] }
 0x23a   : > { %v1687_v15 = vsel %vm564_vm6, %v1684_v58, %v1686_v54  ;;  %v4816_v54 = vstv %s2703_s17  ;;  %s5212_s17 = sld [smem:[#allocation5 + $0x44]] }
 0x23b   : > { %1751 = vrot.lane.b32.xlu0 %v1748_v8, %s6077_s2  ;;  %v850_v14 = vadd.f32 %v4650_v0, %v828_v24  ;;  %v4787_v8 = vstv %s2702_s10  ;;  %v1721_v0 = vmul.f32 %v4669_v28, %v4730_v5  ;;  %v1823_v28 = vrot.slane %v1817_v47, 1  ;;  %s5205_s10 = sld [smem:[#allocation5 + $0x3d]] }
 0x23c   : > { %v4806_v24 = vmul.f32 %v4787_v8, %v6260_v21 }
 0x23d   : > { %1522 = vrot.lane.b32.xlu1 %v4519_v32, %s6123_s23  ;;  %v4765_v39 = vpop.permute.xlu0 %991  ;;  %v1790_v32 = vsel %vm658_vm10, %v1788_v45, %v1789_v13  ;;  %v4783_v16 = vpop.permute.xlu1 %868  ;;  %v872_v38 = vadd.f32 %v4667_v27, %v850_v14  ;;  %v682_v45 = vadd.f32 %v4590_v9, %v4423_v35  ;;  %v1838_v27 = vmul.f32 %v4646_v41, %v4787_v8 }
 0x23e   : > { %v1708_v35 = vsel %vm583_vm7, %v1705_v23, %v1707_v1  ;;  %v1728_v9 = vrot.slane %v1721_v0, 3  ;;  %v4846_v1 = vstv %s4789_s19  ;;  %s5223_s19 = sld [smem:[#allocation5 + $0x4b]] }
 0x23f   : > { %1772 = vrot.lane.b32.xlu0 %v1769_v17, %s6077_s2  ;;  %v1824_v17 = vrot.slane %v4779_v51, 1  ;;  %v894_v52 = vadd.f32 %v4688_v53, %v872_v38  ;;  %v704_v22 = vadd.f32 %v4644_v61, %v682_v45  ;;  %v1742_v53 = vmul.f32 %v4690_v56, %v4730_v5 }
 0x240   : > { %v1845_v61 = vrot.slane %v4806_v24, 2  ;;  %v4864_v33 = vmul.f32 %v4846_v1, %v6260_v21 }
 0x241   : > { %1544 = vrot.lane.b32.xlu1 %v4522_v29, %s6123_s23  ;;  %v4791_v49 = vpop.permute.xlu0 %1013  ;;  %v1803_v29 = vmul.f32 %v4646_v41, %v1802_v26  ;;  %v4812_v58 = vpop.permute.xlu1 %890  ;;  %v916_v14 = vadd.f32 %v4707_v3, %v894_v52  ;;  %v1825_v47 = vsel %vm564_vm6, %v1823_v28, %v1824_v17  ;;  %v726_v46 = vadd.f32 %v4663_v62, %v704_v22 }
 0x242   : > { %v1844_v3 = vrot.slane %v1838_v27, 2  ;;  %v1729_v62 = vsel %vm602_vm8, %v1726_v4, %v1728_v9  ;;  %v1749_v45 = vrot.slane %v1742_v53, 4  ;;  %v4873_v22 = vstv %s4818_s28  ;;  %s5229_s28 = sld [smem:[#allocation5 + $0x52]] }
 0x243   : > { %1793 = vrot.lane.b32.xlu0 %v1790_v32, %s6077_s2  ;;  %v938_v23 = vadd.f32 %v4726_v10, %v916_v14  ;;  %v748_v0 = vadd.f32 %v4684_v12, %v726_v46  ;;  %v1763_v10 = vmul.f32 %v4709_v44, %v4730_v5  ;;  %v4889_v37 = vmul.f32 %v4873_v22, %v6260_v21 }
 0x244   : > { %v1846_v28 = vsel %vm583_vm7, %v1844_v3, %v1845_v61  ;;  %v1750_v53 = vsel %vm192_vm0, %v1747_v31, %v1749_v45 }
 0x245   : > { %1690 = vrot.lane.b32.xlu1 %v1687_v15, %s6077_s2  ;;  %v1859_v15 = vmul.f32 %v4646_v41, %v4816_v54  ;;  %v960_v52 = vadd.f32 %v4751_v59, %v938_v23  ;;  %v770_v4 = vadd.f32 %v4703_v60, %v748_v0  ;;  %v1880_v59 = vmul.f32 %v4646_v41, %v4846_v1 }
 0x246   : > { %v1770_v14 = vrot.slane %v1763_v10, 5  ;;  %v1784_v60 = vmul.f32 %v4728_v36, %v4730_v5  ;;  %v1908_v10 = vrot.slane %v4889_v37, 5 }
 0x247   : > { %1807 = vrot.lane.b32.xlu0 %v1803_v29, %s6090_s9  ;;  %v4821_v32 = vpop.permute.xlu0 %1035  ;;  %v4836_v29 = vmul.f32 %v4816_v54, %v6260_v21  ;;  %v1865_v27 = vrot.slane %v1859_v15, 3  ;;  %v1886_v36 = vrot.slane %v1880_v59, 4 }
 0x248   : > { %v1771_v15 = vsel %vm639_vm9, %v1768_v6, %v1770_v14  ;;  %v1791_v0 = vrot.slane %v1784_v60, 6 }
 0x249   : > { %1711 = vrot.lane.b32.xlu1 %v1708_v35, %s6077_s2  ;;  %v1866_v12 = vrot.slane %v4836_v29, 3  ;;  %v792_v35 = vadd.f32 %v4722_v63, %v770_v4  ;;  %v1887_v63 = vrot.slane %v4864_v33, 4 }
 0x24a   : > { %v1792_v59 = vsel %vm658_vm10, %v1789_v13, %v1791_v0 }
 0x24b   : > { %1828 = vrot.lane.b32.xlu0 %v1825_v47, %s6090_s9  ;;  %v4841_v56 = vpop.permute.xlu1 %912  ;;  %v975_v47 = vadd.f32 %v4558_v34, %v960_v52  ;;  %v1867_v46 = vsel %vm602_vm8, %v1865_v27, %v1866_v12  ;;  %v814_v31 = vadd.f32 %v4747_v43, %v792_v35  ;;  %v1901_v34 = vmul.f32 %v4646_v41, %v4873_v22 }
 0x24c   : > { %v1888_v45 = vsel %vm192_vm0, %v1886_v36, %v1887_v63  ;;  %v4949_v36 = vstv %s4905_s20  ;;  %s5447_s20 = sld [smem:[#allocation5 + $0x3e]] }
 0x24d   : > { %v1058_v38 = vpop.permute.xlu0 %1057  ;;  %1732 = vrot.lane.b32.xlu1 %v1729_v62, %s6077_s2  ;;  %v4903_v62 = vstv %s4854_s1  ;;  %v997_v43 = vadd.f32 %v4765_v39, %v975_v47  ;;  %v829_v6 = vadd.f32 %v4598_v30, %v814_v31  ;;  %v1907_v39 = vrot.slane %v1901_v34, 5  ;;  %s5235_s1 = sld [smem:[#allocation5 + $0x59]] }
 0x24e   : > { %v4915_v55 = vmul.f32 %v4903_v62, %v6260_v21  ;;  %v1922_v4 = vmul.f32 %v4646_v41, %v4903_v62  ;;  %v1819_v30 = vmul.f32 %v4767_v42, %v4730_v5  ;;  %v1804_v42 = vmul.f32 %v1802_v26, %v6260_v21 }
 0x24f   : > { %1849 = vrot.lane.b32.xlu0 %v1846_v28, %s6090_s9  ;;  %v4868_v44 = vpop.permute.xlu1 %934  ;;  %v1019_v52 = vadd.f32 %v4791_v49, %v997_v43  ;;  %v1909_v35 = vsel %vm639_vm9, %v1907_v39, %v1908_v10  ;;  %v851_v14 = vadd.f32 %v4763_v50, %v829_v6  ;;  %v1840_v50 = vmul.f32 %v4787_v8, %v4730_v5  ;;  %v4983_v39 = vld [vmem:[#allocation4 + $0x20] sm:$0xff] }
 0x250   : > { %v1928_v60 = vrot.slane %v1922_v4, 6  ;;  %v1826_v31 = vrot.slane %v1819_v30, 1  ;;  %v4959_v26 = vmul.f32 %v4949_v36, %v6260_v21  ;;  %v4971_v43 = vstv %s4924_s3  ;;  %s5458_s3 = sld [smem:[#allocation5 + $0x45]] }
 0x251   : > { %v1080_v9 = vpop.permute.xlu0 %1079  ;;  %1753 = vrot.lane.b32.xlu1 %v1750_v53, %s6077_s2  ;;  %v1041_v49 = vadd.f32 %v4821_v32, %v1019_v52  ;;  %v1929_v53 = vrot.slane %v4915_v55, 6  ;;  %v1942_v32 = vstv %s4897_s22  ;;  %v873_v47 = vadd.f32 %v4783_v16, %v851_v14  ;;  %s5438_s22 = sld [smem:[#allocation5 + $0x37]] }
 0x252   : > { %v1943_v8 = vmul.f32 %v4646_v41, %v1942_v32  ;;  %v1861_v6 = vmul.f32 %v4816_v54, %v4730_v5  ;;  %v1964_v52 = vrot.slane %v4959_v26, 1  ;;  %v4987_v4 = vmul.f32 %v4983_v39, %v4971_v43 }
 0x253   : > { %1870 = vrot.lane.b32.xlu0 %v1867_v46, %s6090_s9  ;;  %v4893_v23 = vpop.permute.xlu1 %956  ;;  %v1063_v48 = vadd.f32 %v1058_v38, %v1041_v49  ;;  %v1930_v34 = vsel %vm658_vm10, %v1928_v60, %v1929_v53  ;;  %v895_v16 = vadd.f32 %v4812_v58, %v873_v47  ;;  %v1827_v58 = vsel %vm564_vm6, %v1824_v17, %v1826_v31 }
 0x254   : > { %v1978_v54 = vmul.f32 %v4646_v41, %v4971_v43  ;;  %v4997_v30 = vstv %s4945_s6  ;;  %v1868_v14 = vrot.slane %v1861_v6, 3  ;;  %v1985_v60 = vrot.slane %v4987_v4, 2  ;;  %s5469_s6 = sld [smem:[#allocation5 + $0x4c]] }
 0x255   : > { %v1102_v3 = vpop.permute.xlu0 %1101  ;;  %1774 = vrot.lane.b32.xlu1 %v1771_v15, %s6077_s2  ;;  %v1085_v38 = vadd.f32 %v1080_v9, %v1063_v48  ;;  %v1957_v9 = vmul.f32 %v4646_v41, %v4949_v36  ;;  %v917_v21 = vadd.f32 %v4841_v56, %v895_v16  ;;  %v5020_v47 = vstv %s4973_s7  ;;  %s5482_s7 = sld [smem:[#allocation5 + $0x53]] }
 0x256   : > { %v1903_v16 = vmul.f32 %v4873_v22, %v4730_v5  ;;  %v5037_v29 = vmul.f32 %v4983_v39, %v5020_v47 }
 0x257   : > { %1891 = vrot.lane.b32.xlu0 %v1888_v45, %s6090_s9  ;;  %v4920_v28 = vpop.permute.xlu1 %993  ;;  %v1107_v15 = vadd.f32 %v1102_v3, %v1085_v38  ;;  %v1847_v3 = vrot.slane %v1840_v50, 2  ;;  %v939_v56 = vadd.f32 %v4868_v44, %v917_v21  ;;  %v1869_v38 = vsel %vm602_vm8, %v1866_v12, %v1868_v14 }
 0x258   : > { %v1910_v6 = vrot.slane %v1903_v16, 5  ;;  %v1959_v16 = vmul.f32 %v4949_v36, %v4730_v5 }
 0x259   : > { %v1139_v27 = vpop.permute.xlu0 %1138  ;;  %1795 = vrot.lane.b32.xlu1 %v1792_v59, %s6077_s2  ;;  %v1122_v51 = vadd.f32 %v4566_v2, %v1107_v15  ;;  %v1963_v59 = vrot.slane %v1957_v9, 1  ;;  %v961_v49 = vadd.f32 %v4893_v23, %v939_v56  ;;  %v1848_v44 = vsel %vm583_vm7, %v1845_v61, %v1847_v3  ;;  %s5122_s2 = sld [smem:[#allocation5 + $0x51]] }
 0x25a   : > { %v1882_v2 = vmul.f32 %v4846_v1, %v4730_v5  ;;  %v5014_v23 = vmul.f32 %v4983_v39, %v4997_v30  ;;  %v1999_v1 = vmul.f32 %v4646_v41, %v4997_v30  ;;  %v5043_v9 = vstv %s4999_s8  ;;  %s5614_s8 = sld [smem:[#allocation5 + $0x61]] }
 0x25b   : > { %1912 = vrot.lane.b32.xlu0 %v1909_v35, %s6090_s9  ;;  %v4939_v13 = vpop.permute.xlu1 %1015  ;;  %v1965_v48 = vsel %vm564_vm6, %v1963_v59, %v1964_v52  ;;  %v1144_v24 = vadd.f32 %v1139_v27, %v1122_v51  ;;  %v976_v31 = vadd.f32 %v4604_v18, %v961_v49  ;;  %v1924_v56 = vmul.f32 %v4903_v62, %v4730_v5 }
 0x25c   : > { %v2006_v18 = vrot.slane %v5014_v23, 3  ;;  %v2005_v22 = vrot.slane %v1999_v1, 3  ;;  %v2027_v59 = vrot.slane %v5037_v29, 4  ;;  %v2041_v49 = vmul.f32 %v4646_v41, %v5043_v9 }
 0x25d   : > { %v1161_v46 = vpop.permute.xlu0 %1160  ;;  %1809 = vrot.lane.b32.xlu1 %v1804_v42, %s6090_s9  ;;  %v1984_v42 = vrot.slane %v1978_v54, 2  ;;  %v998_v21 = vadd.f32 %v4920_v28, %v976_v31  ;;  %v5058_v28 = vmul.f32 %v4983_v39, %v5043_v9  ;;  %v1911_v14 = vsel %vm639_vm9, %v1908_v10, %v1910_v6 }
 0x25e   : > { %v1166_v27 = vadd.f32 %v1161_v46, %v1144_v24  ;;  %v2020_v46 = vmul.f32 %v4646_v41, %v5020_v47  ;;  %v2007_v51 = vsel %vm602_vm8, %v2005_v22, %v2006_v18  ;;  %v2047_v1 = vrot.slane %v2041_v49, 5 }
 0x25f   : > { %1933 = vrot.lane.b32.xlu0 %v1930_v34, %s6090_s9  ;;  %v4963_v0 = vpop.permute.xlu1 %1037  ;;  %v1889_v34 = vrot.slane %v1882_v2, 4  ;;  %v1986_v15 = vsel %vm583_vm7, %v1984_v42, %v1985_v60  ;;  %v1020_v33 = vadd.f32 %v4939_v13, %v998_v21  ;;  %v1931_v2 = vrot.slane %v1924_v56, 6 }
 0x260   : > { %v2026_v54 = vrot.slane %v2020_v46, 4  ;;  %v2048_v42 = vrot.slane %v5058_v28, 5  ;;  %v1966_v36 = vrot.slane %v1959_v16, 1  ;;  %v5103_v22 = vstv %s2715_s21  ;;  %s6266_s21 = sld [smem:[#allocation22_spill]] }
 0x261   : > { %v1183_v45 = vpop.permute.xlu0 %1182  ;;  %1830 = vrot.lane.b32.xlu1 %v1827_v58, %s6090_s9  ;;  %v1890_v3 = vsel %vm192_vm0, %v1887_v63, %v1889_v34  ;;  %v1932_v34 = vsel %vm658_vm10, %v1929_v53, %v1931_v2  ;;  %v1944_v53 = vmul.f32 %v4983_v39, %v1942_v32  ;;  %v1980_v46 = vmul.f32 %v4971_v43, %v4730_v5 }
 0x262   : > { %v1188_v12 = vadd.f32 %v1183_v45, %v1166_v27  ;;  %v2028_v24 = vsel %vm192_vm0, %v2026_v54, %v2027_v59  ;;  %v2049_v27 = vsel %vm639_vm9, %v2047_v1, %v2048_v42  ;;  %v5114_v32 = vmul.f32 %v4983_v39, %v5103_v22 }
 0x263   : > { %1947 = vrot.lane.b32.xlu0 %v1943_v8, %s6100_s25  ;;  %v4992_v17 = vpop.permute.xlu1 %1059  ;;  %v2097_v43 = vmul.f32 %v4646_v41, %v5103_v22  ;;  %v2001_v54 = vmul.f32 %v4997_v30, %v4730_v5 }
 0x265   : > { %v1205_v35 = vpop.permute.xlu0 %1204  ;;  %1851 = vrot.lane.b32.xlu1 %v1848_v44, %s6090_s9  ;;  %v2103_v2 = vrot.slane %v2097_v43, 1  ;;  %v2008_v1 = vrot.slane %v2001_v54, 3 }
 0x266   : > { %v1210_v45 = vadd.f32 %v1205_v35, %v1188_v12  ;;  %v1042_v35 = vadd.f32 %v4963_v0, %v1020_v33  ;;  %p6269_p4 = scmp.ne.s32.totalorder %s6266_s21, 0 }
 0x267   : > { %1968 = vrot.lane.b32.xlu0 %v1965_v48, %s6100_s25  ;;  %v1082_v61 = vpop.permute.xlu1 %1081  ;;  %v5069_v48 = vstv %s5028_s12 }
 0x268   : > { %v5078_v0 = vmul.f32 %v4983_v39, %v5069_v48  ;;  %v1064_v37 = vadd.f32 %v4992_v17, %v1042_v35  ;;  %v2062_v31 = vmul.f32 %v4646_v41, %v5069_v48  ;;  %v2104_v35 = vrot.slane %v5114_v32, 1 }
 0x269   : > { %v1227_v50 = vpop.permute.xlu0 %1226  ;;  %1872 = vrot.lane.b32.xlu1 %v1869_v38, %s6090_s9 }
 0x26a   : > { %v1232_v63 = vadd.f32 %v1227_v50, %v1210_v45  ;;  %v1086_v50 = vadd.f32 %v1082_v61, %v1064_v37  ;;  %v2068_v12 = vrot.slane %v2062_v31, 6  ;;  %v5120_v45 = vstv %s2716_s24 }
 0x26b   : > { %1989 = vrot.lane.b32.xlu0 %v1986_v15, %s6100_s25  ;;  %v1104_v8 = vpop.permute.xlu1 %1103  ;;  %v2069_v15 = vrot.slane %v5078_v0, 6  ;;  %v2118_v30 = vmul.f32 %v4646_v41, %v5120_v45  ;;  %v2022_v31 = vmul.f32 %v5020_v47, %v4730_v5  ;;  %v5285_v0 = vstv %s5212_s17 }
 0x26c   : > { %v1108_v61 = vadd.f32 %v1104_v8, %v1086_v50 }
 0x26d   : > { %v1249_v58 = vpop.permute.xlu0 %1248  ;;  %1893 = vrot.lane.b32.xlu1 %v1890_v3, %s6090_s9  ;;  %v2070_v8 = vsel %vm658_vm10, %v2068_v12, %v2069_v15  ;;  %v2009_v12 = vsel %vm602_vm8, %v2006_v18, %v2008_v1 }
 0x26e   : > { %v1254_v13 = vadd.f32 %v1249_v58, %v1232_v63  ;;  %v2082_v58 = vstv %s5080_s15  ;;  %v1123_v3 = vadd.f32 %v4610_v7, %v1108_v61  ;;  %v1967_v7 = vsel %vm564_vm6, %v1964_v52, %v1966_v36 }
 0x26f   : > { %2010 = vrot.lane.b32.xlu0 %v2007_v51, %s6100_s25  ;;  %v1141_v62 = vpop.permute.xlu1 %1140  ;;  %v2083_v33 = vmul.f32 %v4646_v41, %v2082_v58  ;;  %v1987_v63 = vrot.slane %v1980_v46, 2 }
 0x270   : > { %v1269_v17 = vadd.f32 %v4574_v40, %v1254_v13  ;;  %v5146_v13 = vstv %s5101_s29 }
 0x271   : > { %v1286_v44 = vpop.permute.xlu0 %1285  ;;  %1914 = vrot.lane.b32.xlu1 %v1911_v14, %s6090_s9  ;;  %v1145_v14 = vadd.f32 %v1141_v62, %v1123_v3  ;;  %v1988_v62 = vsel %vm583_vm7, %v1985_v60, %v1987_v63  ;;  %v5164_v4 = vmul.f32 %v4983_v39, %v5146_v13  ;;  %v2139_v16 = vmul.f32 %v4646_v41, %v5146_v13 }
 0x272   : > { %v1291_v21 = vadd.f32 %v1286_v44, %v1269_v17  ;;  %v5136_v44 = vmul.f32 %v4983_v39, %v5120_v45  ;;  %v5174_v17 = vstv %s5122_s2 }
 0x273   : > { %2031 = vrot.lane.b32.xlu0 %v2028_v24, %s6100_s25  ;;  %v1163_v10 = vpop.permute.xlu1 %1162  ;;  %v2146_v46 = vrot.slane %v5164_v4, 3  ;;  %v5192_v23 = vmul.f32 %v4983_v39, %v5174_v17  ;;  %v2160_v3 = vmul.f32 %v4646_v41, %v5174_v17 }
 0x274   : > { %v1167_v24 = vadd.f32 %v1163_v10, %v1145_v14  ;;  %v2125_v10 = vrot.slane %v5136_v44, 2 }
 0x275   : > { %v1308_v38 = vpop.permute.xlu0 %1307  ;;  %1935 = vrot.lane.b32.xlu1 %v1932_v34, %s6090_s9  ;;  %s5138_s9 = sld [smem:[#allocation5 + $0x58]]  ;;  %v2124_v34 = vrot.slane %v2118_v30, 2  ;;  %v2167_v54 = vrot.slane %v5192_v23, 4 }
 0x276   : > { %v1313_v6 = vadd.f32 %v1308_v38, %v1291_v21  ;;  %v2105_v38 = vsel %vm564_vm6, %v2103_v2, %v2104_v35 }
 0x277   : > { %2052 = vrot.lane.b32.xlu0 %v2049_v27, %s6100_s25  ;;  %v1185_v55 = vpop.permute.xlu1 %1184  ;;  %v2126_v36 = vsel %vm583_vm7, %v2124_v34, %v2125_v10 }
 0x278   : > { %v1189_v60 = vadd.f32 %v1185_v55, %v1167_v24  ;;  %v2029_v55 = vrot.slane %v2022_v31, 4 }
 0x279   : > { %v1330_v40 = vpop.permute.xlu0 %1329  ;;  %1949 = vrot.lane.b32.xlu1 %v1944_v53, %s6100_s25  ;;  %v2043_v53 = vmul.f32 %v5043_v9, %v4730_v5 }
 0x27a   : > { %v1335_v49 = vadd.f32 %v1330_v40, %v1313_v6 }
 0x27b   : > { %2073 = vrot.lane.b32.xlu0 %v2070_v8, %s6100_s25  ;;  %v1207_v56 = vpop.permute.xlu1 %1206  ;;  %v2145_v8 = vrot.slane %v2139_v16, 3  ;;  %v5203_v6 = vstv %s5138_s9  ;;  %v5266_v16 = vstv %s5194_s16 }
 0x27c   : > { %v1211_v27 = vadd.f32 %v1207_v56, %v1189_v60  ;;  %v5221_v29 = vmul.f32 %v4983_v39, %v5203_v6  ;;  %v2181_v14 = vmul.f32 %v4646_v41, %v5203_v6 }
 0x27d   : > { %v1352_v51 = vpop.permute.xlu0 %1351  ;;  %1970 = vrot.lane.b32.xlu1 %v1967_v7, %s6100_s25  ;;  %v2147_v63 = vsel %vm602_vm8, %v2145_v8, %v2146_v46  ;;  %v5296_v8 = vstv %s5229_s28 }
 0x27e   : > { %v1357_v26 = vadd.f32 %v1352_v51, %v1335_v49  ;;  %v2030_v51 = vsel %vm192_vm0, %v2027_v59, %v2029_v55  ;;  %v5227_v59 = vstv %s5141_s13  ;;  %v2166_v49 = vrot.slane %v2160_v3, 4  ;;  %s6267_s13 = sld [smem:[#allocation103_spill]] }
 0x27f   : > { %2087 = vrot.lane.b32.xlu0 %v2083_v33, %s6108_s26  ;;  %v1229_v52 = vpop.permute.xlu1 %1228  ;;  %v2050_v33 = vrot.slane %v2043_v53, 5  ;;  %v5251_v28 = vmul.f32 %v4983_v39, %v5227_v59  ;;  %v2202_v34 = vmul.f32 %v4646_v41, %v5227_v59  ;;  %v2099_v53 = vmul.f32 %v5103_v22, %v4730_v5 }
 0x280   : > { %v1233_v18 = vadd.f32 %v1229_v52, %v1211_v27  ;;  %v1554_v52 = vstv %s5155_s11  ;;  %v2168_v31 = vsel %vm192_vm0, %v2166_v49, %v2167_v54  ;;  %v5269_v27 = vstv %s5197_s0 }
 0x281   : > { %v1374_v37 = vpop.permute.xlu0 %1373  ;;  %1991 = vrot.lane.b32.xlu1 %v1988_v62, %s6100_s25  ;;  %v2051_v24 = vsel %vm639_vm9, %v2048_v42, %v2050_v33  ;;  %v5242_v62 = vstv %s5166_s30  ;;  %v5255_v42 = vstv %s5169_s18  ;;  %v5293_v22 = vstv %s5223_s19 }
 0x282   : > { %v1379_v50 = vadd.f32 %v1374_v37, %v1357_v26  ;;  %v2222_v26 = vstv %s5148_s27  ;;  %v5306_v33 = vstv %s5235_s1  ;;  %v2120_v49 = vmul.f32 %v5120_v45, %v4730_v5 }
 0x283   : > { %2108 = vrot.lane.b32.xlu0 %v2105_v38, %s6108_s26  ;;  %v1251_v47 = vpop.permute.xlu1 %1250  ;;  %v5261_v38 = vstv %s5183_s4  ;;  %v5363_v32 = vmul.f32 %v4983_v39, %v5255_v42  ;;  %v5456_v23 = vmul.f32 %v4983_v39, %v5306_v33 }
 0x284   : > { %v1255_v56 = vadd.f32 %v1251_v47, %v1233_v18  ;;  %v2187_v47 = vrot.slane %v2181_v14, 5  ;;  %s6268_s27 = smov %s6267_s13 }
 0x285   : > { %v1396_v61 = vpop.permute.xlu0 %1395  ;;  %2012 = vrot.lane.b32.xlu1 %v2009_v12, %s6100_s25  ;;  %v1585_v44 = vrot.slane %v5363_v32, 2 }
 0x286   : > { %v1401_v40 = vadd.f32 %v1396_v61, %v1379_v50  ;;  %v1270_v2 = vadd.f32 %v4616_v20, %v1255_v56  ;;  %v2188_v20 = vrot.slane %v5221_v29, 5  ;;  %v5258_v50 = vstv %s5176_s14  ;;  %s3007_s14 = smov [#allocation10]  }
 0x287   : > { %2129 = vrot.lane.b32.xlu0 %v2126_v36, %s6108_s26  ;;  %v1288_v21 = vpop.permute.xlu1 %1287  ;;  %v2208_v56 = vrot.slane %v2202_v34, 6  ;;  %v5328_v45 = vmul.f32 %v4646_v41, %v5258_v50  ;;  %v5341_v34 = vmul.f32 %v4646_v41, %v5266_v16  ;;  %s2899_s4 = sshll.u32 %s3007_s14, 4  ;;  %s2900_s4 = int_to_ptr.vmem [resolvable:$false] %s2899_s4 }
 0x288   : > { %v1416_v9 = vadd.f32 %v4582_v57, %v1401_v40  ;;  %v2064_v57 = vmul.f32 %v5069_v48, %v4730_v5  ;;  %v1292_v61 = vadd.f32 %v1288_v21, %v1270_v2  ;;  %v5277_v40 = vstv %s5205_s10  ;;  %s2901_s16 = scalar_lea.vmem %s2900_s4, 512 }
 0x289   : > { %v1433_v43 = vpop.permute.xlu0 %1432  ;;  %2033 = vrot.lane.b32.xlu1 %v2030_v51, %s6100_s25  ;;  %v2189_v18 = vsel %vm639_vm9, %v2187_v47, %v2188_v20  ;;  %v5303_v51 = vmul.f32 %v4646_v41, %v5255_v42  ;;  %v1555_v2 = vmul.f32 %v4646_v41, %v1554_v52 }
 0x28a   : > { %v1438_v7 = vadd.f32 %v1433_v43, %v1416_v9  ;;  %v2071_v37 = vrot.slane %v2064_v57, 6  ;;  %v2209_v9 = vrot.slane %v5251_v28, 6  ;;  %v2084_v43 = vmul.f32 %v4983_v39, %v2082_v58 }
 0x28b   : > { %2150 = vrot.lane.b32.xlu0 %v2147_v63, %s6108_s26  ;;  %v1310_v48 = vpop.permute.xlu1 %1309  ;;  %v2223_v63 = vmul.f32 %v4646_v41, %v2222_v26  ;;  %v1584_v47 = vrot.slane %v5303_v51, 2 }
 0x28c   : > { %v2072_v55 = vsel %vm658_vm10, %v2069_v15, %v2071_v37  ;;  %v1314_v21 = vadd.f32 %v1310_v48, %v1292_v61  ;;  %v5290_v15 = vmul.f32 %v4646_v41, %v5242_v62  ;;  %v2106_v48 = vrot.slane %v2099_v53, 1 }
 0x28d   : > { %v1455_v30 = vpop.permute.xlu0 %1454  ;;  %2054 = vrot.lane.b32.xlu1 %v2051_v24, %s6100_s25  ;;  %v2210_v58 = vsel %vm658_vm10, %v2208_v56, %v2209_v9  ;;  %v2237_v61 = vmul.f32 %v4646_v41, %v5277_v40  ;;  %v5358_v56 = vmul.f32 %v4983_v39, %v5285_v0  ;;  %v1586_v4 = vsel %vm583_vm7, %v1584_v47, %v1585_v44 }
 0x28e   : > { %v1460_v1 = vadd.f32 %v1455_v30, %v1438_v7  ;;  %v5322_v30 = vmul.f32 %v4983_v39, %v5277_v40  ;;  %v1567_v37 = vrot.slane %v5290_v15, 1  ;;  %v2107_v53 = vsel %vm564_vm6, %v2104_v35, %v2106_v48 }
 0x28f   : > { %2171 = vrot.lane.b32.xlu0 %v2168_v31, %s6108_s26  ;;  %v1332_v60 = vpop.permute.xlu1 %1331  ;;  %v5353_v15 = vmul.f32 %v4646_v41, %v5269_v27  ;;  %v1601_v35 = vrot.slane %v5328_v45, 3  ;;  %v2243_v48 = vrot.slane %v2237_v61, 1  ;;  %v2162_v45 = vmul.f32 %v5174_v17, %v4730_v5 }
 0x290   : > { %v1336_v57 = vadd.f32 %v1332_v60, %v1314_v21  ;;  %v5336_v60 = vmul.f32 %v4983_v39, %v5242_v62  ;;  %v2265_v61 = vrot.slane %v5358_v56, 2 }
 0x291   : > { %v1477_v12 = vpop.permute.xlu0 %1476  ;;  %2075 = vrot.lane.b32.xlu1 %v2072_v55, %s6100_s25  ;;  %s5397_s25 = sld [smem:[#allocation5 + $0x60]] }
 0x292   : > { %v1482_v36 = vadd.f32 %v1477_v12, %v1460_v1  ;;  %v5332_v1 = vmul.f32 %v4646_v41, %v5261_v38  ;;  %v1568_v51 = vrot.slane %v5336_v60, 1 }
 0x293   : > { %2192 = vrot.lane.b32.xlu0 %v2189_v18, %s6108_s26  ;;  %v1354_v3 = vpop.permute.xlu1 %1353  ;;  %v2141_v18 = vmul.f32 %v5146_v13, %v4730_v5 }
 0x294   : > { %v1358_v24 = vadd.f32 %v1354_v3, %v1336_v57  ;;  %v2244_v3 = vrot.slane %v5322_v30, 1  ;;  %v1618_v13 = vrot.slane %v5332_v1, 4  ;;  %v5372_v57 = vmul.f32 %v4983_v39, %v5258_v50 }
 0x295   : > { %v1499_v7 = vpop.permute.xlu0 %1498  ;;  %2089 = vrot.lane.b32.xlu1 %v2084_v43, %s6108_s26  ;;  %v2258_v43 = vmul.f32 %v4646_v41, %v5285_v0 }
 0x296   : > { %v1504_v14 = vadd.f32 %v1499_v7, %v1482_v36  ;;  %v2127_v36 = vrot.slane %v2120_v49, 2 }
 0x297   : > { %2213 = vrot.lane.b32.xlu0 %v2210_v58, %s6108_s26  ;;  %v1376_v31 = vpop.permute.xlu1 %1375 }
 0x298   : > { %v1380_v55 = vadd.f32 %v1376_v31, %v1358_v24  ;;  %v2128_v58 = vsel %vm583_vm7, %v2125_v10, %v2127_v36  ;;  %v2148_v24 = vrot.slane %v2141_v18, 3  ;;  %v2245_v31 = vsel %vm564_vm6, %v2243_v48, %v2244_v3 }
 0x299   : > { %v1521_v12 = vpop.permute.xlu0 %1520  ;;  %2110 = vrot.lane.b32.xlu1 %v2107_v53, %s6108_s26  ;;  %v5393_v10 = vmul.f32 %v4983_v39, %v5261_v38  ;;  %v1569_v53 = vsel %vm564_vm6, %v1567_v37, %v1568_v51  ;;  %v1602_v36 = vrot.slane %v5372_v57, 3  ;;  %v5405_v18 = vmul.f32 %v4983_v39, %v5266_v16 }
 0x29a   : > { %v1526_v21 = vadd.f32 %v1521_v12, %v1504_v14  ;;  %v5388_v12 = vmul.f32 %v4983_v39, %v5293_v22 }
 0x29b   : > { %2227 = vrot.lane.b32.xlu0 %v2223_v63, %s6116_s5  ;;  %v1398_v7 = vpop.permute.xlu1 %1397  ;;  %v2279_v63 = vmul.f32 %v4646_v41, %v5293_v22 }
 0x29c   : > { %v1402_v14 = vadd.f32 %v1398_v7, %v1380_v55  ;;  %v2264_v55 = vrot.slane %v2258_v43, 2  ;;  %v2149_v43 = vsel %vm602_vm8, %v2146_v46, %v2148_v24  ;;  %v1619_v46 = vrot.slane %v5393_v10, 4 }
 0x29d   : > { %v1543_v49 = vpop.permute.xlu0 %1542  ;;  %2131 = vrot.lane.b32.xlu1 %v2128_v58, %s6108_s26  ;;  %v2300_v24 = vmul.f32 %v4646_v41, %v5296_v8  ;;  %v2285_v47 = vrot.slane %v2279_v63, 3 }
 0x29e   : > { %v1548_v1 = vadd.f32 %v1543_v49, %v1526_v21  ;;  %v1417_v17 = vadd.f32 %v4622_v11, %v1402_v14  ;;  %v2169_v49 = vrot.slane %v2162_v45, 4  ;;  %v2183_v14 = vmul.f32 %v5203_v6, %v4730_v5 }
 0x29f   : > { %2248 = vrot.lane.b32.xlu0 %v2245_v31, %s6116_s5  ;;  %v1435_v7 = vpop.permute.xlu1 %1434  ;;  %v2266_v58 = vsel %vm583_vm7, %v2264_v55, %v2265_v61  ;;  %v5429_v6 = vmul.f32 %v4983_v39, %v5269_v27  ;;  %v1603_v45 = vsel %vm602_vm8, %v1601_v35, %v1602_v36  ;;  %v1636_v31 = vrot.slane %v5405_v18, 5 }
 0x2a0   : > { %v1557_v21 = vadd.f32 %v1555_v2, %v1548_v1  ;;  %v1439_v11 = vadd.f32 %v1435_v7, %v1417_v17  ;;  %v2286_v2 = vrot.slane %v5388_v12, 3  ;;  %v5421_v1 = vmul.f32 %v4983_v39, %v5296_v8 }
 0x2a1   : > { %v5407_v48 = vpop.permute.xlu0 %1688  ;;  %2152 = vrot.lane.b32.xlu1 %v2149_v43, %s6108_s26  ;;  %v2170_v7 = vsel %vm192_vm0, %v2167_v54, %v2169_v49  ;;  %v2190_v41 = vrot.slane %v2183_v14, 5  ;;  %v2204_v43 = vmul.f32 %v5227_v59, %v4730_v5  ;;  %v1620_v54 = vsel %vm192_vm0, %v1618_v13, %v1619_v46 }
 0x2a2   : > { %v1574_v37 = vadd.f32 %v1569_v53, %v1557_v21  ;;  %v2287_v63 = vsel %vm602_vm8, %v2285_v47, %v2286_v2  ;;  %v1635_v59 = vrot.slane %v5341_v34, 5  ;;  %v5467_v49 = vstv %s5397_s25 }
 0x2a3   : > { %2269 = vrot.lane.b32.xlu0 %v2266_v58, %s6116_s5  ;;  %v1457_v55 = vpop.permute.xlu1 %1456  ;;  %v1652_v14 = vrot.slane %v5353_v15, 6 }
 0x2a4   : > { %v1591_v17 = vadd.f32 %v1586_v4, %v1574_v37  ;;  %v1461_v21 = vadd.f32 %v1457_v55, %v1439_v11  ;;  %v2307_v37 = vrot.slane %v5421_v1, 4  ;;  %v1653_v11 = vrot.slane %v5429_v6, 6 }
 0x2a5   : > { %v5440_v53 = vpop.permute.xlu0 %1709  ;;  %2173 = vrot.lane.b32.xlu1 %v2170_v7, %s6108_s26  ;;  %v1637_v34 = vsel %vm639_vm9, %v1635_v59, %v1636_v31  ;;  %v2191_v7 = vsel %vm639_vm9, %v2188_v20, %v2190_v41 }
 0x2a6   : > { %v1608_v35 = vadd.f32 %v1603_v45, %v1591_v17  ;;  %v2306_v45 = vrot.slane %v2300_v24, 4  ;;  %v5472_v17 = vld [vmem:[#allocation4 + $0x18] sm:$0xff]  ;;  %v1654_v29 = vsel %vm658_vm10, %v1652_v14, %v1653_v11  ;;  %v2239_v14 = vmul.f32 %v5277_v40, %v4730_v5 }
 0x2a7   : > { %2290 = vrot.lane.b32.xlu0 %v2287_v63, %s6116_s5  ;;  %v1479_v4 = vpop.permute.xlu1 %1478  ;;  %v2321_v13 = vmul.f32 %v5472_v17, %v5306_v33  ;;  %v2211_v63 = vrot.slane %v2204_v43, 6  ;;  %v2342_v20 = vmul.f32 %v5472_v17, %v5467_v49  ;;  %v5519_v5 = vstv %s5469_s6 }
 0x2a8   : > { %v1625_v58 = vadd.f32 %v1620_v54, %v1608_v35  ;;  %v1483_v47 = vadd.f32 %v1479_v4, %v1461_v21  ;;  %v2308_v24 = vsel %vm192_vm0, %v2306_v45, %v2307_v37  ;;  %v2328_v35 = vrot.slane %v5456_v23, 5 }
 0x2a9   : > { %v1731_v55 = vpop.permute.xlu0 %1730  ;;  %2194 = vrot.lane.b32.xlu1 %v2191_v7, %s6108_s26  ;;  %v5491_v21 = vmul.f32 %v4983_v39, %v5467_v49  ;;  %v2327_v54 = vrot.slane %v2321_v13, 5  ;;  %v2212_v4 = vsel %vm658_vm10, %v2209_v9, %v2211_v63  ;;  %v5919_v7 = vstv %s5438_s22 }
 0x2aa   : > { %v1642_v15 = vadd.f32 %v1637_v34, %v1625_v58  ;;  %v2348_v28 = vrot.slane %v2342_v20, 6  ;;  %v5516_v9 = vstv %s5458_s3  ;;  %v2224_v63 = vmul.f32 %v4983_v39, %v2222_v26 }
 0x2ab   : > { %2311 = vrot.lane.b32.xlu0 %v2308_v24, %s6116_s5  ;;  %v1501_v43 = vpop.permute.xlu1 %1500  ;;  %v2329_v34 = vsel %vm639_vm9, %v2327_v54, %v2328_v35  ;;  %v5920_v13 = vrot.slane %v5491_v21, 6  ;;  %v5534_v54 = vstv %s5482_s7 }
 0x2ac   : > { %v1659_v41 = vadd.f32 %v1654_v29, %v1642_v15  ;;  %v1505_v58 = vadd.f32 %v1501_v43, %v1483_v47  ;;  %v5513_v47 = vstv %s5447_s20  ;;  %v5525_v15 = vld [vmem:[#allocation4 + $0x28] sm:$0x3f]  ;;  %v2246_v43 = vrot.slane %v2239_v14, 1 }
 0x2ad   : > { %v1752_v59 = vpop.permute.xlu0 %1751  ;;  %2215 = vrot.lane.b32.xlu1 %v2212_v4, %s6108_s26  ;;  %v1563_v24 = vmul.f32 %v5525_v15, %v5242_v62  ;;  %v1580_v29 = vmul.f32 %v5525_v15, %v5255_v42  ;;  %v2350_v26 = vsel %vm658_vm10, %v2348_v28, %v5920_v13  ;;  %v2377_v62 = vmul.f32 %v5472_v17, %v5513_v47  ;;  %s5576_s26 = sld [smem:[#allocation5 + $0x5a]] }
 0x2ae   : > { %v1673_v45 = vadd.f32 %v4592_v19, %v1659_v41  ;;  %v5545_v42 = vmul.f32 %v4983_v39, %v5513_v47  ;;  %v2398_v14 = vmul.f32 %v5472_v17, %v5516_v9  ;;  %v1631_v30 = vmul.f32 %v5525_v15, %v5266_v16 }
 0x2af   : > { %2332 = vrot.lane.b32.xlu0 %v2329_v34, %s6116_s5  ;;  %v1523_v40 = vpop.permute.xlu1 %1522  ;;  %v1570_v28 = vrot.slane %v1563_v24, 1  ;;  %v2323_v57 = vmul.f32 %v5525_v15, %v5306_v33  ;;  %v5623_v12 = vmul.f32 %v4983_v39, %v5534_v54  ;;  %v2344_v18 = vmul.f32 %v5525_v15, %v5467_v49 }
 0x2b0   : > { %v1694_v19 = vadd.f32 %v5407_v48, %v1673_v45  ;;  %v1527_v41 = vadd.f32 %v1523_v40, %v1505_v58  ;;  %v2260_v48 = vmul.f32 %v5525_v15, %v5285_v0  ;;  %v1556_v0 = vmul.f32 %v4983_v39, %v1554_v52 }
 0x2b1   : > { %v1773_v20 = vpop.permute.xlu0 %1772  ;;  %2229 = vrot.lane.b32.xlu1 %v2224_v63, %s6116_s5  ;;  %v2363_v58 = vmul.f32 %v5472_v17, %v5919_v7  ;;  %v1614_v40 = vmul.f32 %v5525_v15, %v5261_v38  ;;  %v2247_v52 = vsel %vm564_vm6, %v2244_v3, %v2246_v43  ;;  %v2281_v7 = vmul.f32 %v5525_v15, %v5293_v22 }
 0x2b2   : > { %v1715_v4 = vadd.f32 %v5440_v53, %v1694_v19  ;;  %v1597_v53 = vmul.f32 %v5525_v15, %v5258_v50  ;;  %v1587_v19 = vrot.slane %v1580_v29, 2  ;;  %v2267_v50 = vrot.slane %v2260_v48, 2 }
 0x2b3   : > { %2353 = vrot.lane.b32.xlu0 %v2350_v26, %s6116_s5  ;;  %v1545_v34 = vpop.permute.xlu1 %1544  ;;  %v2384_v24 = vrot.slane %v5545_v42, 1  ;;  %v5569_v29 = vmul.f32 %v4983_v39, %v5516_v9  ;;  %v1648_v3 = vmul.f32 %v5525_v15, %v5269_v27  ;;  %v1621_v48 = vrot.slane %v1614_v40, 4 }
 0x2b4   : > { %v1736_v45 = vadd.f32 %v1731_v55, %v1715_v4  ;;  %v1549_v26 = vadd.f32 %v1545_v34, %v1527_v41  ;;  %v2383_v55 = vrot.slane %v2377_v62, 1  ;;  %v1604_v41 = vrot.slane %v1597_v53, 3 }
 0x2b5   : > { %v1794_v63 = vpop.permute.xlu0 %1793  ;;  %2250 = vrot.lane.b32.xlu1 %v2247_v52, %s6116_s5  ;;  %v1588_v43 = vsel %vm583_vm7, %v1585_v44, %v1587_v19  ;;  %v2268_v27 = vsel %vm583_vm7, %v2265_v61, %v2267_v50  ;;  %v5598_v44 = vmul.f32 %v4983_v39, %v5519_v5  ;;  %v2404_v61 = vrot.slane %v2398_v14, 2 }
 0x2b6   : > { %v1757_v13 = vadd.f32 %v1752_v59, %v1736_v45  ;;  %v1558_v38 = vadd.f32 %v1556_v0, %v1549_v26  ;;  %v1571_v59 = vsel %vm564_vm6, %v1568_v51, %v1570_v28  ;;  %v2288_v0 = vrot.slane %v2281_v7, 3 }
 0x2b7   : > { %2367 = vrot.lane.b32.xlu0 %v2363_v58, %s6123_s23  ;;  %v5584_v4 = vpop.permute.xlu1 %1690  ;;  %v2385_v32 = vsel %vm564_vm6, %v2383_v55, %v2384_v24  ;;  %v2405_v51 = vrot.slane %v5569_v29, 2  ;;  %v1605_v7 = vsel %vm602_vm8, %v1602_v36, %v1604_v41  ;;  %v1622_v53 = vsel %vm192_vm0, %v1619_v46, %v1621_v48 }
 0x2b8   : > { %v1778_v22 = vadd.f32 %v1773_v20, %v1757_v13  ;;  %v1575_v16 = vadd.f32 %v1571_v59, %v1558_v38  ;;  %v2302_v13 = vmul.f32 %v5525_v15, %v5296_v8  ;;  %v1638_v20 = vrot.slane %v1631_v30, 5 }
 0x2b9   : > { %v1808_v62 = vpop.permute.xlu0 %1807  ;;  %2271 = vrot.lane.b32.xlu1 %v2268_v27, %s6116_s5  ;;  %v2419_v8 = vmul.f32 %v5472_v17, %v5519_v5  ;;  %v1655_v58 = vrot.slane %v1648_v3, 6  ;;  %v2289_v14 = vsel %vm602_vm8, %v2286_v2, %v2288_v0  ;;  %v2406_v10 = vsel %vm583_vm7, %v2404_v61, %v2405_v51 }
 0x2ba   : > { %v1799_v60 = vadd.f32 %v1794_v63, %v1778_v22  ;;  %v1592_v56 = vadd.f32 %v1588_v43, %v1575_v16  ;;  %v2309_v40 = vrot.slane %v2302_v13, 4  ;;  %v2426_v46 = vrot.slane %v5598_v44, 3 }
 0x2bb   : > { %2388 = vrot.lane.b32.xlu0 %v2385_v32, %s6123_s23  ;;  %v1712_v34 = vpop.permute.xlu1 %1711  ;;  %v5627_v63 = vstv %s5576_s26  ;;  %v1639_v33 = vsel %vm639_vm9, %v1636_v31, %v1638_v20  ;;  %v1656_v26 = vsel %vm658_vm10, %v1653_v11, %v1655_v58  ;;  %v2425_v50 = vrot.slane %v2419_v8, 3 }
 0x2bc   : > { %v1813_v45 = vadd.f32 %v1808_v62, %v1799_v60  ;;  %v1609_v28 = vadd.f32 %v1605_v7, %v1592_v56  ;;  %v2440_v55 = vmul.f32 %v5472_v17, %v5534_v54  ;;  %v2310_v30 = vsel %vm192_vm0, %v2307_v37, %v2309_v40 }
 0x2bd   : > { %v1829_v19 = vpop.permute.xlu0 %1828  ;;  %2292 = vrot.lane.b32.xlu1 %v2289_v14, %s6116_s5  ;;  %v2330_v3 = vrot.slane %v2323_v57, 5  ;;  %v2427_v6 = vsel %vm602_vm8, %v2425_v50, %v2426_v46  ;;  %v2447_v11 = vrot.slane %v5623_v12, 4  ;;  %v5651_v1 = vmul.f32 %v4983_v39, %v5627_v63 }
 0x2be   : > { %v1834_v36 = vadd.f32 %v1829_v19, %v1813_v45  ;;  %v1626_v2 = vadd.f32 %v1622_v53, %v1609_v28  ;;  %v2446_v59 = vrot.slane %v2440_v55, 4  ;;  %v2461_v49 = vmul.f32 %v5472_v17, %v5627_v63 }
 0x2bf   : > { %2409 = vrot.lane.b32.xlu0 %v2406_v10, %s6123_s23  ;;  %v1733_v52 = vpop.permute.xlu1 %1732  ;;  %v2331_v16 = vsel %vm639_vm9, %v2328_v35, %v2330_v3  ;;  %v2351_v62 = vrot.slane %v2344_v18, 6  ;;  %v2481_v27 = vstv %s5614_s8  ;;  %v2468_v13 = vrot.slane %v5651_v1, 5 }
 0x2c0   : > { %v1643_v38 = vadd.f32 %v1639_v33, %v1626_v2  ;;  %v2448_v0 = vsel %vm192_vm0, %v2446_v59, %v2447_v11  ;;  %v5669_v60 = vmul.f32 %v4983_v39, %v2481_v27  ;;  %v2467_v35 = vrot.slane %v2461_v49, 5 }
 0x2c1   : > { %v1850_v41 = vpop.permute.xlu0 %1849  ;;  %2313 = vrot.lane.b32.xlu1 %v2310_v30, %s6116_s5  ;;  %v2482_v32 = vmul.f32 %v5472_v17, %v2481_v27  ;;  %v6262_v61 = vrot.slane %v5491_v21, 6  ;;  %v2379_v7 = vmul.f32 %v5525_v15, %v5513_v47  ;;  %v2400_v47 = vmul.f32 %v5525_v15, %v5516_v9 }
 0x2c2   : > { %v5642_v31 = vadd.f32 %v1850_v41, %v1834_v36  ;;  %v1660_v37 = vadd.f32 %v1656_v26, %v1643_v38  ;;  %v2469_v53 = vsel %vm639_vm9, %v2467_v35, %v2468_v13  ;;  %v2421_v26 = vmul.f32 %v5525_v15, %v5519_v5 }
 0x2c3   : > { %2430 = vrot.lane.b32.xlu0 %v2427_v6, %s6123_s23  ;;  %v1754_v22 = vpop.permute.xlu1 %1753  ;;  %v2352_v8 = vsel %vm658_vm10, %v6262_v61, %v2351_v62  ;;  %v2488_v45 = vrot.slane %v2482_v32, 6  ;;  %v2386_v14 = vrot.slane %v2379_v7, 1  ;;  %v2407_v33 = vrot.slane %v2400_v47, 2 }
 0x2c4   : > { %v1674_v43 = vadd.f32 %v4630_v25, %v1660_v37  ;;  %v2428_v41 = vrot.slane %v2421_v26, 3  ;;  %v2442_v42 = vmul.f32 %v5525_v15, %v5534_v54  ;;  %v2463_v6 = vmul.f32 %v5525_v15, %v5627_v63 }
 0x2c5   : > { %v5657_v48 = vpop.permute.xlu0 %1870  ;;  %2334 = vrot.lane.b32.xlu1 %v2331_v16, %s6116_s5  ;;  %v2408_v38 = vsel %vm583_vm7, %v2405_v51, %v2407_v33  ;;  %v2484_v37 = vmul.f32 %v5525_v15, %v2481_v27 }
 0x2c6   : > { %v1695_v25 = vadd.f32 %v5584_v4, %v1674_v43  ;;  %v2489_v4 = vrot.slane %v5669_v60, 6  ;;  %v2429_v5 = vsel %vm602_vm8, %v2426_v46, %v2428_v41  ;;  %v2449_v18 = vrot.slane %v2442_v42, 4 }
 0x2c7   : > { %2451 = vrot.lane.b32.xlu0 %v2448_v0, %s6123_s23  ;;  %v1775_v23 = vpop.permute.xlu1 %1774  ;;  %v2470_v1 = vrot.slane %v2463_v6, 5  ;;  %v2491_v59 = vrot.slane %v2484_v37, 6  ;;  %v1876_v61 = vadd.f32 %v5657_v48, %v5642_v31 }
 0x2c8   : > { %v1716_v56 = vadd.f32 %v1712_v34, %v1695_v25  ;;  %v6263_v34 = vstv %s5438_s22  ;;  %v2490_v40 = vsel %vm658_vm10, %v2488_v45, %v2489_v4  ;;  %v2450_v54 = vsel %vm192_vm0, %v2447_v11, %v2449_v18 }
 0x2c9   : > { %v5674_v20 = vpop.permute.xlu0 %1891  ;;  %2355 = vrot.lane.b32.xlu1 %v2352_v8, %s6116_s5  ;;  %v2364_v28 = vmul.f32 %v4983_v39, %v6263_v34  ;;  %v2387_v39 = vsel %vm564_vm6, %v2384_v24, %v2386_v14  ;;  %v2471_v46 = vsel %vm639_vm9, %v2468_v13, %v2470_v1  ;;  %v2492_v43 = vsel %vm658_vm10, %v2489_v4, %v2491_v59  ;;  %s6264_s5 = sld [smem:[#allocation24_spill]] }
 0x2ca   : > { %v1737_v58 = vadd.f32 %v1733_v52, %v1716_v56 }
 0x2cb   : > { %2472 = vrot.lane.b32.xlu0 %v2469_v53, %s6123_s23  ;;  %v1796_v17 = vpop.permute.xlu1 %1795  ;;  %v1897_v53 = vadd.f32 %v5674_v20, %v1876_v61 }
 0x2cc   : > { %v1758_v21 = vadd.f32 %v1754_v22, %v1737_v58 }
 0x2cd   : > { %v1913_v19 = vpop.permute.xlu0 %1912  ;;  %2369 = vrot.lane.b32.xlu1 %v2364_v28, %s6123_s23 }
 0x2ce   : > { %v1779_v57 = vadd.f32 %v1775_v23, %v1758_v21  ;;  %v1918_v4 = vadd.f32 %v1913_v19, %v1897_v53 }
 0x2cf   : > { %2493 = vrot.lane.b32.xlu0 %v2490_v40, %s6123_s23  ;;  %v1810_v36 = vpop.permute.xlu1 %1809  ;;  %s2637_s12 = sshll.u32 %s6264_s5, 4  ;;  %s2517_s30 = scalar_lea.sflag [#allocation7], %s6264_s5 }
 0x2d0   : > { %v1800_v10 = vadd.f32 %v1796_v17, %v1779_v57  ;;  %s187_s15 = scalar_lea.vmem [#allocation10], %s2637_s12 }
 0x2d1   : > { %v1934_v2 = vpop.permute.xlu0 %1933  ;;  %2390 = vrot.lane.b32.xlu1 %v2387_v39, %s6123_s23  ;;  %s2530_s29 = sshll.u32 %s187_s15, 4  ;;  %s5730_s29 = int_to_ptr.vmem [resolvable:$true] %s2530_s29 }
 0x2d2   : > { %v1814_v9 = vadd.f32 %v1810_v36, %v1800_v10  ;;  %v1939_v45 = vadd.f32 %v1934_v2, %v1918_v4  ;;  %s2895_s18 = scalar_lea.vmem %s5730_s29, 256  ;;  %p2902_p9 = scmp.lt.s32.totalorder %s5730_s29, %s2900_s4 }
 0x2d3   : > { %v1831_v52 = vpop.permute.xlu1 %1830  ;;  %p2896_p1 = scmp.ne.s32.totalorder %s5730_s29, %s2895_s18  ;;  %p2903_p3 = scmp.lt.s32.totalorder %s2901_s16, %s2895_s18 }
 0x2d4   : > { %v1835_v55 = vadd.f32 %v1831_v52, %v1814_v9 }
 0x2d5   : > { %v1948_v50 = vpop.permute.xlu0 %1947  ;;  %2411 = vrot.lane.b32.xlu1 %v2408_v38, %s6123_s23  ;;  %p2897_p6 = pnand %p2896_p1, %p6269_p4  ;;  %p2904_p5 = por %p2903_p3, %p2902_p9 }
 0x2d6   : > { %v1953_v34 = vadd.f32 %v1948_v50, %v1939_v45 }
 0x2d7   : > { %v1852_v24 = vpop.permute.xlu1 %1851  ;;  %p2898_p8 = pneg %p2897_p6 }
 0x2d8   : > { %v1856_v3 = vadd.f32 %v1852_v24, %v1835_v55 }
 0x2d9   : > { %v1969_v30 = vpop.permute.xlu0 %1968  ;;  %2432 = vrot.lane.b32.xlu1 %v2429_v5, %s6123_s23  ;;  %p2905_p7 = pnand %p2904_p5, %p2898_p8 }
 0x2da   : > { %v1974_v14 = vadd.f32 %v1969_v30, %v1953_v34 }
 0x2db   : > { %v1873_v29 = vpop.permute.xlu1 %1872 }
 0x2dc   : > { %v1877_v19 = vadd.f32 %v1873_v29, %v1856_v3 }
 0x2dd   : > { %v1990_v51 = vpop.permute.xlu0 %1989  ;;  %2453 = vrot.lane.b32.xlu1 %v2450_v54, %s6123_s23 }
 0x2de   : > { %v1995_v47 = vadd.f32 %v1990_v51, %v1974_v14 }
 0x2df   : > { %v1894_v44 = vpop.permute.xlu1 %1893 }
 0x2e0   : > { %v1898_v2 = vadd.f32 %v1894_v44, %v1877_v19 }
 0x2e1   : > { %v2011_v22 = vpop.permute.xlu0 %2010  ;;  %2474 = vrot.lane.b32.xlu1 %v2471_v46, %s6123_s23 }
 0x2e2   : > { %v2016_v36 = vadd.f32 %v2011_v22, %v1995_v47 }
 0x2e3   : > { %v1915_v63 = vpop.permute.xlu1 %1914 }
 0x2e4   : > { %v1919_v41 = vadd.f32 %v1915_v63, %v1898_v2 }
 0x2e5   : > { %v2032_v49 = vpop.permute.xlu0 %2031  ;;  %2495 = vrot.lane.b32.xlu1 %v2492_v43, %s6123_s23  ;;  %s6265_s23 = sld [smem:[#allocation17_spill]] }
 0x2e6   : > { %v2037_v10 = vadd.f32 %v2032_v49, %v2016_v36 }
 0x2e7   : > { %v1936_v12 = vpop.permute.xlu1 %1935 }
 0x2e8   : > { %v1940_v30 = vadd.f32 %v1936_v12, %v1919_v41 }
 0x2e9   : > { %v2053_v11 = vpop.permute.xlu0 %2052 }
 0x2ea   : > { %v2058_v31 = vadd.f32 %v2053_v11, %v2037_v10 }
 0x2eb   : > { %v1950_v16 = vpop.permute.xlu1 %1949  ;;  %s2743_s24 = sshll.u32 %s6265_s23, 8 }
 0x2ec   : > { %v1954_v6 = vadd.f32 %v1950_v16, %v1940_v30  ;;  %s5728_s11 = scalar_lea.hbm %s6267_s13, %s2743_s24 }
 0x2ed   : > { %v2074_v62 = vpop.permute.xlu0 %2073 }
 0x2ee   : > { %v2079_v48 = vadd.f32 %v2074_v62, %v2058_v31 }
 0x2ef   : > { %v1971_v15 = vpop.permute.xlu1 %1970 }
 0x2f0   : > { %v1975_v1 = vadd.f32 %v1971_v15, %v1954_v6 }
 0x2f1   : > { %v2088_v27 = vpop.permute.xlu0 %2087 }
 0x2f2   : > { %v2093_v20 = vadd.f32 %v2088_v27, %v2079_v48 }
 0x2f3   : > { %v1992_v0 = vpop.permute.xlu1 %1991 }
 0x2f4   : > { %v1996_v46 = vadd.f32 %v1992_v0, %v1975_v1 }
 0x2f5   : > { %v2109_v60 = vpop.permute.xlu0 %2108 }
 0x2f6   : > { %v2114_v52 = vadd.f32 %v2109_v60, %v2093_v20 }
 0x2f7   : > { %v2013_v25 = vpop.permute.xlu1 %2012 }
 0x2f8   : > { %v2017_v29 = vadd.f32 %v2013_v25, %v1996_v46 }
 0x2f9   : > { %v2130_v23 = vpop.permute.xlu0 %2129 }
 0x2fa   : > { %v2135_v38 = vadd.f32 %v2130_v23, %v2114_v52 }
 0x2fb   : > { %v2034_v13 = vpop.permute.xlu1 %2033 }
 0x2fc   : > { %v2038_v43 = vadd.f32 %v2034_v13, %v2017_v29 }
 0x2fd   : > { %v2151_v35 = vpop.permute.xlu0 %2150 }
 0x2fe   : > { %v2156_v42 = vadd.f32 %v2151_v35, %v2135_v38 }
 0x2ff   : > { %v2055_v32 = vpop.permute.xlu1 %2054 }
 0x300   : > { %v2059_v62 = vadd.f32 %v2055_v32, %v2038_v43 }
 0x301   : > { %v2172_v56 = vpop.permute.xlu0 %2171 }
 0x302   : > { %v2177_v18 = vadd.f32 %v2172_v56, %v2156_v42 }
 0x303   : > { %v2076_v8 = vpop.permute.xlu1 %2075 }
 0x304   : > { %v2080_v60 = vadd.f32 %v2076_v8, %v2059_v62 }
 0x305   : > { %v2193_v7 = vpop.permute.xlu0 %2192 }
 0x306   : > { %v2198_v51 = vadd.f32 %v2193_v7, %v2177_v18 }
 0x307   : > { %v2090_v58 = vpop.permute.xlu1 %2089 }
 0x308   : > { %v2094_v35 = vadd.f32 %v2090_v58, %v2080_v60 }
 0x309   : > { %v2214_v17 = vpop.permute.xlu0 %2213 }
 0x30a   : > { %v2219_v22 = vadd.f32 %v2214_v17, %v2198_v51 }
 0x30b   : > { %v2111_v28 = vpop.permute.xlu1 %2110 }
 0x30c   : > { %v2115_v61 = vadd.f32 %v2111_v28, %v2094_v35 }
 0x30d   : > { %v2228_v21 = vpop.permute.xlu0 %2227 }
 0x30e   : > { %v2233_v59 = vadd.f32 %v2228_v21, %v2219_v22 }
 0x30f   : > { %v2132_v40 = vpop.permute.xlu1 %2131 }
 0x310   : > { %v2136_v53 = vadd.f32 %v2132_v40, %v2115_v61 }
 0x311   : > { %v2249_v57 = vpop.permute.xlu0 %2248 }
 0x312   : > { %v2254_v44 = vadd.f32 %v2249_v57, %v2233_v59 }
 0x313   : > { %v2153_v39 = vpop.permute.xlu1 %2152 }
 0x314   : > { %v2157_v17 = vadd.f32 %v2153_v39, %v2136_v53 }
 0x315   : > { %v2270_v33 = vpop.permute.xlu0 %2269 }
 0x316   : > { %v2275_v11 = vadd.f32 %v2270_v33, %v2254_v44 }
 0x317   : > { %v2174_v26 = vpop.permute.xlu1 %2173 }
 0x318   : > { %v2178_v34 = vadd.f32 %v2174_v26, %v2157_v17 }
 0x319   : > { %v2291_v9 = vpop.permute.xlu0 %2290 }
 0x31a   : > { %v2296_v12 = vadd.f32 %v2291_v9, %v2275_v11 }
 0x31b   : > { %v2195_v55 = vpop.permute.xlu1 %2194 }
 0x31c   : > { %v2199_v14 = vadd.f32 %v2195_v55, %v2178_v34 }
 0x31d   : > { %v2312_v50 = vpop.permute.xlu0 %2311 }
 0x31e   : > { %v2317_v23 = vadd.f32 %v2312_v50, %v2296_v12 }
 0x31f   : > { %v2216_v24 = vpop.permute.xlu1 %2215 }
 0x320   : > { %v2220_v57 = vadd.f32 %v2216_v24, %v2199_v14 }
 0x321   : > { %v2333_v5 = vpop.permute.xlu0 %2332 }
 0x322   : > { %v2338_v15 = vadd.f32 %v2333_v5, %v2317_v23 }
 0x323   : > { %v2230_v54 = vpop.permute.xlu1 %2229 }
 0x324   : > { %v2234_v10 = vadd.f32 %v2230_v54, %v2220_v57 }
 0x325   : > { %v2354_v37 = vpop.permute.xlu0 %2353 }
 0x326   : > { %v2359_v7 = vadd.f32 %v2354_v37, %v2338_v15 }
 0x327   : > { %v2251_v3 = vpop.permute.xlu1 %2250 }
 0x328   : > { %v2255_v31 = vadd.f32 %v2251_v3, %v2234_v10 }
 0x329   : > { %v2368_v49 = vpop.permute.xlu0 %2367 }
 0x32a   : > { %v2373_v25 = vadd.f32 %v2368_v49, %v2359_v7 }
 0x32b   : > { %v2272_v63 = vpop.permute.xlu1 %2271 }
 0x32c   : > { %v2276_v9 = vadd.f32 %v2272_v63, %v2255_v31 }
 0x32d   : > { %v2389_v27 = vpop.permute.xlu0 %2388 }
 0x32e   : > { %v2394_v45 = vadd.f32 %v2389_v27, %v2373_v25 }
 0x32f   : > { %v2293_v16 = vpop.permute.xlu1 %2292 }
 0x330   : > { %v2297_v19 = vadd.f32 %v2293_v16, %v2276_v9 }
 0x331   : > { %v2410_v56 = vpop.permute.xlu0 %2409 }
 0x332   : > { %v2415_v32 = vadd.f32 %v2410_v56, %v2394_v45 }
 0x333   : > { %v2314_v0 = vpop.permute.xlu1 %2313 }
 0x334   : > { %v2318_v26 = vadd.f32 %v2314_v0, %v2297_v19 }
 0x335   : > { %v2431_v4 = vpop.permute.xlu0 %2430 }
 0x336   : > { %v2436_v47 = vadd.f32 %v2431_v4, %v2415_v32 }
 0x337   : > { %v2335_v13 = vpop.permute.xlu1 %2334 }
 0x338   : > { %v2339_v2 = vadd.f32 %v2335_v13, %v2318_v26 }
 0x339   : > { %v2452_v21 = vpop.permute.xlu0 %2451 }
 0x33a   : > { %v2457_v58 = vadd.f32 %v2452_v21, %v2436_v47 }
 0x33b   : > { %v2356_v8 = vpop.permute.xlu1 %2355 }
 0x33c   : > { %v2360_v55 = vadd.f32 %v2356_v8, %v2339_v2 }
 0x33d   : > { %v2473_v36 = vpop.permute.xlu0 %2472 }
 0x33e   : > { %v2478_v33 = vadd.f32 %v2473_v36, %v2457_v58 }
 0x33f   : > { %v2370_v28 = vpop.permute.xlu1 %2369 }
 0x340   : > { %v2374_v38 = vadd.f32 %v2370_v28, %v2360_v55 }
 0x341   : > { %v2494_v48 = vpop.permute.xlu0 %2493 }
 0x342   : > { %v2499_v40 = vadd.f32 %v2494_v48, %v2478_v33 }
 0x343   : > { %v2391_v39 = vpop.permute.xlu1 %2390 }
 0x344   : > { %v2735_v20 = vmul.f32 -1.442695, %v2499_v40  ;;  %v2395_v41 = vadd.f32 %v2391_v39, %v2374_v38 }
 0x346   : > { %2844 = vpow2.f32 %v2735_v20 }
 0x347   : > { %v2412_v52 = vpop.permute.xlu1 %2411 }
 0x348   : > { %v2416_v24 = vadd.f32 %v2412_v52, %v2395_v41 }
 0x34b   : > { %v2433_v50 = vpop.permute.xlu1 %2432 }
 0x34c   : > { %v2437_v5 = vadd.f32 %v2433_v50, %v2416_v24 }
 0x34f   : > { %v2454_v42 = vpop.permute.xlu1 %2453 }
 0x350   : > { %v2458_v51 = vadd.f32 %v2454_v42, %v2437_v5 }
 0x353   : > { %v2845_v30 = vpop.eup %2844  ;;  %v2475_v6 = vpop.permute.xlu1 %2474 }
 0x354   : > { %v2507_v18 = vadd.f32 1.0, %v2845_v30  ;;  %v2479_v54 = vadd.f32 %v2475_v6, %v2458_v51 }
 0x356   : > { %2846 = vrcp.f32 %v2507_v18 }
 0x357   : > { %v2496_v1 = vpop.permute.xlu1 %2495 }
 0x358   : > { %v2500_v37 = vadd.f32 %v2496_v1, %v2479_v54 }
 0x35a   : > { %v2736_v22 = vmul.f32 -1.442695, %v2500_v37 }
 0x35c   : > { %2848 = vpow2.f32 %v2736_v22 }
 0x363   : > { %v2847_v46 = vpop.eup %2846 }
 0x364   : > { %2514 = vst.msk [vmem:[%s187_s15] sm:$0xff] %vm2513_vm11, %v2847_v46 }
 0x369   : > { %v2849_v59 = vpop.eup %2848 }
 0x36a   : > { %v2508_v3 = vadd.f32 1.0, %v2849_v59 }
 0x36c   : > { %2850 = vrcp.f32 %v2508_v3 }
 0x379   : > { %v2851_v29 = vpop.eup %2850 }
 0x37a   : > { %2515 = vst.msk [vmem:[%s187_s15 + $0x8] sm:$0xff] %vm2513_vm11, %v2851_v29 }
 0x37b   : > { %2908 = shalt.err (!%p2905_p7)
}
 0x37c   : > { %s2909_s0 = scalar_lea.hbm %s5728_s11, 256  ;;  %s2913_s19 = scalar_lea.hbm %s6268_s27, 512 }
 0x37d   : > { %p2910_p2 = scmp.ne.s32.totalorder %s5728_s11, %s2909_s0  ;;  %p2914_p13 = scmp.lt.s32.totalorder %s5728_s11, %s6268_s27 }
 0x37e   : > { %p2915_p0 = scmp.lt.s32.totalorder %s2913_s19, %s2909_s0 }
 0x37f   : > { %p2911_p11 = pnand %p2910_p2, %p6269_p4 }
 0x380   : > { %p2916_p10 = por %p2915_p0, %p2914_p13 }
 0x381   : > { %p2912_p12 = pneg %p2911_p11 }
 0x383   : > { %p2917_p1 = pnand %p2916_p10, %p2912_p12 }
 0x385   : > { %2920 = shalt.err (!%p2917_p1)
}
 0x386   : > { %s3008_s25 = smov 128   ;;  %s3009_s22 = smov 8  }
 0x387   : > { %2750 = dma.vmem_to_hbm [thread:$0]  (%p6269_p4), %s5730_s29, 256, %s5728_s11, %s2517_s30, %s3008_s25, %s3008_s25, %s3009_s22  }
 0x388 PF: > { %s6270_s20 = sld [smem:[#allocation14_spill]] }
 0x389   : > { %s6271_s3 = sld [smem:[#allocation20_spill]] }
 0x38a   : > { %s6272_s6 = sld [smem:[#allocation19_spill]] }
 0x38e   : > { %s2545_s7 = sand.u32 1, %s6270_s20  }
 0x38f   : > { %p6273_p6 = scmp.ne.s32.totalorder %s6271_s3, 0  ;;  %s2546_s26 = scalar_lea.sflag [#allocation7], %s2545_s7 }
 0x390   : > { %p6274_p8 = scmp.ge.s32.totalorder %s6272_s6, 2 }
 0x392   : > { %p2761_p9 = pnand %p6274_p8, %p6273_p6 }
 0x394   : > { %p2762_p3 = pneg %p2761_p9 }
 0x396   : > { %2954 = dma.done.wait (%p2762_p3), %s2546_s26, 256  }
 0x397   : > { %2956 = vsyncadd (%p2762_p3), %s2546_s26, 4294967040  ;;  %s19_s14 = sadd.s32 1, %s6272_s6   ;;  %s6275_s9 = sld [smem:[#allocation15_spill]] }
 0x398   : > { %p16_p5 = scmp.ge.s32.totalorder %s19_s14, 4   ;;  %s6276_s10 = sld [smem:[#allocation16_spill]] }
 0x399   : > { %s6277_s11 = sld [smem:[#allocation23_spill]] }
 0x39a   : > { %s6278_s12 = sld [smem:[#allocation18_spill]]  ;;  %18 = sbr.rel (!%p16_p5) target bundleno = 11 (0xb), region = 87 }
 0x39b   : > { %s6279_s13 = sld [smem:[#allocation21_spill]] }
 0x39f   :  { %2551 = vsyncpa [#allocation6], 1 }
 0x3a0   :  { %2553 = vsyncpa [#allocation6 + $0x1], 1 }
 0x3a1   :  { %2554 = vsyncpa [#allocation7], 1 }
 0x3a2   :  { %2556 = vsyncpa [#allocation7 + $0x1], 1 }
 0x3a3   :  { %2557 = vsyncpa [#allocation8], 1 }
 0x3a4   :  { %2559 = vsyncpa [#allocation8 + $0x1], 1 }

</bundles_post_ra>
